<compile_context>
chip_gen: v7x
topology: tpu7x:2x2x1
jax: 0.10.0
libtpu: 0.0.40
codegen_flags: <defaults>
</compile_context>

<pallas_src>
import functools

import numpy as np

import jax
import jax.numpy as jnp
from jax import lax
from jax.experimental import pallas as pl
from jax.experimental.pallas import tpu as pltpu


# ----------------------------------------------------------------------------
# Static network geometry
# ----------------------------------------------------------------------------
def _conv_dims(state_dim, n_frame):
    s = state_dim
    return ((s, s, n_frame, 16),
            (s // 2, s // 2, 16, 16),
            (s // 2, s // 2, 16, 16),
            (s // 4, s // 4, 16, 32),
            (s // 4, s // 4, 32, 16))


_POOLED = (0, 2, 4)            # MaxPool2d(2) after conv 1, 3, 5


def _out_width(action_dim):
    # lane-dense output slab: logits | value | entropy | zero padding
    return 128 * ((action_dim + 2 + 127) // 128)


def _h_in_image(rows, H):
    # row index within an image (H is a power of two at all layers here)
    if H & (H - 1) == 0:
        return rows & (H - 1)
    return rows % H


# ----------------------------------------------------------------------------
# Fused Pallas kernel (whole forward pass for one batch tile)
# ----------------------------------------------------------------------------
def _fused_atari_kernel(*refs, conv_dims, tb, action_dim, hf):
    x_ref = refs[0]
    conv_w = [refs[1 + 2 * i] for i in range(5)]      # banded bf16 (3*W*Cin, W*Cout)
    conv_b = [refs[2 + 2 * i] for i in range(5)]      # f32 bias rows (1, W*Cout)
    w1_ref, b1_ref, w2_ref, b2_ref = refs[11:15]      # fused heads
    out_ref = refs[15]
    scr = list(refs[16:19])                           # f32 pool scratch (one per pool)

    def conv_elu(a, li):
        """3x3 'same' conv + bias + ELU on a (tb*H, W*Cin) f32 slab.

        dy taps: sublane rolls (XLU) + image-boundary masks; dx + channel mix:
        one bf16 banded GEMM with K = 3*W*Cin.  Elementwise stays f32."""
        H, W, Cin, Cout = conv_dims[li]
        del Cin, Cout
        n = a.shape[0]
        h = _h_in_image(lax.broadcasted_iota(jnp.int32, a.shape, 0), H)
        up = jnp.where(h == 0, 0.0, pltpu.roll(a, shift=1, axis=0))          # x[h-1]
        dn = jnp.where(h == H - 1, 0.0, pltpu.roll(a, shift=n - 1, axis=0))  # x[h+1]
        cat = jnp.concatenate([up, a, dn], axis=1).astype(jnp.bfloat16)
        y = jnp.dot(cat, conv_w[li][...],
                    preferred_element_type=jnp.float32) + conv_b[li][...]
        # ELU (alpha=1); exp argument clamped so the unselected branch is finite
        return jnp.where(y > 0.0, y, jnp.exp(jnp.minimum(y, 0.0)) - 1.0)

    # ---- conv stack (activations never leave VMEM / vregs) ----
    a = x_ref[...].astype(jnp.float32)          # (tb*S, S*nf); /255 folded in conv1 W
    pool_i = 0
    for li in range(5):
        H, W, _, Cout = conv_dims[li]
        a = conv_elu(a, li)
        if li in _POOLED and li != 4:
            # 2x2 maxpool: w-pool = max of the two contiguous lane halves (the
            # even/odd-w split is folded into the conv weight columns); h-pool =
            # stride-2 sublane reads from scratch.
            half = (W * Cout) // 2
            s_ref = scr[pool_i]
            pool_i += 1
            s_ref[...] = jnp.maximum(a[:, :half], a[:, half:])
            n2 = (tb * H) // 2
            a = jnp.maximum(s_ref[pl.ds(0, n2, stride=2), :],
                            s_ref[pl.ds(1, n2, stride=2), :])

    # ---- last 2x2 maxpool fused with the flatten -> (tb, feat) lane-dense ----
    H, W, _, Cout = conv_dims[4]
    half = (W * Cout) // 2
    s_ref = scr[2]
    s_ref[...] = jnp.maximum(a[:, :half], a[:, half:])
    pieces = []
    for h2 in range(hf):                        # per pooled image-row, all samples
        ev = s_ref[pl.ds(2 * h2, tb, stride=H), :]
        od = s_ref[pl.ds(2 * h2 + 1, tb, stride=H), :]
        pieces.append(jnp.maximum(ev, od))
    flat = pieces[0] if hf == 1 else jnp.concatenate(pieces, axis=1)   # (tb, feat)

    # ---- fused actor/value heads (flatten permutation folded into W1) ----
    h1 = jnp.dot(flat.astype(jnp.bfloat16), w1_ref[...],
                 preferred_element_type=jnp.float32) + b1_ref[...]
    h1 = jnp.maximum(h1, 0.0)                   # shared ReLU, f32
    res = jnp.dot(h1.astype(jnp.bfloat16), w2_ref[...],
                  preferred_element_type=jnp.float32) + b2_ref[...]

    # ---- categorical entropy epilogue (lane-masked, f32, EUP reciprocal) ----
    lane = lax.broadcasted_iota(jnp.int32, res.shape, 1)
    amask = lane < action_dim
    mx = jnp.max(jnp.where(amask, res, -jnp.inf), axis=-1, keepdims=True)
    e = jnp.where(amask, jnp.exp(res - mx), 0.0)
    s = jnp.sum(e, axis=-1, keepdims=True)
    p = e * pl.reciprocal(s, approx=True)
    logp = res - mx - jnp.log(s)
    ent = -jnp.sum(p * logp, axis=-1, keepdims=True)          # (tb, 1)

    out_ref[...] = jnp.where(lane == action_dim + 1, ent, res)


# ----------------------------------------------------------------------------
# pallas_call wrapper
# ----------------------------------------------------------------------------
def atari_forward(operands, x_nchw, sample_key, action_dim):
    B, nf, S, _ = x_nchw.shape
    dims = _conv_dims(S, nf)
    hf = S // 8
    out_w = _out_width(action_dim)
    tb = 8 if B % 8 == 0 else B                 # batch tile (grid is parallel over tiles)
    assert B % tb == 0

    # uint8 NCHW -> lane-dense (B*S, S*nf) bf16 slab.  Cast + transpose fuse into
    # one tiny XLA op (no f32 materialisation); the /255 scale lives in conv1's
    # weights.  Lane layout: w * n_frame + c.
    x2d = jnp.transpose(x_nchw.astype(jnp.bfloat16), (0, 2, 3, 1)).reshape(B * S, S * nf)

    kernel = functools.partial(_fused_atari_kernel, conv_dims=dims, tb=tb,
                               action_dim=action_dim, hf=hf)

    const_specs = [pl.BlockSpec(o.shape, lambda i: (0, 0)) for o in operands]
    scratch = [pltpu.VMEM((tb * dims[li][0], (dims[li][1] * dims[li][3]) // 2),
                          jnp.float32) for li in _POOLED]

    out = pl.pallas_call(
        kernel,
        out_shape=jax.ShapeDtypeStruct((B, out_w), jnp.float32),
        grid=(B // tb,),
        in_specs=[pl.BlockSpec((tb * S, S * nf), lambda i: (i, 0))] + const_specs,
        out_specs=pl.BlockSpec((tb, out_w), lambda i: (i, 0)),
        scratch_shapes=scratch,
        compiler_params=pltpu.CompilerParams(
            dimension_semantics=("parallel",),
            vmem_limit_bytes=32 * 1024 * 1024),
    )(x2d, *operands)

    logits = out[:, :action_dim]
    value = out[:, action_dim]          # matches torch.squeeze for B > 1
    entropy = out[:, action_dim + 1]
    # TODO(synk): torch.distributions.Categorical object has no JAX analogue;
    # return logits in its place and sample via jax.random.categorical.
    action = jax.random.categorical(sample_key, logits, axis=-1)
    return action, logits, value, entropy


# ----------------------------------------------------------------------------
# Parameters (synthetic) and offline constant-operand preparation
# ----------------------------------------------------------------------------
def make_params(action_dim, state_dim, n_frame, seed=0):
    # TODO(synk): PyTorch uses orthogonal init; deterministic scaled-normal is
    # used here since this is a synthetic kernel (no checkpoint semantics).
    keys = jax.random.split(jax.random.PRNGKey(seed), 9)
    feat = 16 * (state_dim // 8) ** 2

    def conv_init(key, cout, cin):
        w = jax.random.normal(key, (cout, cin, 3, 3), jnp.float32)
        return w * jnp.sqrt(2.0 / (cin * 9)), jnp.zeros((cout,), jnp.float32)

    def lin_init(key, out_dim, in_dim):
        w = jax.random.normal(key, (out_dim, in_dim), jnp.float32)
        return w * jnp.sqrt(2.0 / in_dim), jnp.zeros((out_dim,), jnp.float32)

    p = {}
    p["c1w"], p["c1b"] = conv_init(keys[0], 16, n_frame)
    p["c2w"], p["c2b"] = conv_init(keys[1], 16, 16)
    p["c3w"], p["c3b"] = conv_init(keys[2], 16, 16)
    p["c4w"], p["c4b"] = conv_init(keys[3], 32, 16)
    p["c5w"], p["c5b"] = conv_init(keys[4], 16, 32)
    p["a1w"], p["a1b"] = lin_init(keys[5], 256, feat)
    p["a2w"], p["a2b"] = lin_init(keys[6], action_dim, 256)
    p["v1w"], p["v1b"] = lin_init(keys[7], 256, feat)
    p["v2w"], p["v2b"] = lin_init(keys[8], 1, 256)
    return p


def prepare_operands(params, state_dim, n_frame, action_dim):
    """Build, once per weight set, the (batch-independent) constant operands:
    per-conv banded bf16 (3*W*Cin, W*Cout) matrices (dx + channel mix folded in;
    maxpool even/odd-w column split and the x/255 scale folded in where relevant),
    f32 bias rows, and fused bf16 head weights with the torch NCHW-flatten
    permutation folded in."""
    dims = _conv_dims(state_dim, n_frame)
    ops = []

    for li, (H, W, Cin, Cout) in enumerate(dims):
        K = np.asarray(params[f"c{li + 1}w"], np.float32)        # (Cout, Cin, 3, 3)
        if li == 0:
            K = K / 255.0                                        # fold x/255 preproc
        bias = np.asarray(params[f"c{li + 1}b"], np.float32)
        pooled = li in _POOLED
        half = (W * Cout) // 2

        def col_base(w):
            if not pooled:
                return w * Cout
            return (w // 2) * Cout if w % 2 == 0 else half + (w // 2) * Cout

        Wc = np.zeros((3 * W * Cin, W * Cout), np.float32)
        brow = np.zeros((1, W * Cout), np.float32)
        for w in range(W):
            cb = col_base(w)
            brow[0, cb:cb + Cout] = bias
            for dy in range(3):
                for dx in range(3):
                    ws = w + dx - 1
                    if 0 <= ws < W:
                        r0 = dy * W * Cin + ws * Cin
                        Wc[r0:r0 + Cin, cb:cb + Cout] = K[:, :, dy, dx].T
        ops += [jnp.asarray(Wc, jnp.bfloat16), jnp.asarray(brow, jnp.float32)]

    # ---- fused heads: fold the torch NCHW-flatten order into W1's rows ----
    hf = wf = state_dim // 8
    cf = 16
    feat = cf * hf * wf
    perm = np.empty((feat,), np.int64)
    for h in range(hf):
        for w in range(wf):
            for c in range(cf):
                # kernel flat layout: h-major, then w, then c  ->  torch c,h,w
                perm[h * (wf * cf) + w * cf + c] = c * (hf * wf) + h * wf + w
    a1w = np.asarray(params["a1w"], np.float32)                  # (256, feat)
    v1w = np.asarray(params["v1w"], np.float32)                  # (256, feat)
    W1 = np.concatenate([a1w[:, perm].T, v1w[:, perm].T], axis=1)     # (feat, 512)
    b1 = np.concatenate([np.asarray(params["a1b"], np.float32),
                         np.asarray(params["v1b"], np.float32)])[None, :]

    out_w = _out_width(action_dim)
    a2w = np.asarray(params["a2w"], np.float32)                  # (A, 256)
    v2w = np.asarray(params["v2w"], np.float32)                  # (1, 256)
    W2 = np.zeros((512, out_w), np.float32)
    W2[:256, :action_dim] = a2w.T
    W2[256:, action_dim:action_dim + 1] = v2w.T
    b2 = np.zeros((1, out_w), np.float32)
    b2[0, :action_dim] = np.asarray(params["a2b"], np.float32)
    b2[0, action_dim] = float(np.asarray(params["v2b"], np.float32)[0])

    ops += [jnp.asarray(W1, jnp.bfloat16), jnp.asarray(b1, jnp.float32),
            jnp.asarray(W2, jnp.bfloat16), jnp.asarray(b2, jnp.float32)]
    return ops


# ----------------------------------------------------------------------------
# Pure-JAX f32 reference (for a loose numerical check of the fused kernel)
# ----------------------------------------------------------------------------
def reference_forward(params, x_nchw, action_dim):
    x = x_nchw.astype(jnp.float32) / 255.0

    def conv(h, w, b):
        y = lax.conv_general_dilated(h, w, (1, 1), "SAME",
                                     dimension_numbers=("NCHW", "OIHW", "NCHW"))
        return jax.nn.elu(y + b[None, :, None, None])

    def pool(h):
        return lax.reduce_window(h, -jnp.inf, lax.max,
                                 (1, 1, 2, 2), (1, 1, 2, 2), "VALID")

    h = pool(conv(x, params["c1w"], params["c1b"]))
    h = conv(h, params["c2w"], params["c2b"])
    h = pool(conv(h, params["c3w"], params["c3b"]))
    h = conv(h, params["c4w"], params["c4b"])
    h = pool(conv(h, params["c5w"], params["c5b"]))
    f = h.reshape(h.shape[0], -1)
    ha = jax.nn.relu(f @ params["a1w"].T + params["a1b"])
    logits = ha @ params["a2w"].T + params["a2b"]
    hv = jax.nn.relu(f @ params["v1w"].T + params["v1b"])
    value = (hv @ params["v2w"].T + params["v2b"])[:, 0]
    logp = jax.nn.log_softmax(logits, axis=-1)
    entropy = -jnp.sum(jnp.exp(logp) * logp, axis=-1)
    return logits, value, entropy


# ----------------------------------------------------------------------------
if __name__ == "__main__":
    batch, n_frame, state_dim, action_dim = 16, 4, 16, 6   # 2 batch tiles of 8

    key = jax.random.PRNGKey(0)
    k_x, k_sample = jax.random.split(key)
    x = jax.random.randint(k_x, (batch, n_frame, state_dim, state_dim), 0, 256,
                           dtype=jnp.int32).astype(jnp.uint8)

    params = make_params(action_dim, state_dim, n_frame, seed=0)
    operands = prepare_operands(params, state_dim, n_frame, action_dim)

    fwd = jax.jit(functools.partial(atari_forward, action_dim=action_dim))
    action, logits, value, entropy = fwd(operands, x, k_sample)
    jax.block_until_ready((action, logits, value, entropy))

    assert action.shape == (batch,)
    assert logits.shape == (batch, action_dim)
    assert value.shape == (batch,)
    assert entropy.shape == (batch,)

    # Loose check against an f32 reference (kernel runs bf16 matmuls).
    ref_logits, ref_value, ref_entropy = reference_forward(params, x, action_dim)
    np.testing.assert_allclose(np.asarray(logits), np.asarray(ref_logits),
                               atol=2e-1, rtol=5e-2)
    np.testing.assert_allclose(np.asarray(value), np.asarray(ref_value),
                               atol=2e-1, rtol=5e-2)
    np.testing.assert_allclose(np.asarray(entropy), np.asarray(ref_entropy),
                               atol=1e-1, rtol=5e-2)
    print("KERNEL_OK")
</pallas_src>

<mosaic_0001>
module attributes {stable_mosaic.version = 11 : i64} {
  func.func @_fused_atari_kernel(%arg0: i32, %arg1: memref<128x64xbf16, #tpu.memory_space<vmem>>, %arg2: memref<192x256xbf16, #tpu.memory_space<vmem>>, %arg3: memref<1x256xf32, #tpu.memory_space<vmem>>, %arg4: memref<384x128xbf16, #tpu.memory_space<vmem>>, %arg5: memref<1x128xf32, #tpu.memory_space<vmem>>, %arg6: memref<384x128xbf16, #tpu.memory_space<vmem>>, %arg7: memref<1x128xf32, #tpu.memory_space<vmem>>, %arg8: memref<192x128xbf16, #tpu.memory_space<vmem>>, %arg9: memref<1x128xf32, #tpu.memory_space<vmem>>, %arg10: memref<384x64xbf16, #tpu.memory_space<vmem>>, %arg11: memref<1x64xf32, #tpu.memory_space<vmem>>, %arg12: memref<64x512xbf16, #tpu.memory_space<vmem>>, %arg13: memref<1x512xf32, #tpu.memory_space<vmem>>, %arg14: memref<512x128xbf16, #tpu.memory_space<vmem>>, %arg15: memref<1x128xf32, #tpu.memory_space<vmem>>, %arg16: memref<8x128xf32, #tpu.memory_space<vmem>>, %arg17: memref<128x128xf32, #tpu.memory_space<vmem>>, %arg18: memref<64x64xf32, #tpu.memory_space<vmem>>, %arg19: memref<32x32xf32, #tpu.memory_space<vmem>>) attributes {dimension_semantics = [#tpu.dimension_semantics<parallel>], iteration_bounds = array<i64: 2>, scalar_prefetch = 0 : i64, scratch_operands = 3 : i64, tpu.core_type = #tpu.core_type<tc>, window_params = [{transform_indices = @transform_0, window_bounds = array<i64: 128, 64>}, {pipeline_mode = #tpu.pipeline_mode<synchronous>, transform_indices = @transform_1, window_bounds = array<i64: 192, 256>}, {pipeline_mode = #tpu.pipeline_mode<synchronous>, transform_indices = @transform_2, window_bounds = array<i64: 1, 256>}, {pipeline_mode = #tpu.pipeline_mode<synchronous>, transform_indices = @transform_3, window_bounds = array<i64: 384, 128>}, {pipeline_mode = #tpu.pipeline_mode<synchronous>, transform_indices = @transform_4, window_bounds = array<i64: 1, 128>}, {pipeline_mode = #tpu.pipeline_mode<synchronous>, transform_indices = @transform_5, window_bounds = array<i64: 384, 128>}, {pipeline_mode = #tpu.pipeline_mode<synchronous>, transform_indices = @transform_6, window_bounds = array<i64: 1, 128>}, {pipeline_mode = #tpu.pipeline_mode<synchronous>, transform_indices = @transform_7, window_bounds = array<i64: 192, 128>}, {pipeline_mode = #tpu.pipeline_mode<synchronous>, transform_indices = @transform_8, window_bounds = array<i64: 1, 128>}, {pipeline_mode = #tpu.pipeline_mode<synchronous>, transform_indices = @transform_9, window_bounds = array<i64: 384, 64>}, {pipeline_mode = #tpu.pipeline_mode<synchronous>, transform_indices = @transform_10, window_bounds = array<i64: 1, 64>}, {pipeline_mode = #tpu.pipeline_mode<synchronous>, transform_indices = @transform_11, window_bounds = array<i64: 64, 512>}, {pipeline_mode = #tpu.pipeline_mode<synchronous>, transform_indices = @transform_12, window_bounds = array<i64: 1, 512>}, {pipeline_mode = #tpu.pipeline_mode<synchronous>, transform_indices = @transform_13, window_bounds = array<i64: 512, 128>}, {pipeline_mode = #tpu.pipeline_mode<synchronous>, transform_indices = @transform_14, window_bounds = array<i64: 1, 128>}, {transform_indices = @transform_15, window_bounds = array<i64: 8, 128>}]} {
    %c0 = arith.constant 0 : index
    %c0_0 = arith.constant 0 : index
    %0 = vector.load %arg1[%c0, %c0_0] : memref<128x64xbf16, #tpu.memory_space<vmem>>, vector<128x64xbf16>
    %1 = arith.extf %0 : vector<128x64xbf16> to vector<128x64xf32>
    %2 = tpu.iota {dimensions = array<i32: 0>} : vector<128x64xi32>
    %c15_i32 = arith.constant 15 : i32
    %3 = vector.broadcast %c15_i32 : i32 to vector<128x64xi32>
    %4 = arith.andi %2, %3 : vector<128x64xi32>
    %c0_i32 = arith.constant 0 : i32
    %5 = vector.broadcast %c0_i32 : i32 to vector<128x64xi32>
    %6 = arith.cmpi eq, %4, %5 : vector<128x64xi32>
    %c1_i32 = arith.constant 1 : i32
    %7 = tpu.dynamic_rotate %1 by %c1_i32 dim 0 : vector<128x64xf32>, i32 -> vector<128x64xf32>
    %cst = arith.constant 0.000000e+00 : f32
    %8 = vector.broadcast %cst : f32 to vector<128x64xf32>
    %9 = arith.select %6, %8, %7 : vector<128x64xi1>, vector<128x64xf32>
    %c15_i32_1 = arith.constant 15 : i32
    %10 = vector.broadcast %c15_i32_1 : i32 to vector<128x64xi32>
    %11 = arith.cmpi eq, %4, %10 : vector<128x64xi32>
    %c127_i32 = arith.constant 127 : i32
    %12 = tpu.dynamic_rotate %1 by %c127_i32 dim 0 : vector<128x64xf32>, i32 -> vector<128x64xf32>
    %cst_2 = arith.constant 0.000000e+00 : f32
    %13 = vector.broadcast %cst_2 : f32 to vector<128x64xf32>
    %14 = arith.select %11, %13, %12 : vector<128x64xi1>, vector<128x64xf32>
    %15 = tpu.concatenate %9, %1, %14 in 1 : vector<128x64xf32>, vector<128x64xf32>, vector<128x64xf32> -> vector<128x192xf32>
    %16 = arith.truncf %15 : vector<128x192xf32> to vector<128x192xbf16>
    %c0_3 = arith.constant 0 : index
    %c0_4 = arith.constant 0 : index
    %17 = vector.load %arg2[%c0_3, %c0_4] : memref<192x256xbf16, #tpu.memory_space<vmem>>, vector<192x256xbf16>
    %cst_5 = arith.constant dense<0.000000e+00> : vector<128x256xf32>
    %18 = tpu.matmul %16, %17, %cst_5 {dimension_numbers = #tpu.dot_dimension_numbers<[1], [0], [0], [1], [0, 0, 1, 1], [], []>} : vector<128x192xbf16>, vector<192x256xbf16>, vector<128x256xf32> -> vector<128x256xf32>
    %c0_6 = arith.constant 0 : index
    %c0_7 = arith.constant 0 : index
    %19 = vector.load %arg3[%c0_6, %c0_7] : memref<1x256xf32, #tpu.memory_space<vmem>>, vector<1x256xf32>
    %20 = vector.broadcast %19 : vector<1x256xf32> to vector<128x256xf32>
    %21 = arith.addf %18, %20 : vector<128x256xf32>
    %cst_8 = arith.constant 0.000000e+00 : f32
    %22 = vector.broadcast %cst_8 : f32 to vector<128x256xf32>
    %23 = arith.cmpf ogt, %21, %22 : vector<128x256xf32>
    %cst_9 = arith.constant 0.000000e+00 : f32
    %24 = vector.broadcast %cst_9 : f32 to vector<128x256xf32>
    %25 = arith.minimumf %21, %24 : vector<128x256xf32>
    %26 = math.exp %25 : vector<128x256xf32>
    %cst_10 = arith.constant 1.000000e+00 : f32
    %27 = vector.broadcast %cst_10 : f32 to vector<128x256xf32>
    %28 = arith.subf %26, %27 : vector<128x256xf32>
    %29 = arith.select %23, %21, %28 : vector<128x256xi1>, vector<128x256xf32>
    %30 = vector.extract_strided_slice %29 {offsets = [0, 0], sizes = [128, 128], strides = [1, 1]} : vector<128x256xf32> to vector<128x128xf32>
    %31 = vector.extract_strided_slice %29 {offsets = [0, 128], sizes = [128, 128], strides = [1, 1]} : vector<128x256xf32> to vector<128x128xf32>
    %32 = arith.maximumf %30, %31 : vector<128x128xf32>
    %c0_11 = arith.constant 0 : index
    %c0_12 = arith.constant 0 : index
    %33 = vector.load %arg17[%c0_11, %c0_12] : memref<128x128xf32, #tpu.memory_space<vmem>>, vector<128x128xf32>
    tpu.vector_store %arg17[%c0_11, %c0_12], %32 {strides = array<i32>} : memref<128x128xf32, #tpu.memory_space<vmem>>, vector<128x128xf32>,
    %c0_13 = arith.constant 0 : index
    %c0_14 = arith.constant 0 : index
    %34 = tpu.strided_load %arg17[%c0_13, %c0_14] {strides = array<i32: 2, 1>} : memref<128x128xf32, #tpu.memory_space<vmem>>, vector<64x128xf32>
    %c1 = arith.constant 1 : index
    %c0_15 = arith.constant 0 : index
    %35 = tpu.strided_load %arg17[%c1, %c0_15] {strides = array<i32: 2, 1>} : memref<128x128xf32, #tpu.memory_space<vmem>>, vector<64x128xf32>
    %36 = arith.maximumf %34, %35 : vector<64x128xf32>
    %37 = tpu.iota {dimensions = array<i32: 0>} : vector<64x128xi32>
    %c7_i32 = arith.constant 7 : i32
    %38 = vector.broadcast %c7_i32 : i32 to vector<64x128xi32>
    %39 = arith.andi %37, %38 : vector<64x128xi32>
    %c0_i32_16 = arith.constant 0 : i32
    %40 = vector.broadcast %c0_i32_16 : i32 to vector<64x128xi32>
    %41 = arith.cmpi eq, %39, %40 : vector<64x128xi32>
    %c1_i32_17 = arith.constant 1 : i32
    %42 = tpu.dynamic_rotate %36 by %c1_i32_17 dim 0 : vector<64x128xf32>, i32 -> vector<64x128xf32>
    %cst_18 = arith.constant 0.000000e+00 : f32
    %43 = vector.broadcast %cst_18 : f32 to vector<64x128xf32>
    %44 = arith.select %41, %43, %42 : vector<64x128xi1>, vector<64x128xf32>
    %c7_i32_19 = arith.constant 7 : i32
    %45 = vector.broadcast %c7_i32_19 : i32 to vector<64x128xi32>
    %46 = arith.cmpi eq, %39, %45 : vector<64x128xi32>
    %c63_i32 = arith.constant 63 : i32
    %47 = tpu.dynamic_rotate %36 by %c63_i32 dim 0 : vector<64x128xf32>, i32 -> vector<64x128xf32>
    %cst_20 = arith.constant 0.000000e+00 : f32
    %48 = vector.broadcast %cst_20 : f32 to vector<64x128xf32>
    %49 = arith.select %46, %48, %47 : vector<64x128xi1>, vector<64x128xf32>
    %50 = tpu.concatenate %44, %36, %49 in 1 : vector<64x128xf32>, vector<64x128xf32>, vector<64x128xf32> -> vector<64x384xf32>
    %51 = arith.truncf %50 : vector<64x384xf32> to vector<64x384xbf16>
    %c0_21 = arith.constant 0 : index
    %c0_22 = arith.constant 0 : index
    %52 = vector.load %arg4[%c0_21, %c0_22] : memref<384x128xbf16, #tpu.memory_space<vmem>>, vector<384x128xbf16>
    %cst_23 = arith.constant dense<0.000000e+00> : vector<64x128xf32>
    %53 = tpu.matmul %51, %52, %cst_23 {dimension_numbers = #tpu.dot_dimension_numbers<[1], [0], [0], [1], [0, 0, 1, 1], [], []>} : vector<64x384xbf16>, vector<384x128xbf16>, vector<64x128xf32> -> vector<64x128xf32>
    %c0_24 = arith.constant 0 : index
    %c0_25 = arith.constant 0 : index
    %54 = vector.load %arg5[%c0_24, %c0_25] : memref<1x128xf32, #tpu.memory_space<vmem>>, vector<1x128xf32>
    %55 = vector.broadcast %54 : vector<1x128xf32> to vector<64x128xf32>
    %56 = arith.addf %53, %55 : vector<64x128xf32>
    %cst_26 = arith.constant 0.000000e+00 : f32
    %57 = vector.broadcast %cst_26 : f32 to vector<64x128xf32>
    %58 = arith.cmpf ogt, %56, %57 : vector<64x128xf32>
    %cst_27 = arith.constant 0.000000e+00 : f32
    %59 = vector.broadcast %cst_27 : f32 to vector<64x128xf32>
    %60 = arith.minimumf %56, %59 : vector<64x128xf32>
    %61 = math.exp %60 : vector<64x128xf32>
    %cst_28 = arith.constant 1.000000e+00 : f32
    %62 = vector.broadcast %cst_28 : f32 to vector<64x128xf32>
    %63 = arith.subf %61, %62 : vector<64x128xf32>
    %64 = arith.select %58, %56, %63 : vector<64x128xi1>, vector<64x128xf32>
    %65 = tpu.iota {dimensions = array<i32: 0>} : vector<64x128xi32>
    %c7_i32_29 = arith.constant 7 : i32
    %66 = vector.broadcast %c7_i32_29 : i32 to vector<64x128xi32>
    %67 = arith.andi %65, %66 : vector<64x128xi32>
    %c0_i32_30 = arith.constant 0 : i32
    %68 = vector.broadcast %c0_i32_30 : i32 to vector<64x128xi32>
    %69 = arith.cmpi eq, %67, %68 : vector<64x128xi32>
    %c1_i32_31 = arith.constant 1 : i32
    %70 = tpu.dynamic_rotate %64 by %c1_i32_31 dim 0 : vector<64x128xf32>, i32 -> vector<64x128xf32>
    %cst_32 = arith.constant 0.000000e+00 : f32
    %71 = vector.broadcast %cst_32 : f32 to vector<64x128xf32>
    %72 = arith.select %69, %71, %70 : vector<64x128xi1>, vector<64x128xf32>
    %c7_i32_33 = arith.constant 7 : i32
    %73 = vector.broadcast %c7_i32_33 : i32 to vector<64x128xi32>
    %74 = arith.cmpi eq, %67, %73 : vector<64x128xi32>
    %c63_i32_34 = arith.constant 63 : i32
    %75 = tpu.dynamic_rotate %64 by %c63_i32_34 dim 0 : vector<64x128xf32>, i32 -> vector<64x128xf32>
    %cst_35 = arith.constant 0.000000e+00 : f32
    %76 = vector.broadcast %cst_35 : f32 to vector<64x128xf32>
    %77 = arith.select %74, %76, %75 : vector<64x128xi1>, vector<64x128xf32>
    %78 = tpu.concatenate %72, %64, %77 in 1 : vector<64x128xf32>, vector<64x128xf32>, vector<64x128xf32> -> vector<64x384xf32>
    %79 = arith.truncf %78 : vector<64x384xf32> to vector<64x384xbf16>
    %c0_36 = arith.constant 0 : index
    %c0_37 = arith.constant 0 : index
    %80 = vector.load %arg6[%c0_36, %c0_37] : memref<384x128xbf16, #tpu.memory_space<vmem>>, vector<384x128xbf16>
    %cst_38 = arith.constant dense<0.000000e+00> : vector<64x128xf32>
    %81 = tpu.matmul %79, %80, %cst_38 {dimension_numbers = #tpu.dot_dimension_numbers<[1], [0], [0], [1], [0, 0, 1, 1], [], []>} : vector<64x384xbf16>, vector<384x128xbf16>, vector<64x128xf32> -> vector<64x128xf32>
    %c0_39 = arith.constant 0 : index
    %c0_40 = arith.constant 0 : index
    %82 = vector.load %arg7[%c0_39, %c0_40] : memref<1x128xf32, #tpu.memory_space<vmem>>, vector<1x128xf32>
    %83 = vector.broadcast %82 : vector<1x128xf32> to vector<64x128xf32>
    %84 = arith.addf %81, %83 : vector<64x128xf32>
    %cst_41 = arith.constant 0.000000e+00 : f32
    %85 = vector.broadcast %cst_41 : f32 to vector<64x128xf32>
    %86 = arith.cmpf ogt, %84, %85 : vector<64x128xf32>
    %cst_42 = arith.constant 0.000000e+00 : f32
    %87 = vector.broadcast %cst_42 : f32 to vector<64x128xf32>
    %88 = arith.minimumf %84, %87 : vector<64x128xf32>
    %89 = math.exp %88 : vector<64x128xf32>
    %cst_43 = arith.constant 1.000000e+00 : f32
    %90 = vector.broadcast %cst_43 : f32 to vector<64x128xf32>
    %91 = arith.subf %89, %90 : vector<64x128xf32>
    %92 = arith.select %86, %84, %91 : vector<64x128xi1>, vector<64x128xf32>
    %93 = vector.extract_strided_slice %92 {offsets = [0, 0], sizes = [64, 64], strides = [1, 1]} : vector<64x128xf32> to vector<64x64xf32>
    %94 = vector.extract_strided_slice %92 {offsets = [0, 64], sizes = [64, 64], strides = [1, 1]} : vector<64x128xf32> to vector<64x64xf32>
    %95 = arith.maximumf %93, %94 : vector<64x64xf32>
    %c0_44 = arith.constant 0 : index
    %c0_45 = arith.constant 0 : index
    %96 = vector.load %arg18[%c0_44, %c0_45] : memref<64x64xf32, #tpu.memory_space<vmem>>, vector<64x64xf32>
    tpu.vector_store %arg18[%c0_44, %c0_45], %95 {strides = array<i32>} : memref<64x64xf32, #tpu.memory_space<vmem>>, vector<64x64xf32>,
    %c0_46 = arith.constant 0 : index
    %c0_47 = arith.constant 0 : index
    %97 = tpu.strided_load %arg18[%c0_46, %c0_47] {strides = array<i32: 2, 1>} : memref<64x64xf32, #tpu.memory_space<vmem>>, vector<32x64xf32>
    %c1_48 = arith.constant 1 : index
    %c0_49 = arith.constant 0 : index
    %98 = tpu.strided_load %arg18[%c1_48, %c0_49] {strides = array<i32: 2, 1>} : memref<64x64xf32, #tpu.memory_space<vmem>>, vector<32x64xf32>
    %99 = arith.maximumf %97, %98 : vector<32x64xf32>
    %100 = tpu.iota {dimensions = array<i32: 0>} : vector<32x64xi32>
    %c3_i32 = arith.constant 3 : i32
    %101 = vector.broadcast %c3_i32 : i32 to vector<32x64xi32>
    %102 = arith.andi %100, %101 : vector<32x64xi32>
    %c0_i32_50 = arith.constant 0 : i32
    %103 = vector.broadcast %c0_i32_50 : i32 to vector<32x64xi32>
    %104 = arith.cmpi eq, %102, %103 : vector<32x64xi32>
    %c1_i32_51 = arith.constant 1 : i32
    %105 = tpu.dynamic_rotate %99 by %c1_i32_51 dim 0 : vector<32x64xf32>, i32 -> vector<32x64xf32>
    %cst_52 = arith.constant 0.000000e+00 : f32
    %106 = vector.broadcast %cst_52 : f32 to vector<32x64xf32>
    %107 = arith.select %104, %106, %105 : vector<32x64xi1>, vector<32x64xf32>
    %c3_i32_53 = arith.constant 3 : i32
    %108 = vector.broadcast %c3_i32_53 : i32 to vector<32x64xi32>
    %109 = arith.cmpi eq, %102, %108 : vector<32x64xi32>
    %c31_i32 = arith.constant 31 : i32
    %110 = tpu.dynamic_rotate %99 by %c31_i32 dim 0 : vector<32x64xf32>, i32 -> vector<32x64xf32>
    %cst_54 = arith.constant 0.000000e+00 : f32
    %111 = vector.broadcast %cst_54 : f32 to vector<32x64xf32>
    %112 = arith.select %109, %111, %110 : vector<32x64xi1>, vector<32x64xf32>
    %113 = tpu.concatenate %107, %99, %112 in 1 : vector<32x64xf32>, vector<32x64xf32>, vector<32x64xf32> -> vector<32x192xf32>
    %114 = arith.truncf %113 : vector<32x192xf32> to vector<32x192xbf16>
    %c0_55 = arith.constant 0 : index
    %c0_56 = arith.constant 0 : index
    %115 = vector.load %arg8[%c0_55, %c0_56] : memref<192x128xbf16, #tpu.memory_space<vmem>>, vector<192x128xbf16>
    %cst_57 = arith.constant dense<0.000000e+00> : vector<32x128xf32>
    %116 = tpu.matmul %114, %115, %cst_57 {dimension_numbers = #tpu.dot_dimension_numbers<[1], [0], [0], [1], [0, 0, 1, 1], [], []>} : vector<32x192xbf16>, vector<192x128xbf16>, vector<32x128xf32> -> vector<32x128xf32>
    %c0_58 = arith.constant 0 : index
    %c0_59 = arith.constant 0 : index
    %117 = vector.load %arg9[%c0_58, %c0_59] : memref<1x128xf32, #tpu.memory_space<vmem>>, vector<1x128xf32>
    %118 = vector.broadcast %117 : vector<1x128xf32> to vector<32x128xf32>
    %119 = arith.addf %116, %118 : vector<32x128xf32>
    %cst_60 = arith.constant 0.000000e+00 : f32
    %120 = vector.broadcast %cst_60 : f32 to vector<32x128xf32>
    %121 = arith.cmpf ogt, %119, %120 : vector<32x128xf32>
    %cst_61 = arith.constant 0.000000e+00 : f32
    %122 = vector.broadcast %cst_61 : f32 to vector<32x128xf32>
    %123 = arith.minimumf %119, %122 : vector<32x128xf32>
    %124 = math.exp %123 : vector<32x128xf32>
    %cst_62 = arith.constant 1.000000e+00 : f32
    %125 = vector.broadcast %cst_62 : f32 to vector<32x128xf32>
    %126 = arith.subf %124, %125 : vector<32x128xf32>
    %127 = arith.select %121, %119, %126 : vector<32x128xi1>, vector<32x128xf32>
    %128 = tpu.iota {dimensions = array<i32: 0>} : vector<32x128xi32>
    %c3_i32_63 = arith.constant 3 : i32
    %129 = vector.broadcast %c3_i32_63 : i32 to vector<32x128xi32>
    %130 = arith.andi %128, %129 : vector<32x128xi32>
    %c0_i32_64 = arith.constant 0 : i32
    %131 = vector.broadcast %c0_i32_64 : i32 to vector<32x128xi32>
    %132 = arith.cmpi eq, %130, %131 : vector<32x128xi32>
    %c1_i32_65 = arith.constant 1 : i32
    %133 = tpu.dynamic_rotate %127 by %c1_i32_65 dim 0 : vector<32x128xf32>, i32 -> vector<32x128xf32>
    %cst_66 = arith.constant 0.000000e+00 : f32
    %134 = vector.broadcast %cst_66 : f32 to vector<32x128xf32>
    %135 = arith.select %132, %134, %133 : vector<32x128xi1>, vector<32x128xf32>
    %c3_i32_67 = arith.constant 3 : i32
    %136 = vector.broadcast %c3_i32_67 : i32 to vector<32x128xi32>
    %137 = arith.cmpi eq, %130, %136 : vector<32x128xi32>
    %c31_i32_68 = arith.constant 31 : i32
    %138 = tpu.dynamic_rotate %127 by %c31_i32_68 dim 0 : vector<32x128xf32>, i32 -> vector<32x128xf32>
    %cst_69 = arith.constant 0.000000e+00 : f32
    %139 = vector.broadcast %cst_69 : f32 to vector<32x128xf32>
    %140 = arith.select %137, %139, %138 : vector<32x128xi1>, vector<32x128xf32>
    %141 = tpu.concatenate %135, %127, %140 in 1 : vector<32x128xf32>, vector<32x128xf32>, vector<32x128xf32> -> vector<32x384xf32>
    %142 = arith.truncf %141 : vector<32x384xf32> to vector<32x384xbf16>
    %c0_70 = arith.constant 0 : index
    %c0_71 = arith.constant 0 : index
    %143 = vector.load %arg10[%c0_70, %c0_71] : memref<384x64xbf16, #tpu.memory_space<vmem>>, vector<384x64xbf16>
    %cst_72 = arith.constant dense<0.000000e+00> : vector<32x64xf32>
    %144 = tpu.matmul %142, %143, %cst_72 {dimension_numbers = #tpu.dot_dimension_numbers<[1], [0], [0], [1], [0, 0, 1, 1], [], []>} : vector<32x384xbf16>, vector<384x64xbf16>, vector<32x64xf32> -> vector<32x64xf32>
    %c0_73 = arith.constant 0 : index
    %c0_74 = arith.constant 0 : index
    %145 = vector.load %arg11[%c0_73, %c0_74] : memref<1x64xf32, #tpu.memory_space<vmem>>, vector<1x64xf32>
    %146 = vector.broadcast %145 : vector<1x64xf32> to vector<32x64xf32>
    %147 = arith.addf %144, %146 : vector<32x64xf32>
    %cst_75 = arith.constant 0.000000e+00 : f32
    %148 = vector.broadcast %cst_75 : f32 to vector<32x64xf32>
    %149 = arith.cmpf ogt, %147, %148 : vector<32x64xf32>
    %cst_76 = arith.constant 0.000000e+00 : f32
    %150 = vector.broadcast %cst_76 : f32 to vector<32x64xf32>
    %151 = arith.minimumf %147, %150 : vector<32x64xf32>
    %152 = math.exp %151 : vector<32x64xf32>
    %cst_77 = arith.constant 1.000000e+00 : f32
    %153 = vector.broadcast %cst_77 : f32 to vector<32x64xf32>
    %154 = arith.subf %152, %153 : vector<32x64xf32>
    %155 = arith.select %149, %147, %154 : vector<32x64xi1>, vector<32x64xf32>
    %156 = vector.extract_strided_slice %155 {offsets = [0, 0], sizes = [32, 32], strides = [1, 1]} : vector<32x64xf32> to vector<32x32xf32>
    %157 = vector.extract_strided_slice %155 {offsets = [0, 32], sizes = [32, 32], strides = [1, 1]} : vector<32x64xf32> to vector<32x32xf32>
    %158 = arith.maximumf %156, %157 : vector<32x32xf32>
    %c0_78 = arith.constant 0 : index
    %c0_79 = arith.constant 0 : index
    %159 = vector.load %arg19[%c0_78, %c0_79] : memref<32x32xf32, #tpu.memory_space<vmem>>, vector<32x32xf32>
    tpu.vector_store %arg19[%c0_78, %c0_79], %158 {strides = array<i32>} : memref<32x32xf32, #tpu.memory_space<vmem>>, vector<32x32xf32>,
    %c0_80 = arith.constant 0 : index
    %c0_81 = arith.constant 0 : index
    %160 = tpu.strided_load %arg19[%c0_80, %c0_81] {strides = array<i32: 4, 1>} : memref<32x32xf32, #tpu.memory_space<vmem>>, vector<8x32xf32>
    %c1_82 = arith.constant 1 : index
    %c0_83 = arith.constant 0 : index
    %161 = tpu.strided_load %arg19[%c1_82, %c0_83] {strides = array<i32: 4, 1>} : memref<32x32xf32, #tpu.memory_space<vmem>>, vector<8x32xf32>
    %162 = arith.maximumf %160, %161 : vector<8x32xf32>
    %c2 = arith.constant 2 : index
    %c0_84 = arith.constant 0 : index
    %163 = tpu.strided_load %arg19[%c2, %c0_84] {strides = array<i32: 4, 1>} : memref<32x32xf32, #tpu.memory_space<vmem>>, vector<8x32xf32>
    %c3 = arith.constant 3 : index
    %c0_85 = arith.constant 0 : index
    %164 = tpu.strided_load %arg19[%c3, %c0_85] {strides = array<i32: 4, 1>} : memref<32x32xf32, #tpu.memory_space<vmem>>, vector<8x32xf32>
    %165 = arith.maximumf %163, %164 : vector<8x32xf32>
    %166 = tpu.concatenate %162, %165 in 1 : vector<8x32xf32>, vector<8x32xf32> -> vector<8x64xf32>
    %167 = arith.truncf %166 : vector<8x64xf32> to vector<8x64xbf16>
    %c0_86 = arith.constant 0 : index
    %c0_87 = arith.constant 0 : index
    %168 = vector.load %arg12[%c0_86, %c0_87] : memref<64x512xbf16, #tpu.memory_space<vmem>>, vector<64x512xbf16>
    %cst_88 = arith.constant dense<0.000000e+00> : vector<8x512xf32>
    %169 = tpu.matmul %167, %168, %cst_88 {dimension_numbers = #tpu.dot_dimension_numbers<[1], [0], [0], [1], [0, 0, 1, 1], [], []>} : vector<8x64xbf16>, vector<64x512xbf16>, vector<8x512xf32> -> vector<8x512xf32>
    %c0_89 = arith.constant 0 : index
    %c0_90 = arith.constant 0 : index
    %170 = vector.load %arg13[%c0_89, %c0_90] : memref<1x512xf32, #tpu.memory_space<vmem>>, vector<1x512xf32>
    %171 = vector.broadcast %170 : vector<1x512xf32> to vector<8x512xf32>
    %172 = arith.addf %169, %171 : vector<8x512xf32>
    %cst_91 = arith.constant 0.000000e+00 : f32
    %173 = vector.broadcast %cst_91 : f32 to vector<8x512xf32>
    %174 = arith.maximumf %172, %173 : vector<8x512xf32>
    %175 = arith.truncf %174 : vector<8x512xf32> to vector<8x512xbf16>
    %c0_92 = arith.constant 0 : index
    %c0_93 = arith.constant 0 : index
    %176 = vector.load %arg14[%c0_92, %c0_93] : memref<512x128xbf16, #tpu.memory_space<vmem>>, vector<512x128xbf16>
    %cst_94 = arith.constant dense<0.000000e+00> : vector<8x128xf32>
    %177 = tpu.matmul %175, %176, %cst_94 {dimension_numbers = #tpu.dot_dimension_numbers<[1], [0], [0], [1], [0, 0, 1, 1], [], []>} : vector<8x512xbf16>, vector<512x128xbf16>, vector<8x128xf32> -> vector<8x128xf32>
    %c0_95 = arith.constant 0 : index
    %c0_96 = arith.constant 0 : index
    %178 = vector.load %arg15[%c0_95, %c0_96] : memref<1x128xf32, #tpu.memory_space<vmem>>, vector<1x128xf32>
    %179 = vector.broadcast %178 : vector<1x128xf32> to vector<8x128xf32>
    %180 = arith.addf %177, %179 : vector<8x128xf32>
    %181 = tpu.iota {dimensions = array<i32: 1>} : vector<8x128xi32>
    %c6_i32 = arith.constant 6 : i32
    %182 = vector.broadcast %c6_i32 : i32 to vector<8x128xi32>
    %183 = arith.cmpi slt, %181, %182 : vector<8x128xi32>
    %cst_97 = arith.constant 0xFF800000 : f32
    %184 = vector.broadcast %cst_97 : f32 to vector<8x128xf32>
    %185 = arith.select %183, %180, %184 : vector<8x128xi1>, vector<8x128xf32>
    %cst_98 = arith.constant dense<0xFF800000> : vector<8xf32>
    %186 = vector.multi_reduction <maximumf>, %185, %cst_98 [1] : vector<8x128xf32> to vector<8xf32>
    %187 = vector.shape_cast %186 : vector<8xf32> to vector<8x1xf32>
    %188 = vector.broadcast %187 : vector<8x1xf32> to vector<8x128xf32>
    %189 = arith.subf %180, %188 : vector<8x128xf32>
    %190 = math.exp %189 : vector<8x128xf32>
    %cst_99 = arith.constant 0.000000e+00 : f32
    %191 = vector.broadcast %cst_99 : f32 to vector<8x128xf32>
    %192 = arith.select %183, %190, %191 : vector<8x128xi1>, vector<8x128xf32>
    %cst_100 = arith.constant dense<0.000000e+00> : vector<8xf32>
    %193 = vector.multi_reduction <add>, %192, %cst_100 [1] : vector<8x128xf32> to vector<8xf32>
    %194 = vector.shape_cast %193 : vector<8xf32> to vector<8x1xf32>
    %195 = tpu.reciprocal %194 {approx = true} : vector<8x1xf32> -> vector<8x1xf32>
    %196 = vector.broadcast %195 : vector<8x1xf32> to vector<8x128xf32>
    %197 = arith.mulf %192, %196 : vector<8x128xf32>
    %198 = vector.broadcast %187 : vector<8x1xf32> to vector<8x128xf32>
    %199 = arith.subf %180, %198 : vector<8x128xf32>
    %200 = math.log %194 : vector<8x1xf32>
    %201 = vector.broadcast %200 : vector<8x1xf32> to vector<8x128xf32>
    %202 = arith.subf %199, %201 : vector<8x128xf32>
    %203 = arith.mulf %197, %202 : vector<8x128xf32>
    %cst_101 = arith.constant dense<0.000000e+00> : vector<8xf32>
    %204 = vector.multi_reduction <add>, %203, %cst_101 [1] : vector<8x128xf32> to vector<8xf32>
    %205 = vector.shape_cast %204 : vector<8xf32> to vector<8x1xf32>
    %cst_102 = arith.constant 0.000000e+00 : f32
    %206 = vector.broadcast %cst_102 : f32 to vector<8x1xf32>
    %207 = arith.subf %206, %205 : vector<8x1xf32>
    %c7_i32_103 = arith.constant 7 : i32
    %208 = vector.broadcast %c7_i32_103 : i32 to vector<8x128xi32>
    %209 = arith.cmpi eq, %181, %208 : vector<8x128xi32>
    %210 = vector.shape_cast %207 : vector<8x1xf32> to vector<8x1xf32>
    %211 = vector.broadcast %210 : vector<8x1xf32> to vector<8x128xf32>
    %212 = arith.select %209, %211, %180 : vector<8x128xi1>, vector<8x128xf32>
    %c0_104 = arith.constant 0 : index
    %c0_105 = arith.constant 0 : index
    %213 = vector.load %arg16[%c0_104, %c0_105] : memref<8x128xf32, #tpu.memory_space<vmem>>, vector<8x128xf32>
    tpu.vector_store %arg16[%c0_104, %c0_105], %212 {strides = array<i32>} : memref<8x128xf32, #tpu.memory_space<vmem>>, vector<8x128xf32>,
    return
  }
  func.func @transform_0(%arg0: i32) -> (i32, i32) {
    %c0_i32 = arith.constant 0 : i32
    %c0_i32_0 = arith.constant 0 : i32
    return %arg0, %c0_i32 : i32, i32
  }
  func.func @transform_1(%arg0: i32) -> (i32, i32) {
    %c0_i32 = arith.constant 0 : i32
    %c0_i32_0 = arith.constant 0 : i32
    %c0_i32_1 = arith.constant 0 : i32
    return %c0_i32, %c0_i32_0 : i32, i32
  }
  func.func @transform_2(%arg0: i32) -> (i32, i32) {
    %c0_i32 = arith.constant 0 : i32
    %c0_i32_0 = arith.constant 0 : i32
    %c0_i32_1 = arith.constant 0 : i32
    return %c0_i32, %c0_i32_0 : i32, i32
  }
  func.func @transform_3(%arg0: i32) -> (i32, i32) {
    %c0_i32 = arith.constant 0 : i32
    %c0_i32_0 = arith.constant 0 : i32
    %c0_i32_1 = arith.constant 0 : i32
    return %c0_i32, %c0_i32_0 : i32, i32
  }
  func.func @transform_4(%arg0: i32) -> (i32, i32) {
    %c0_i32 = arith.constant 0 : i32
    %c0_i32_0 = arith.constant 0 : i32
    %c0_i32_1 = arith.constant 0 : i32
    return %c0_i32, %c0_i32_0 : i32, i32
  }
  func.func @transform_5(%arg0: i32) -> (i32, i32) {
    %c0_i32 = arith.constant 0 : i32
    %c0_i32_0 = arith.constant 0 : i32
    %c0_i32_1 = arith.constant 0 : i32
    return %c0_i32, %c0_i32_0 : i32, i32
  }
  func.func @transform_6(%arg0: i32) -> (i32, i32) {
    %c0_i32 = arith.constant 0 : i32
    %c0_i32_0 = arith.constant 0 : i32
    %c0_i32_1 = arith.constant 0 : i32
    return %c0_i32, %c0_i32_0 : i32, i32
  }
  func.func @transform_7(%arg0: i32) -> (i32, i32) {
    %c0_i32 = arith.constant 0 : i32
    %c0_i32_0 = arith.constant 0 : i32
    %c0_i32_1 = arith.constant 0 : i32
    return %c0_i32, %c0_i32_0 : i32, i32
  }
  func.func @transform_8(%arg0: i32) -> (i32, i32) {
    %c0_i32 = arith.constant 0 : i32
    %c0_i32_0 = arith.constant 0 : i32
    %c0_i32_1 = arith.constant 0 : i32
    return %c0_i32, %c0_i32_0 : i32, i32
  }
  func.func @transform_9(%arg0: i32) -> (i32, i32) {
    %c0_i32 = arith.constant 0 : i32
    %c0_i32_0 = arith.constant 0 : i32
    %c0_i32_1 = arith.constant 0 : i32
    return %c0_i32, %c0_i32_0 : i32, i32
  }
  func.func @transform_10(%arg0: i32) -> (i32, i32) {
    %c0_i32 = arith.constant 0 : i32
    %c0_i32_0 = arith.constant 0 : i32
    %c0_i32_1 = arith.constant 0 : i32
    return %c0_i32, %c0_i32_0 : i32, i32
  }
  func.func @transform_11(%arg0: i32) -> (i32, i32) {
    %c0_i32 = arith.constant 0 : i32
    %c0_i32_0 = arith.constant 0 : i32
    %c0_i32_1 = arith.constant 0 : i32
    return %c0_i32, %c0_i32_0 : i32, i32
  }
  func.func @transform_12(%arg0: i32) -> (i32, i32) {
    %c0_i32 = arith.constant 0 : i32
    %c0_i32_0 = arith.constant 0 : i32
    %c0_i32_1 = arith.constant 0 : i32
    return %c0_i32, %c0_i32_0 : i32, i32
  }
  func.func @transform_13(%arg0: i32) -> (i32, i32) {
    %c0_i32 = arith.constant 0 : i32
    %c0_i32_0 = arith.constant 0 : i32
    %c0_i32_1 = arith.constant 0 : i32
    return %c0_i32, %c0_i32_0 : i32, i32
  }
  func.func @transform_14(%arg0: i32) -> (i32, i32) {
    %c0_i32 = arith.constant 0 : i32
    %c0_i32_0 = arith.constant 0 : i32
    %c0_i32_1 = arith.constant 0 : i32
    return %c0_i32, %c0_i32_0 : i32, i32
  }
  func.func @transform_15(%arg0: i32) -> (i32, i32) {
    %c0_i32 = arith.constant 0 : i32
    %c0_i32_0 = arith.constant 0 : i32
    return %arg0, %c0_i32 : i32, i32
  }
}

</mosaic_0001>

<bundles_post_ra>
// kernel: atari_forward.1
= control target key start
LH: loop header
LB: loop body
LE: loop exit
PB: predicated region body
PF: predicated region fallthrough
CT: control target
= control target key end

     0   :  { %s4669_s18 = smov 0   ;;  %s6296_s0 = inlined_call_operand.vmem [shape: bf16[256,64], index: 0, kind: input, shape index: {}]   ;;  %s6297_s1 = inlined_call_operand.vmem [shape: bf16[192,256], index: 1, kind: input, shape index: {}]   ;;  %s6298_s2 = inlined_call_operand.vmem [shape: f32[1,256], index: 2, kind: input, shape index: {}]   ;;  %s6299_s3 = inlined_call_operand.vmem [shape: bf16[384,128], index: 3, kind: input, shape index: {}]   ;;  %s6300_s4 = inlined_call_operand.vmem [shape: f32[1,128], index: 4, kind: input, shape index: {}]   ;;  %s6301_s5 = inlined_call_operand.vmem [shape: bf16[384,128], index: 5, kind: input, shape index: {}]   ;;  %s6302_s6 = inlined_call_operand.vmem [shape: f32[1,128], index: 6, kind: input, shape index: {}]   ;;  %s6303_s7 = inlined_call_operand.vmem [shape: bf16[192,128], index: 7, kind: input, shape index: {}]   ;;  %s6304_s8 = inlined_call_operand.vmem [shape: f32[1,128], index: 8, kind: input, shape index: {}]   ;;  %s6305_s9 = inlined_call_operand.vmem [shape: bf16[384,64], index: 9, kind: input, shape index: {}]   ;;  %s6306_s10 = inlined_call_operand.vmem [shape: f32[1,64], index: 10, kind: input, shape index: {}]   ;;  %s6307_s11 = inlined_call_operand.vmem [shape: bf16[64,512], index: 11, kind: input, shape index: {}]   ;;  %s6308_s12 = inlined_call_operand.vmem [shape: f32[1,512], index: 12, kind: input, shape index: {}]   ;;  %s6309_s13 = inlined_call_operand.vmem [shape: bf16[512,128], index: 13, kind: input, shape index: {}]   ;;  %s6310_s14 = inlined_call_operand.vmem [shape: f32[1,128], index: 14, kind: input, shape index: {}]   ;;  %s6311_s15 = inlined_call_operand.vmem [shape: f32[16,128], index: 15, kind: output, shape index: {}]  }
   0x1 LB: > { %s4675_s19 = sadd.s32 4294967295, %s4583_s18   ;;  %p3577_p0 = scmp.ge.s32.totalorder %s4583_s18, 1  ;;  %s4583_s18 = sphi %s4669_s18, %s25_s18  }
   0x2   : > { %p438_p1 = scmp.lt.s32.totalorder %s4583_s18, 3 }
   0x4   : > { %p439_p2 = pnand %p3577_p0, %p438_p1 }
   0x5   : > { %s3578_s20 = sshll.u32 (!%p439_p2), %s4675_s19, 4  ;;  %v4283_v0 = vld [vmem:[%s6297_s1 + $0x4] ss:$8 sps:$4 sm:$0xff] (!%p439_p2)   ;;  %v528_v1 = vlaneseq (!%p439_p2)  ;;  %v4285_v2 = vld [vmem:[%s6297_s1] ss:$8 sps:$4 sm:$0xff] (!%p439_p2)   ;;  %s4585_s28 = smov (!%p439_p2), 64  }
   0x6   : > { %442 = sbr.rel (%p439_p2) target bundleno = 2915 (0xb63), region = 80  ;;  %p486_p3 = scmp.lt.s32.totalorder (!%p439_p2), %s3578_s20, 31  ;;  %968 = vmatprep.subr.bf16.mxu0 (!%p439_p2), %v4283_v0  ;;  %v4286_v3 = vld [vmem:[%s6297_s1 + $0x14] ss:$8 sps:$4 sm:$0xff] (!%p439_p2)   ;;  %v4288_v4 = vld [vmem:[%s6297_s1 + $0x10] ss:$8 sps:$4 sm:$0xff] (!%p439_p2)  }
   0x7   : > { %969 = vmatpush1.bf16.msra.mxu0 (!%p439_p2), %v4285_v2  ;;  %v4693_v5 = vshrl.u32 (!%p439_p2), %v528_v1, 7  ;;  %v4289_v6 = vld [vmem:[%s6297_s1 + $0x24] ss:$8 sps:$4 sm:$0xff] (!%p439_p2)   ;;  %v4291_v7 = vld [vmem:[%s6297_s1 + $0x20] ss:$8 sps:$4 sm:$0xff] (!%p439_p2)   ;;  %vm6312_vm4 = vcmask (!%p439_p2), 523264  }
   0x8   : > { %970 = vmatprep.subr.bf16.mxu0 (!%p439_p2), %v4286_v3  ;;  %v4292_v17 = vld [vmem:[%s6297_s1 + $0x34] ss:$8 sps:$4 sm:$0xff] (!%p439_p2)   ;;  %v4294_v27 = vld [vmem:[%s6297_s1 + $0x30] ss:$8 sps:$4 sm:$0xff] (!%p439_p2)   ;;  %v4295_v36 = vld [vmem:[%s6297_s1 + $0x44] ss:$8 sps:$4 sm:$0xff] (!%p439_p2)  }
   0x9   : > { %v4710_v11 = vadd.s32 (!%p439_p2), 8, %v4693_v5  ;;  %vm6318_vm0 = vcmp.lt.s32.totalorder (!%p439_p2), %v4693_v5, 1  ;;  %vm6320_vm1 = vcmp.lt.s32.totalorder (!%p439_p2), %v4693_v5, 7  ;;  %v4297_v46 = vld [vmem:[%s6297_s1 + $0x40] ss:$8 sps:$4 sm:$0xff] (!%p439_p2)   ;;  %v4778_v47 = vadd.s32 (!%p439_p2), 24, %v4693_v5 }
   0xa   : > { %v4298_v51 = vld [vmem:[%s6297_s1 + $0x54] ss:$8 sps:$4 sm:$0xff] (!%p439_p2)   ;;  %v4300_v54 = vld [vmem:[%s6297_s1 + $0x50] ss:$8 sps:$4 sm:$0xff] (!%p439_p2)   ;;  %v4301_v62 = vld [vmem:[%s6297_s1 + $0x64] ss:$8 sps:$4 sm:$0xff] (!%p439_p2)  }
   0xb   : > { %971 = vmatpush1.bf16.msra.mxu0 (!%p439_p2), %v4288_v4  ;;  %v546_v44 = vand.u32 (!%p439_p2), 15, %v4710_v11  ;;  %v548_v2 = vand.u32 (!%p439_p2), 15, %v4778_v47  ;;  %s4588_s24 = smov (!%p439_p2), 32   ;;  %p491_p4 = scmp.lt.s32.totalorder (!%p439_p2), %s4675_s19, 1 }
   0xc   : > { %972 = vmatprep.subr.bf16.mxu0 (!%p439_p2), %v4289_v6 }
   0xd   : > { %s6458_s20 = smov (!%p486_p3, %s3578_s20), 31  ;;  %vm4818_vm2 = vcmp.eq.s32.totalorder %v546_v44, 15  ;;  %vm629_vm3 = vcmp.eq.s32.totalorder %v548_v2, 15  ;;  %s6460_s19 = smov (!%p491_p4, %s4675_s19), 1 }
   0xe   : > { %s3579_s16 = sshll.u32 %s6458_s20, 2  ;;  %s3580_s29 = sshll.u32 %s6460_s19, 3 }
   0xf   : > { %s4701_s22 = scalar_lea.vmem %s6296_s0, %s3579_s16  ;;  %973 = vmatpush1.bf16.msra.mxu0 %v4291_v7  ;;  %s494_s16 = scalar_lea.vmem %s6311_s15, %s3580_s29 }
  0x10   : > { %v3913_v8 = vld [vmem:[%s4701_s22] sm:$0xff]   ;;  %v3944_v9 = vld [vmem:[%s4701_s22 + $0x8] sm:$0xff]   ;;  %v3945_v10 = vld [vmem:[%s4701_s22 + $0x10] sm:$0xff]   ;;  %974 = vmatprep.subr.bf16.mxu0 %v4292_v17 }
  0x11   : > { %v4712_v12 = vunpack.c.l.bf16 %v3913_v8  ;;  %v4714_v13 = vunpack.c.h.bf16 %v3913_v8  ;;  %v4716_v14 = vunpack.c.l.bf16 %v3944_v9  ;;  %v4718_v15 = vunpack.c.h.bf16 %v3944_v9  ;;  %v3946_v16 = vld [vmem:[%s4701_s22 + $0x18] sm:$0xff]   ;;  %v3947_v22 = vld [vmem:[%s4701_s22 + $0x20] sm:$0xff]   ;;  %v3948_v25 = vld [vmem:[%s4701_s22 + $0x28] sm:$0xff]  }
  0x12   : > { %v4724_v18 = vunpack.c.l.bf16 %v3945_v10  ;;  %v4726_v19 = vunpack.c.h.bf16 %v3945_v10  ;;  %v4728_v20 = vunpack.c.l.bf16 %v3946_v16  ;;  %v4730_v21 = vunpack.c.h.bf16 %v3946_v16  ;;  %v3949_v26 = vld [vmem:[%s4701_s22 + $0x30] sm:$0xff]   ;;  %v3950_v41 = vld [vmem:[%s4701_s22 + $0x38] sm:$0xff]   ;;  %v4303_v9 = vld [vmem:[%s6297_s1 + $0x60] ss:$8 sps:$4 sm:$0xff]  }
  0x13   : > { %v578_v23 = vrot.slane %v4714_v13, 7  ;;  %v4233_v24 = vpack.i.bf16 %v4714_v13, %v4712_v12  ;;  %v577_v28 = vrot.slane %v4712_v12, 7  ;;  %v4238_v29 = vpack.i.bf16 %v4718_v15, %v4716_v14  ;;  %975 = vmatpush1.bf16.msra.mxu0 %v4294_v27 }
  0x14   : > { %v582_v30 = vrot.slane %v4726_v19, 7  ;;  %v4243_v31 = vpack.i.bf16 %v4726_v19, %v4724_v18  ;;  %v647_v32 = vrot.slane %v4726_v19, 1  ;;  %v581_v33 = vrot.slane %v4724_v18, 7  ;;  %976 = vmatprep.subr.bf16.mxu0 %v4295_v36 }
  0x15   : > { %4234 = vrot.lane.b32.xlu0 %v4233_v24, %s4585_s28  ;;  %v4248_v34 = vpack.i.bf16 %v4730_v21, %v4728_v20  ;;  %v4753_v35 = vunpack.c.l.bf16 %v3947_v22  ;;  %v648_v37 = vrot.slane %v4728_v20, 1  ;;  %v4760_v38 = vunpack.c.h.bf16 %v3947_v22 }
  0x16   : > { %4244 = vrot.lane.b32.xlu1 %v4243_v31, %s4585_s28  ;;  %v4762_v39 = vunpack.c.l.bf16 %v3948_v25  ;;  %v4764_v40 = vunpack.c.h.bf16 %v3948_v25  ;;  %v4767_v42 = vunpack.c.l.bf16 %v3949_v26  ;;  %v4769_v43 = vunpack.c.h.bf16 %v3949_v26 }
  0x17   : > { %v646_v45 = vrot.slane %v4724_v18, 1  ;;  %v4253_v48 = vpack.i.bf16 %v4760_v38, %v4753_v35  ;;  %v4783_v49 = vunpack.c.l.bf16 %v3950_v41  ;;  %v4785_v50 = vunpack.c.h.bf16 %v3950_v41  ;;  %977 = vmatpush1.bf16.msra.mxu0 %v4297_v46  ;;  %v4307_v18 = vld [vmem:[%s6297_s1 + $0x84] ss:$8 sps:$4 sm:$0xff]  }
  0x18   : > { %v4794_v52 = vsel %vm6318_vm0, %v577_v28, %v578_v23  ;;  %v4258_v53 = vpack.i.bf16 %v4764_v40, %v4762_v39  ;;  %v668_v55 = vsel %vm6320_vm1, %v647_v32, %v648_v37  ;;  %v4814_v57 = vsel %vm6318_vm0, %v581_v33, %v582_v30  ;;  %978 = vmatprep.subr.bf16.mxu0 %v4298_v51 }
  0x19   : > { %4239 = vrot.lane.b32.xlu0 %v4238_v29, %s4585_s28  ;;  %v669_v56 = vsel %vm6320_vm1, %v646_v45, %v647_v32  ;;  %v4263_v58 = vpack.i.bf16 %v4769_v43, %v4767_v42  ;;  %v642_v60 = vrot.slane %v4712_v12, 1  ;;  %v643_v61 = vrot.slane %v4714_v13, 1 }
  0x1a   : > { %4249 = vrot.lane.b32.xlu1 %v4248_v34, %s4585_s28  ;;  %v644_v63 = vrot.slane %v4716_v14, 1  ;;  %v592_v0 = vrot.slane %v4785_v50, 7  ;;  %v645_v3 = vrot.slane %v4718_v15, 1  ;;  %v4268_v4 = vpack.i.bf16 %v4785_v50, %v4783_v49  ;;  %v4306_v34 = vld [vmem:[%s6297_s1 + $0x70] ss:$8 sps:$4 sm:$0xff]  }
  0x1b   : > { %v673_v6 = vsel %vm6320_vm1, %v642_v60, %v643_v61  ;;  %v579_v7 = vrot.slane %v4716_v14, 7  ;;  %v580_v8 = vrot.slane %v4718_v15, 7  ;;  %v4304_v15 = vld [vmem:[%s6297_s1 + $0x74] ss:$8 sps:$4 sm:$0xff]   ;;  %v650_v25 = vrot.slane %v4753_v35, 1  ;;  %979 = vmatpush1.bf16.msra.mxu0 %v4300_v54 }
  0x1c   : > { %v672_v10 = vsel %vm6320_vm1, %v643_v61, %v644_v63  ;;  %v4850_v16 = vsel %vm6318_vm0, %v592_v0, %v577_v28  ;;  %v670_v14 = vsel %vm6320_vm1, %v645_v3, %v646_v45  ;;  %v671_v22 = vsel %vm6320_vm1, %v644_v63, %v645_v3  ;;  %980 = vmatprep.subr.bf16.mxu0 %v4301_v62  ;;  %v4312_v62 = vld [vmem:[%s6297_s1 + $0x90] ss:$8 sps:$4 sm:$0xff]  }
  0x1d   : > { %4254 = vrot.lane.b32.xlu0 %v4253_v48, %s4585_s28  ;;  %v676_v17 = vsel %vm4818_vm2, 0.0, %v672_v10  ;;  %v678_v24 = vsel %vm629_vm3, 0.0, %v670_v14  ;;  %v4866_v28 = vsel %vm6318_vm0, %v579_v7, %v580_v8  ;;  %v4873_v29 = vsel %vm6318_vm0, %v578_v23, %v579_v7 }
  0x1e   : > { %4259 = vrot.lane.b32.xlu1 %v4258_v53, %s4585_s28  ;;  %v773_v26 = vpack.c.bf16 %v676_v17, %v673_v6  ;;  %v4862_v27 = vpack.c.bf16 %v678_v24, %v671_v22  ;;  %v4876_v31 = vadd.s32 40, %v4693_v5  ;;  %v4882_v32 = vsel %vm6318_vm0, %v580_v8, %v581_v33  ;;  %v4309_v53 = vld [vmem:[%s6297_s1 + $0x80] ss:$8 sps:$4 sm:$0xff]   ;;  %v4316_v17 = vld [vmem:[%s6297_s1 + $0xb4] ss:$8 sps:$4 sm:$0xff]  }
  0x1f   : > { %v4890_v13 = vadd.s32 56, %v4693_v5  ;;  %v649_v23 = vrot.slane %v4730_v21, 1  ;;  %v583_v36 = vrot.slane %v4728_v20, 7  ;;  %981 = vmatpush1.bf16.msra.mxu0 %v4303_v9  ;;  %v652_v46 = vrot.slane %v4762_v39, 1  ;;  %v4315_v9 = vld [vmem:[%s6297_s1 + $0xa0] ss:$8 sps:$4 sm:$0xff]  }
  0x20   : > { %3605 = vmatprep.mubr.msk.bf16.mxu0 %vm6312_vm4, %v773_v26  ;;  %v550_v33 = vand.u32 15, %v4876_v31  ;;  %982 = vmatprep.subr.bf16.mxu0 %v4304_v15  ;;  %v584_v48 = vrot.slane %v4730_v21, 7  ;;  %v651_v59 = vrot.slane %v4760_v38, 1  ;;  %v586_v61 = vrot.slane %v4760_v38, 7  ;;  %v4313_v38 = vld [vmem:[%s6297_s1 + $0xa4] ss:$8 sps:$4 sm:$0xff]  }
  0x21   : > { %4264 = vrot.lane.b32.xlu0 %v4263_v58, %s4585_s28  ;;  %v552_v41 = vand.u32 15, %v4890_v13  ;;  %v666_v44 = vsel %vm6320_vm1, %v649_v23, %v650_v25  ;;  %v667_v45 = vsel %vm6320_vm1, %v648_v37, %v649_v23  ;;  %v4911_v51 = vsel %vm6318_vm0, %v582_v30, %v583_v36  ;;  %v4310_v37 = vld [vmem:[%s6297_s1 + $0x94] ss:$8 sps:$4 sm:$0xff]  }
  0x22   : > { %4269 = vrot.lane.b32.xlu1 %v4268_v4, %s4585_s28  ;;  %vm631_vm5 = vcmp.eq.s32.totalorder %v550_v33, 15  ;;  %v4923_v19 = vsel %vm6318_vm0, %v583_v36, %v584_v48  ;;  %v538_v30 = vadd.s32 72, %v4693_v5  ;;  %v664_v2 = vsel %vm6320_vm1, %v651_v59, %v652_v46 }
  0x23   : > { %v680_v20 = vsel %vm631_vm5, 0.0, %v668_v55  ;;  %vm633_vm6 = vcmp.eq.s32.totalorder %v552_v41, 15  ;;  %983 = vmatpush1.bf16.msra.mxu0 %v4306_v34  ;;  %v585_v55 = vrot.slane %v4753_v35, 7  ;;  %v665_v3 = vsel %vm6320_vm1, %v650_v25, %v651_v59 }
  0x24   : > { %v4919_v54 = vpack.c.bf16 %v680_v20, %v669_v56  ;;  %v682_v58 = vsel %vm633_vm6, 0.0, %v666_v44  ;;  %984 = vmatprep.subr.bf16.mxu0 %v4307_v18  ;;  %v654_v56 = vrot.slane %v4767_v42, 1  ;;  %v554_v63 = vand.u32 15, %v538_v30  ;;  %v4318_v18 = vld [vmem:[%s6297_s1 + $0xb0] ss:$8 sps:$4 sm:$0xff]  }
  0x25   : > { %v4925_v21 = vpack.c.bf16 %v682_v58, %v667_v45  ;;  %v4941_v4 = vsel %vm6318_vm0, %v585_v55, %v586_v61  ;;  %v4945_v35 = vsel %vm6318_vm0, %v584_v48, %v585_v55  ;;  %v540_v6 = vadd.s32 88, %v4693_v5 }
  0x26   : > { %vm635_vm7 = vcmp.eq.s32.totalorder %v554_v63, 15  ;;  %v653_v8 = vrot.slane %v4764_v40, 1  ;;  %v587_v15 = vrot.slane %v4762_v39, 7  ;;  %v588_v25 = vrot.slane %v4764_v40, 7 }
  0x27   : > { %985 = vmatpush1.bf16.msra.mxu0 %v4309_v53  ;;  %v684_v7 = vsel %vm635_vm7, 0.0, %v664_v2  ;;  %v556_v14 = vand.u32 15, %v540_v6  ;;  %v656_v39 = vrot.slane %v4783_v49, 1  ;;  %v542_v40 = vadd.s32 104, %v4693_v5 }
  0x28   : > { %986 = vmatprep.subr.bf16.mxu0 %v4310_v37  ;;  %v4955_v10 = vpack.c.bf16 %v684_v7, %v665_v3  ;;  %v662_v22 = vsel %vm6320_vm1, %v653_v8, %v654_v56  ;;  %v663_v24 = vsel %vm6320_vm1, %v652_v46, %v653_v8  ;;  %v4968_v26 = vsel %vm6318_vm0, %v586_v61, %v587_v15 }
  0x29   : > { %vm637_vm8 = vcmp.eq.s32.totalorder %v556_v14, 15  ;;  %v4973_v23 = vsel %vm6318_vm0, %v587_v15, %v588_v25  ;;  %v655_v36 = vrot.slane %v4769_v43, 1  ;;  %v558_v41 = vand.u32 15, %v542_v40 }
  0x2a   : > { %v686_v34 = vsel %vm637_vm8, 0.0, %v662_v22  ;;  %v589_v44 = vrot.slane %v4767_v42, 7  ;;  %v590_v45 = vrot.slane %v4769_v43, 7  ;;  %v544_v43 = vadd.s32 120, %v4693_v5 }
  0x2b   : > { %987 = vmatpush1.bf16.msra.mxu0 %v4312_v62  ;;  %v4978_v33 = vpack.c.bf16 %v686_v34, %v663_v24  ;;  %v660_v46 = vsel %vm6320_vm1, %v655_v36, %v656_v39  ;;  %v661_v48 = vsel %vm6320_vm1, %v654_v56, %v655_v36  ;;  %vm639_vm9 = vcmp.eq.s32.totalorder %v558_v41, 15 }
  0x2c   : > { %988 = vmatprep.subr.bf16.mxu0 %v4313_v38  ;;  %v4990_v53 = vsel %vm6318_vm0, %v589_v44, %v590_v45  ;;  %v4994_v20 = vsel %vm6318_vm0, %v588_v25, %v589_v44  ;;  %v688_v37 = vsel %vm639_vm9, 0.0, %v660_v46  ;;  %v657_v58 = vrot.slane %v4785_v50, 1 }
  0x2d   : > { %v4996_v42 = vpack.c.bf16 %v688_v37, %v661_v48  ;;  %v560_v30 = vand.u32 15, %v544_v43  ;;  %v591_v59 = vrot.slane %v4783_v49, 7  ;;  %v5020_v2 = vadd.s32 32, %v4693_v5 }
  0x2e   : > { %v659_v55 = vsel %vm6320_vm1, %v656_v39, %v657_v58  ;;  %v674_v61 = vsel %vm6320_vm1, %v657_v58, %v642_v60  ;;  %v5023_v12 = vadd.s32 16, %v4693_v5  ;;  %v5026_v60 = vadd.s32 48, %v4693_v5 }
  0x2f   : > { %989 = vmatpush1.bf16.msra.mxu0 %v4315_v9  ;;  %vm641_vm10 = vcmp.eq.s32.totalorder %v560_v30, 15  ;;  %v5011_v56 = vsel %vm6318_vm0, %v591_v59, %v592_v0  ;;  %v5015_v62 = vsel %vm6318_vm0, %v590_v45, %v591_v59  ;;  %v545_v50 = vand.u32 15, %v4693_v5  ;;  %v4329_v59 = vld [vmem:[%s6299_s3 + $0x68] sm:$0xff]  }
  0x30   : > { %990 = vmatprep.subr.bf16.mxu0 %v4316_v17  ;;  %v690_v49 = vsel %vm641_vm10, 0.0, %v674_v61  ;;  %v549_v0 = vand.u32 15, %v5020_v2  ;;  %v547_v3 = vand.u32 15, %v5023_v12  ;;  %v537_v38 = vadd.s32 64, %v4693_v5 }
  0x31   : > { %v5017_v63 = vpack.c.bf16 %v690_v49, %v659_v55  ;;  %v551_v6 = vand.u32 15, %v5026_v60  ;;  %v539_v7 = vadd.s32 80, %v4693_v5  ;;  %vm5034_vm11 = vcmp.eq.s32.totalorder %v545_v50, 0 }
  0x32   : > { %vm5038_vm12 = vcmp.eq.s32.totalorder %v549_v0, 0  ;;  %vm5042_vm13 = vcmp.eq.s32.totalorder %v547_v3, 0  ;;  %v553_v15 = vand.u32 15, %v537_v38  ;;  %v610_v22 = vsel %vm5034_vm11, 0.0, %v4850_v16 }
  0x33   : > { %991 = vmatpush1.bf16.msra.mxu0 %v4318_v18  ;;  %vm5049_vm14 = vcmp.eq.s32.totalorder %v551_v6, 0  ;;  %v555_v25 = vand.u32 15, %v539_v7  ;;  %v614_v40 = vsel %vm5038_vm12, 0.0, %v4882_v32  ;;  %v541_v36 = vadd.s32 96, %v4693_v5 }
  0x34   : > { %v612_v41 = vsel %vm5042_vm13, 0.0, %v4873_v29  ;;  %v543_v45 = vadd.s32 112, %v4693_v5  ;;  %v616_v37 = vsel %vm5049_vm14, 0.0, %v4911_v51  ;;  %vm5067_vm15 = vcmp.eq.s32.totalorder %v553_v15, 0 }
  0x35   : > { %vm5074_vm2 = vcmp.eq.s32.totalorder %v555_v25, 0  ;;  %v557_v51 = vand.u32 15, %v541_v36  ;;  %v618_v6 = vsel %vm5067_vm15, 0.0, %v4945_v35 }
  0x36   : > { %v559_v3 = vand.u32 15, %v543_v45 }
  0x37   : > { %vm5092_vm3 = vcmp.eq.s32.totalorder %v557_v51, 0  ;;  %v4334_v51 = vld [vmem:[%s6299_s3 + $0x38] sm:$0xff]  }
  0x38   : > { %vm5096_vm5 = vcmp.eq.s32.totalorder %v559_v3, 0  ;;  %v812_v3 = vld [vmem:[%s6298_s2] sm:$0x3] }
  0x87   : > { %v4235_v17 = vpop.permute.xlu0 %4234 }
  0x88   : > { %v4237_v39 = vunpack.i.h.bf16 %v4235_v17  ;;  %v4236_v34 = vunpack.i.l.bf16 %v4235_v17  ;;  %v4245_v18 = vpop.permute.xlu1 %4244 }
  0x89   : > { %v4247_v44 = vunpack.i.h.bf16 %v4245_v18  ;;  %v4246_v16 = vunpack.i.l.bf16 %v4245_v18 }
  0x8a   : > { %v756_v46 = vsel %vm6312_vm4, %v610_v22, %v4236_v34  ;;  %v757_v48 = vsel %vm6312_vm4, %v4794_v52, %v4237_v39 }
  0x8b   : > { %v772_v43 = vpack.c.bf16 %v757_v48, %v756_v46  ;;  %v4240_v58 = vpop.permute.xlu0 %4239  ;;  %v760_v29 = vsel %vm6312_vm4, %v614_v40, %v4246_v16  ;;  %v761_v30 = vsel %vm6312_vm4, %v4814_v57, %v4247_v44  ;;  %v624_v48 = vsel %vm5096_vm5, 0.0, %v5015_v62  ;;  %v4326_v62 = vld [vmem:[%s6299_s3 + $0x18] sm:$0xff]  }
  0x8c   : > { %v4242_v52 = vunpack.i.h.bf16 %v4240_v58  ;;  %v4241_v55 = vunpack.i.l.bf16 %v4240_v58  ;;  %v776_v61 = vpack.c.bf16 %v761_v30, %v760_v29  ;;  %v4250_v49 = vpop.permute.xlu1 %4249  ;;  %v4328_v30 = vld [vmem:[%s6299_s3 + $0x20] sm:$0xff]  }
  0x8d   : > { %1001 = vmatmul.mubr.bf16.vlgmr.msra.gmra.mrb[0].mxu0 %v772_v43  ;;  %v4252_v50 = vunpack.i.h.bf16 %v4250_v49  ;;  %v4251_v0 = vunpack.i.l.bf16 %v4250_v49  ;;  %v4333_v49 = vld [vmem:[%s6299_s3 + $0x78] sm:$0xff]  }
  0x8e   : > { %3606 = vmatprep.mubr.msk.bf16.mxu0 %vm6312_vm4, %v4862_v27  ;;  %v758_v38 = vsel %vm6312_vm4, %v612_v41, %v4241_v55  ;;  %v759_v57 = vsel %vm6312_vm4, %v4866_v28, %v4242_v52  ;;  %v620_v27 = vsel %vm5074_vm2, 0.0, %v4968_v26  ;;  %v622_v41 = vsel %vm5092_vm3, 0.0, %v4994_v20  ;;  %v4330_v52 = vld [vmem:[%s6299_s3 + $0x28] sm:$0xff]   ;;  %v4331_v55 = vld [vmem:[%s6299_s3 + $0x70] sm:$0xff]  }
  0x8f   : > { %v774_v7 = vpack.c.bf16 %v759_v57, %v758_v38  ;;  %v762_v8 = vsel %vm6312_vm4, %v616_v37, %v4251_v0  ;;  %v763_v9 = vsel %vm6312_vm4, %v4923_v19, %v4252_v50  ;;  %v4255_v14 = vpop.permute.xlu0 %4254  ;;  %v5181_v50 = vld [vmem:[%s6299_s3 + $0x80] sm:$0xff]   ;;  %v816_v0 = vsub.s32 0, %v4693_v5 }
  0x90   : > { %v778_v15 = vpack.c.bf16 %v763_v9, %v762_v8  ;;  %v4257_v17 = vunpack.i.h.bf16 %v4255_v14  ;;  %v4256_v22 = vunpack.i.l.bf16 %v4255_v14  ;;  %v4260_v24 = vpop.permute.xlu1 %4259  ;;  %v820_v38 = vsub.s32 1, %v4693_v5 }
  0x91   : > { %v4262_v35 = vunpack.i.h.bf16 %v4260_v24  ;;  %v4261_v25 = vunpack.i.l.bf16 %v4260_v24  ;;  %v5191_v57 = vrot.slane %v812_v3, %v816_v0 }
  0x92   : > { %v764_v19 = vsel %vm6312_vm4, %v618_v6, %v4256_v22  ;;  %v765_v34 = vsel %vm6312_vm4, %v4941_v4, %v4257_v17  ;;  %v5195_v6 = vrot.slane %v812_v3, %v820_v38 }
  0x93   : > { %v780_v26 = vpack.c.bf16 %v765_v34, %v764_v19  ;;  %v766_v18 = vsel %vm6312_vm4, %v620_v27, %v4261_v25  ;;  %v767_v40 = vsel %vm6312_vm4, %v4973_v23, %v4262_v35  ;;  %v4265_v36 = vpop.permute.xlu0 %4264 }
  0x94   : > { %v782_v44 = vpack.c.bf16 %v767_v40, %v766_v18  ;;  %v4267_v16 = vunpack.i.h.bf16 %v4265_v36  ;;  %v4266_v45 = vunpack.i.l.bf16 %v4265_v36  ;;  %v4270_v46 = vpop.permute.xlu1 %4269 }
  0x95   : > { %1011 = vmatmul.mubr.bf16.gmra.mrb[4].mxu0 %v774_v7  ;;  %v4272_v4 = vunpack.i.h.bf16 %v4270_v46  ;;  %v4271_v37 = vunpack.i.l.bf16 %v4270_v46 }
  0x96   : > { %3607 = vmatprep.mubr.msk.bf16.mxu0 %vm6312_vm4, %v4919_v54  ;;  %v768_v23 = vsel %vm6312_vm4, %v622_v41, %v4266_v45  ;;  %v769_v32 = vsel %vm6312_vm4, %v4990_v53, %v4267_v16  ;;  %v4319_v54 = vld [vmem:[%s6299_s3 + $0x40] sm:$0xff]   ;;  %v4323_v53 = vld [vmem:[%s6299_s3 + $0x50] sm:$0xff]  }
  0x97   : > { %v784_v20 = vpack.c.bf16 %v769_v32, %v768_v23  ;;  %v770_v43 = vsel %vm6312_vm4, %v624_v48, %v4271_v37  ;;  %v771_v58 = vsel %vm6312_vm4, %v5011_v56, %v4272_v4  ;;  %3967 = vmatprep.subr.bf16.mxu1 %v4319_v54  ;;  %v4325_v56 = vld [vmem:[%s6299_s3 + $0x58] sm:$0xff]  }
  0x98   : > { %v786_v29 = vpack.c.bf16 %v771_v58, %v770_v43 }
  0x9d   : > { %1021 = vmatmul.mubr.bf16.gmra.mrb[8].mxu0 %v776_v61  ;;  %v4332_v61 = vld [vmem:[%s6299_s3 + $0x30] sm:$0xff]  }
  0x9e   : > { %3608 = vmatprep.mubr.msk.bf16.mxu0 %vm6312_vm4, %v4925_v21  ;;  %v4320_v21 = vld [vmem:[%s6299_s3] sm:$0xff]  }
  0x9f   : > { %3968 = vmatpush3.bf16.msra.mxu1 %v4320_v21 }
  0xa5   : > { %1031 = vmatmul.mubr.bf16.gmra.mrb[12].mxu0 %v778_v15 }
  0xa6   : > { %3609 = vmatprep.mubr.msk.bf16.mxu0 %vm6312_vm4, %v4955_v10  ;;  %v4321_v10 = vld [vmem:[%s6299_s3 + $0x48] sm:$0xff]  }
  0xa7   : > { %3969 = vmatprep.subr.bf16.mxu1 %v4321_v10 }
  0xad   : > { %1041 = vmatmul.mubr.bf16.gmra.mrb[16].mxu0 %v780_v26 }
  0xae   : > { %3610 = vmatprep.mubr.msk.bf16.mxu0 %vm6312_vm4, %v4978_v33  ;;  %v4322_v33 = vld [vmem:[%s6299_s3 + $0x8] sm:$0xff]  }
  0xaf   : > { %3970 = vmatpush3.bf16.msra.mxu1 %v4322_v33 }
  0xb0   : > { %3971 = vmatprep.subr.bf16.mxu1 %v4323_v53 }
  0xb5   : > { %1051 = vmatmul.mubr.bf16.gmra.mrb[20].mxu0 %v782_v44 }
  0xb6   : > { %3611 = vmatprep.mubr.msk.bf16.mxu0 %vm6312_vm4, %v4996_v42  ;;  %v4324_v42 = vld [vmem:[%s6299_s3 + $0x10] sm:$0xff]  }
  0xb7   : > { %3972 = vmatpush3.bf16.msra.mxu1 %v4324_v42 }
  0xb8   : > { %3973 = vmatprep.subr.bf16.mxu1 %v4325_v56 }
  0xbb   : > { %3974 = vmatpush3.bf16.msra.mxu1 %v4326_v62 }
  0xbd   : > { %1061 = vmatmul.mubr.bf16.gmra.mrb[24].mxu0 %v784_v20 }
  0xbe   : > { %3612 = vmatprep.mubr.msk.bf16.mxu0 %vm6312_vm4, %v5017_v63  ;;  %v4327_v63 = vld [vmem:[%s6299_s3 + $0x60] sm:$0xff]  }
  0xbf   : > { %3975 = vmatprep.subr.bf16.mxu1 %v4327_v63 }
  0xc0   : > { %3976 = vmatpush3.bf16.msra.mxu1 %v4328_v30 }
  0xc1   : > { %3977 = vmatprep.subr.bf16.mxu1 %v4329_v59 }
  0xc4   : > { %3978 = vmatpush3.bf16.msra.mxu1 %v4330_v52 }
  0xc5   : > { %1071 = vmatmul.mubr.bf16.gmra.mrb[28].mxu0 %v786_v29  ;;  %3979 = vmatprep.subr.bf16.mxu1 %v4331_v55 }
  0xc8   : > { %3980 = vmatpush3.bf16.msra.mxu1 %v4332_v61 }
  0xc9   : > { %3981 = vmatprep.subr.bf16.mxu1 %v4333_v49 }
  0xcc   : > { %3982 = vmatpush3.bf16.msra.mxu1 %v4334_v51 }
  0xcd   : > { %4153 = vmatprep.subr.bf16.mxu1 %v5181_v50 }
 0x160   : > { %v1002_v7 = vpop.f32.mrb[0].mxu0 }
 0x161   : > { %v1003_v8 = vadd.f32 %v1002_v7, %v5191_v57  ;;  %v1004_v9 = vpop.f32.mrb[1].mxu0 }
 0x162   : > { %v1005_v14 = vadd.f32 %v1004_v9, %v5195_v6  ;;  %v1006_v27 = vpop.f32.mrb[2].mxu0 }
 0x163   : > { %v1113_v15 = vmin.f32 %v1003_v8, 0.0  ;;  %v1007_v17 = vadd.f32 %v1006_v27, %v5191_v57  ;;  %v1008_v22 = vpop.f32.mrb[3].mxu0  ;;  %vm1081_vm6 = vcmp.gt.f32.partialorder %v1003_v8, 0.0 }
 0x164   : > { %v1114_v24 = vmin.f32 %v1005_v14, 0.0  ;;  %v1009_v28 = vadd.f32 %v1008_v22, %v5195_v6  ;;  %vm1082_vm7 = vcmp.gt.f32.partialorder %v1005_v14, 0.0 }
 0x165   : > { %v1145_v35 = vmul.f32 1.442695, %v1113_v15  ;;  %v1115_v25 = vmin.f32 %v1007_v17, 0.0  ;;  %vm1083_vm8 = vcmp.gt.f32.partialorder %v1007_v17, 0.0 }
 0x166   : > { %v1147_v39 = vmul.f32 1.442695, %v1114_v24  ;;  %v1116_v19 = vmin.f32 %v1009_v28, 0.0  ;;  %vm1084_vm9 = vcmp.gt.f32.partialorder %v1009_v28, 0.0 }
 0x167   : > { %4459 = vpow2.f32 %v1145_v35  ;;  %v1149_v34 = vmul.f32 1.442695, %v1115_v25 }
 0x168   : > { %4461 = vpow2.f32 %v1147_v39  ;;  %v1151_v26 = vmul.f32 1.442695, %v1116_v19  ;;  %v1012_v18 = vpop.f32.mrb[4].mxu0 }
 0x169   : > { %4463 = vpow2.f32 %v1149_v34  ;;  %v5202_v40 = vadd.f32 %v1012_v18, %v5191_v57  ;;  %v1014_v36 = vpop.f32.mrb[5].mxu0 }
 0x16a   : > { %4465 = vpow2.f32 %v1151_v26  ;;  %v5205_v41 = vadd.f32 %v1014_v36, %v5195_v6  ;;  %v1016_v44 = vpop.f32.mrb[6].mxu0 }
 0x16b   : > { %v1117_v16 = vmin.f32 %v5202_v40, 0.0  ;;  %v5209_v45 = vadd.f32 %v1016_v44, %v5191_v57  ;;  %v1018_v46 = vpop.f32.mrb[7].mxu0  ;;  %vm1085_vm10 = vcmp.gt.f32.partialorder %v5202_v40, 0.0 }
 0x16c   : > { %v1118_v48 = vmin.f32 %v5205_v41, 0.0  ;;  %v5213_v4 = vadd.f32 %v1018_v46, %v5195_v6  ;;  %vm1086_vm11 = vcmp.gt.f32.partialorder %v5205_v41, 0.0 }
 0x16d   : > { %v1153_v37 = vmul.f32 1.442695, %v1117_v16  ;;  %v1119_v23 = vmin.f32 %v5209_v45, 0.0  ;;  %vm1087_vm12 = vcmp.gt.f32.partialorder %v5209_v45, 0.0 }
 0x16e   : > { %v1155_v32 = vmul.f32 1.442695, %v1118_v48  ;;  %v1120_v20 = vmin.f32 %v5213_v4, 0.0  ;;  %vm1088_vm13 = vcmp.gt.f32.partialorder %v5213_v4, 0.0 }
 0x16f   : > { %4467 = vpow2.f32 %v1153_v37  ;;  %v1157_v43 = vmul.f32 1.442695, %v1119_v23 }
 0x170   : > { %4469 = vpow2.f32 %v1155_v32  ;;  %v1159_v58 = vmul.f32 1.442695, %v1120_v20  ;;  %v1022_v29 = vpop.f32.mrb[8].mxu0 }
 0x171   : > { %v4460_v54 = vpop.eup %4459  ;;  %4471 = vpow2.f32 %v1157_v43  ;;  %v5218_v21 = vadd.f32 %v1022_v29, %v5191_v57  ;;  %v1024_v10 = vpop.f32.mrb[9].mxu0 }
 0x172   : > { %v4462_v33 = vpop.eup %4461  ;;  %v3613_v53 = vadd.f32 -1.0, %v4460_v54  ;;  %4473 = vpow2.f32 %v1159_v58  ;;  %v5221_v42 = vadd.f32 %v1024_v10, %v5195_v6  ;;  %v1026_v56 = vpop.f32.mrb[10].mxu0 }
 0x173   : > { %v4464_v62 = vpop.eup %4463  ;;  %v3614_v63 = vadd.f32 -1.0, %v4462_v33  ;;  %v1121_v30 = vmin.f32 %v5218_v21, 0.0  ;;  %v5225_v59 = vadd.f32 %v1026_v56, %v5191_v57  ;;  %v1028_v52 = vpop.f32.mrb[11].mxu0  ;;  %vm1089_vm14 = vcmp.gt.f32.partialorder %v5218_v21, 0.0 }
 0x174   : > { %v4466_v55 = vpop.eup %4465  ;;  %v1241_v61 = vsel %vm1081_vm6, %v1003_v8, %v3613_v53  ;;  %v3615_v49 = vadd.f32 -1.0, %v4464_v62  ;;  %v1122_v51 = vmin.f32 %v5221_v42, 0.0  ;;  %v5230_v25 = vadd.f32 %v1028_v52, %v5195_v6 }
 0x175   : > { %v1242_v3 = vsel %vm1082_vm7, %v1005_v14, %v3614_v63  ;;  %v3616_v7 = vadd.f32 -1.0, %v4466_v55  ;;  %v1161_v9 = vmul.f32 1.442695, %v1121_v30  ;;  %v1123_v24 = vmin.f32 %v5225_v59, 0.0 }
 0x176   : > { %v1273_v27 = vmax.f32 %v1241_v61, %v1242_v3  ;;  %v1243_v15 = vsel %vm1083_vm8, %v1007_v17, %v3615_v49  ;;  %v1163_v22 = vmul.f32 1.442695, %v1122_v51  ;;  %v1124_v14 = vmin.f32 %v5230_v25, 0.0 }
 0x177   : > { %v1244_v35 = vsel %vm1084_vm9, %v1009_v28, %v3616_v7  ;;  %4475 = vpow2.f32 %v1161_v9  ;;  %v1165_v39 = vmul.f32 1.442695, %v1123_v24  ;;  %vm1090_vm15 = vcmp.gt.f32.partialorder %v5221_v42, 0.0 }
 0x178   : > { %1289 = vst [vmem:[#allocation2] sm:$0xff] %v1273_v27  ;;  %v1274_v8 = vmax.f32 %v1243_v15, %v1244_v35  ;;  %4477 = vpow2.f32 %v1163_v22  ;;  %v1032_v19 = vpop.f32.mrb[12].mxu0  ;;  %v1167_v48 = vmul.f32 1.442695, %v1124_v14  ;;  %vm1091_vm2 = vcmp.gt.f32.partialorder %v5225_v59, 0.0 }
 0x179   : > { %v4468_v34 = vpop.eup %4467  ;;  %v5235_v17 = vadd.f32 %v1032_v19, %v5191_v57  ;;  %v1034_v26 = vpop.f32.mrb[13].mxu0  ;;  %4479 = vpow2.f32 %v1165_v39  ;;  %vm1092_vm3 = vcmp.gt.f32.partialorder %v5230_v25, 0.0 }
 0x17a   : > { %v4470_v18 = vpop.eup %4469  ;;  %1290 = vst [vmem:[#allocation2 + $0x8] sm:$0xff] %v1274_v8  ;;  %v3617_v28 = vadd.f32 -1.0, %v4468_v34  ;;  %v5239_v36 = vadd.f32 %v1034_v26, %v5195_v6  ;;  %v1036_v44 = vpop.f32.mrb[14].mxu0  ;;  %4481 = vpow2.f32 %v1167_v48 }
 0x17b   : > { %v4472_v16 = vpop.eup %4471  ;;  %v3618_v46 = vadd.f32 -1.0, %v4470_v18  ;;  %v1125_v37 = vmin.f32 %v5235_v17, 0.0  ;;  %v1038_v23 = vpop.f32.mrb[15].mxu0  ;;  %v5251_v62 = vadd.f32 %v1036_v44, %v5191_v57  ;;  %vm1093_vm5 = vcmp.gt.f32.partialorder %v5235_v17, 0.0 }
 0x17c   : > { %v4474_v32 = vpop.eup %4473  ;;  %v1245_v20 = vsel %vm1085_vm10, %v5202_v40, %v3617_v28  ;;  %v3619_v43 = vadd.f32 -1.0, %v4472_v16  ;;  %v1126_v58 = vmin.f32 %v5239_v36, 0.0  ;;  %v5255_v40 = vadd.f32 %v1038_v23, %v5195_v6 }
 0x17d   : > { %v1246_v29 = vsel %vm1086_vm11, %v5205_v41, %v3618_v46  ;;  %v3620_v54 = vadd.f32 -1.0, %v4474_v32  ;;  %v1169_v10 = vmul.f32 1.442695, %v1125_v37  ;;  %v1127_v41 = vmin.f32 %v5251_v62, 0.0 }
 0x17e   : > { %v1275_v33 = vmax.f32 %v1245_v20, %v1246_v29  ;;  %v1247_v53 = vsel %vm1087_vm12, %v5209_v45, %v3619_v43  ;;  %v1171_v56 = vmul.f32 1.442695, %v1126_v58  ;;  %v1128_v61 = vmin.f32 %v5255_v40, 0.0 }
 0x17f   : > { %v1248_v63 = vsel %vm1088_vm13, %v5213_v4, %v3620_v54  ;;  %4483 = vpow2.f32 %v1169_v10  ;;  %v1173_v3 = vmul.f32 1.442695, %v1127_v41  ;;  %vm1094_vm6 = vcmp.gt.f32.partialorder %v5239_v36, 0.0 }
 0x180   : > { %1291 = vst [vmem:[#allocation2 + $0x10] sm:$0xff] %v1275_v33  ;;  %v1276_v30 = vmax.f32 %v1247_v53, %v1248_v63  ;;  %4485 = vpow2.f32 %v1171_v56  ;;  %v1042_v52 = vpop.f32.mrb[16].mxu0  ;;  %v1175_v15 = vmul.f32 1.442695, %v1128_v61  ;;  %vm1095_vm7 = vcmp.gt.f32.partialorder %v5251_v62, 0.0 }
 0x181   : > { %v4476_v55 = vpop.eup %4475  ;;  %v5260_v45 = vadd.f32 %v1042_v52, %v5191_v57  ;;  %v1044_v49 = vpop.f32.mrb[17].mxu0  ;;  %4487 = vpow2.f32 %v1173_v3  ;;  %vm1096_vm8 = vcmp.gt.f32.partialorder %v5255_v40, 0.0 }
 0x182   : > { %v4478_v51 = vpop.eup %4477  ;;  %1292 = vst [vmem:[#allocation2 + $0x18] sm:$0xff] %v1276_v30  ;;  %v3621_v4 = vadd.f32 -1.0, %v4476_v55  ;;  %v5263_v7 = vadd.f32 %v1044_v49, %v5195_v6  ;;  %v1046_v9 = vpop.f32.mrb[18].mxu0  ;;  %4489 = vpow2.f32 %v1175_v15 }
 0x183   : > { %v3622_v27 = vadd.f32 -1.0, %v4478_v51  ;;  %v1129_v22 = vmin.f32 %v5260_v45, 0.0  ;;  %v1048_v24 = vpop.f32.mrb[19].mxu0  ;;  %v4480_v35 = vpop.eup %4479  ;;  %v5272_v28 = vadd.f32 %v1046_v9, %v5191_v57  ;;  %v1305_v9 = vld [vmem:[#allocation2] ss:$2 sm:$0xff]  ;;  %vm1097_vm9 = vcmp.gt.f32.partialorder %v5260_v45, 0.0 }
 0x184   : > { %v1249_v8 = vsel %vm1089_vm14, %v5218_v21, %v3621_v4  ;;  %v1130_v39 = vmin.f32 %v5263_v7, 0.0  ;;  %v3623_v34 = vadd.f32 -1.0, %v4480_v35  ;;  %v5275_v44 = vadd.f32 %v1048_v24, %v5195_v6  ;;  %v4482_v16 = vpop.eup %4481  ;;  %v1321_v24 = vld [vmem:[#allocation2 + $0x1] ss:$2 sm:$0xff] }
 0x185   : > { %v1250_v19 = vsel %vm1090_vm15, %v5221_v42, %v3622_v27  ;;  %v1177_v14 = vmul.f32 1.442695, %v1129_v22  ;;  %v3624_v46 = vadd.f32 -1.0, %v4482_v16  ;;  %v1131_v42 = vmin.f32 %v5272_v28, 0.0 }
 0x186   : > { %v1277_v26 = vmax.f32 %v1249_v8, %v1250_v19  ;;  %v1179_v18 = vmul.f32 1.442695, %v1130_v39  ;;  %v1251_v21 = vsel %vm1091_vm2, %v5225_v59, %v3623_v34  ;;  %v1132_v23 = vmin.f32 %v5275_v44, 0.0 }
 0x187   : > { %4491 = vpow2.f32 %v1177_v14  ;;  %v1252_v58 = vsel %vm1092_vm3, %v5230_v25, %v3624_v46  ;;  %v1181_v29 = vmul.f32 1.442695, %v1131_v42  ;;  %vm1098_vm10 = vcmp.gt.f32.partialorder %v5263_v7, 0.0 }
 0x188   : > { %1293 = vst [vmem:[#allocation2 + $0x20] sm:$0xff] %v1277_v26  ;;  %4493 = vpow2.f32 %v1179_v18  ;;  %v1052_v48 = vpop.f32.mrb[20].mxu0  ;;  %v1278_v33 = vmax.f32 %v1251_v21, %v1252_v58  ;;  %v1183_v56 = vmul.f32 1.442695, %v1132_v23  ;;  %vm1099_vm11 = vcmp.gt.f32.partialorder %v5272_v28, 0.0 }
 0x189   : > { %v4484_v37 = vpop.eup %4483  ;;  %v5284_v32 = vadd.f32 %v1052_v48, %v5191_v57  ;;  %v1054_v20 = vpop.f32.mrb[21].mxu0  ;;  %4495 = vpow2.f32 %v1181_v29  ;;  %v1307_v61 = vld [vmem:[#allocation2 + $0x10] ss:$2 sm:$0xff]  ;;  %v1323_v49 = vld [vmem:[#allocation2 + $0x11] ss:$2 sm:$0xff]  ;;  %v5314_v48 = vmax.f32 %v1305_v9, %v1321_v24  ;;  %vm1100_vm12 = vcmp.gt.f32.partialorder %v5275_v44, 0.0 }
 0x18a   : > { %v4486_v43 = vpop.eup %4485  ;;  %v3625_v59 = vadd.f32 -1.0, %v4484_v37  ;;  %v5288_v54 = vadd.f32 %v1054_v20, %v5195_v6  ;;  %v1056_v10 = vpop.f32.mrb[22].mxu0  ;;  %1294 = vst [vmem:[#allocation2 + $0x28] sm:$0xff] %v1278_v33  ;;  %4497 = vpow2.f32 %v1183_v56  ;;  %v5305_v39 = vmax.f32 %v1307_v61, %v1323_v49 }
 0x18b   : > { %v3626_v53 = vadd.f32 -1.0, %v4486_v43  ;;  %v1058_v63 = vpop.f32.mrb[23].mxu0  ;;  %v1133_v41 = vmin.f32 %v5284_v32, 0.0  ;;  %v5297_v55 = vadd.f32 %v1056_v10, %v5191_v57  ;;  %v4488_v51 = vpop.eup %4487  ;;  %vm1101_vm13 = vcmp.gt.f32.partialorder %v5284_v32, 0.0 }
 0x18c   : > { %v1253_v30 = vsel %vm1093_vm5, %v5235_v17, %v3625_v59  ;;  %v1134_v52 = vmin.f32 %v5288_v54, 0.0  ;;  %v5301_v3 = vadd.f32 %v1058_v63, %v5195_v6  ;;  %v4490_v27 = vpop.eup %4489  ;;  %v3627_v15 = vadd.f32 -1.0, %v4488_v51 }
 0x18d   : > { %v1254_v25 = vsel %vm1094_vm6, %v5239_v36, %v3626_v53  ;;  %v1185_v17 = vmul.f32 1.442695, %v1133_v41  ;;  %v1135_v22 = vmin.f32 %v5297_v55, 0.0  ;;  %v3628_v35 = vadd.f32 -1.0, %v4490_v27 }
 0x18e   : > { %v1279_v4 = vmax.f32 %v1253_v30, %v1254_v25  ;;  %v1187_v36 = vmul.f32 1.442695, %v1134_v52  ;;  %v1136_v8 = vmin.f32 %v5301_v3, 0.0  ;;  %v1255_v14 = vsel %vm1095_vm7, %v5251_v62, %v3627_v15 }
 0x18f   : > { %4499 = vpow2.f32 %v1185_v17  ;;  %v1189_v26 = vmul.f32 1.442695, %v1135_v22  ;;  %v1256_v21 = vsel %vm1096_vm8, %v5255_v40, %v3628_v35  ;;  %v1417_v58 = vpack.c.bf16 %v5305_v39, %v5314_v48 }
 0x190   : > { %1295 = vst [vmem:[#allocation2 + $0x30] sm:$0xff] %v1279_v4  ;;  %v1062_v19 = vpop.f32.mrb[24].mxu0  ;;  %4501 = vpow2.f32 %v1187_v36  ;;  %v1191_v42 = vmul.f32 1.442695, %v1136_v8  ;;  %v1280_v23 = vmax.f32 %v1255_v14, %v1256_v21  ;;  %vm1102_vm14 = vcmp.gt.f32.partialorder %v5288_v54, 0.0 }
 0x191   : > { %v4492_v34 = vpop.eup %4491  ;;  %v1064_v18 = vpop.f32.mrb[25].mxu0  ;;  %4503 = vpow2.f32 %v1189_v26  ;;  %v5321_v59 = vadd.f32 %v1062_v19, %v5191_v57  ;;  %1659 = vmatprep.mubr.bf16.mxu1 %v1417_v58  ;;  %vm1103_vm15 = vcmp.gt.f32.partialorder %v5297_v55, 0.0  ;;  %vm1104_vm2 = vcmp.gt.f32.partialorder %v5301_v3, 0.0 }
 0x192   : > { %v4494_v16 = vpop.eup %4493  ;;  %v3629_v46 = vadd.f32 -1.0, %v4492_v34  ;;  %v1066_v37 = vpop.f32.mrb[26].mxu0  ;;  %4505 = vpow2.f32 %v1191_v42  ;;  %1296 = vst [vmem:[#allocation2 + $0x38] sm:$0xff] %v1280_v23  ;;  %v5325_v29 = vadd.f32 %v1064_v18, %v5195_v6 }
 0x193   : > { %v3630_v20 = vadd.f32 -1.0, %v4494_v16  ;;  %v1068_v62 = vpop.f32.mrb[27].mxu0  ;;  %v5328_v10 = vadd.f32 %v1066_v37, %v5191_v57  ;;  %v1137_v56 = vmin.f32 %v5321_v59, 0.0  ;;  %v1393_v16 = vrot.slane %v5305_v39, 1 }
 0x194   : > { %v1257_v43 = vsel %vm1097_vm9, %v5260_v45, %v3629_v46  ;;  %v5331_v33 = vadd.f32 %v1068_v62, %v5195_v6  ;;  %v4496_v45 = vpop.eup %4495  ;;  %v1309_v62 = vld [vmem:[#allocation2 + $0x20] ss:$2 sm:$0xff]  ;;  %vm1105_vm3 = vcmp.gt.f32.partialorder %v5321_v59, 0.0  ;;  %vm1106_vm5 = vcmp.gt.f32.partialorder %v5325_v29, 0.0 }
 0x195   : > { %v1258_v40 = vsel %vm1098_vm10, %v5263_v7, %v3630_v20  ;;  %v4498_v63 = vpop.eup %4497  ;;  %v3631_v30 = vadd.f32 -1.0, %v4496_v45  ;;  %v1138_v7 = vmin.f32 %v5325_v29, 0.0  ;;  %v1193_v25 = vmul.f32 1.442695, %v1137_v56  ;;  %v1325_v45 = vld [vmem:[#allocation2 + $0x21] ss:$2 sm:$0xff] }
 0x196   : > { %v1281_v53 = vmax.f32 %v1257_v43, %v1258_v40  ;;  %v3632_v41 = vadd.f32 -1.0, %v4498_v63  ;;  %v1139_v52 = vmin.f32 %v5328_v10, 0.0  ;;  %v1140_v4 = vmin.f32 %v5331_v33, 0.0 }
 0x197   : > { %v1259_v49 = vsel %vm1099_vm11, %v5272_v28, %v3631_v30  ;;  %v1195_v51 = vmul.f32 1.442695, %v1138_v7  ;;  %4507 = vpow2.f32 %v1193_v25  ;;  %v1392_v56 = vrot.slane %v5314_v48, 1 }
 0x198   : > { %1297 = vst [vmem:[#allocation2 + $0x40] sm:$0xff] %v1281_v53  ;;  %v1072_v61 = vpop.f32.mrb[28].mxu0  ;;  %v1260_v15 = vsel %vm1100_vm12, %v5275_v44, %v3632_v41  ;;  %v1197_v36 = vmul.f32 1.442695, %v1139_v52  ;;  %v1199_v28 = vmul.f32 1.442695, %v1140_v4 }
 0x199   : > { %v5343_v17 = vadd.f32 %v1072_v61, %v5191_v57  ;;  %v1074_v9 = vpop.f32.mrb[29].mxu0  ;;  %v4500_v27 = vpop.eup %4499  ;;  %v1282_v8 = vmax.f32 %v1259_v49, %v1260_v15  ;;  %4509 = vpow2.f32 %v1195_v51  ;;  %vm1107_vm6 = vcmp.gt.f32.partialorder %v5328_v10, 0.0 }
 0x19a   : > { %v5347_v22 = vadd.f32 %v1074_v9, %v5195_v6  ;;  %v1076_v24 = vpop.f32.mrb[30].mxu0  ;;  %v4502_v35 = vpop.eup %4501  ;;  %v3633_v19 = vadd.f32 -1.0, %v4500_v27  ;;  %4511 = vpow2.f32 %v1197_v36  ;;  %vm1108_vm7 = vcmp.gt.f32.partialorder %v5331_v33, 0.0 }
 0x19b   : > { %v1078_v34 = vpop.f32.mrb[31].mxu0  ;;  %v3634_v14 = vadd.f32 -1.0, %v4502_v35  ;;  %v1141_v26 = vmin.f32 %v5343_v17, 0.0  ;;  %v4504_v18 = vpop.eup %4503  ;;  %1298 = vst [vmem:[#allocation2 + $0x48] sm:$0xff] %v1282_v8  ;;  %4513 = vpow2.f32 %v1199_v28  ;;  %v5360_v20 = vadd.f32 %v1076_v24, %v5191_v57 }
 0x19c   : > { %v1261_v44 = vsel %vm1101_vm13, %v5284_v32, %v3633_v19  ;;  %v1142_v21 = vmin.f32 %v5347_v22, 0.0  ;;  %v4506_v46 = vpop.eup %4505  ;;  %v3635_v37 = vadd.f32 -1.0, %v4504_v18  ;;  %v1079_v32 = vadd.f32 %v1078_v34, %v5195_v6 }
 0x19d   : > { %v1262_v42 = vsel %vm1102_vm14, %v5288_v54, %v3634_v14  ;;  %v1201_v23 = vmul.f32 1.442695, %v1141_v26  ;;  %v3636_v58 = vadd.f32 -1.0, %v4506_v46  ;;  %v1143_v54 = vmin.f32 %v5360_v20, 0.0 }
 0x19e   : > { %v1283_v43 = vmax.f32 %v1261_v44, %v1262_v42  ;;  %v1203_v40 = vmul.f32 1.442695, %v1142_v21  ;;  %v1263_v53 = vsel %vm1103_vm15, %v5297_v55, %v3635_v37  ;;  %v1144_v63 = vmin.f32 %v1079_v32, 0.0 }
 0x19f   : > { %4515 = vpow2.f32 %v1201_v23  ;;  %v1264_v57 = vsel %vm1104_vm2, %v5301_v3, %v3636_v58  ;;  %v1205_v7 = vmul.f32 1.442695, %v1143_v54  ;;  %v5370_v6 = vmax.f32 %v1309_v62, %v1325_v45 }
 0x1a0   : > { %1299 = vst [vmem:[#allocation2 + $0x50] sm:$0xff] %v1283_v43  ;;  %4517 = vpow2.f32 %v1203_v40  ;;  %v1284_v30 = vmax.f32 %v1263_v53, %v1264_v57  ;;  %v1207_v41 = vmul.f32 1.442695, %v1144_v63  ;;  %v5376_v55 = vsel %vm6320_vm1, %v1392_v56, %v1393_v16  ;;  %v1311_v43 = vld [vmem:[#allocation2 + $0x30] ss:$2 sm:$0xff] }
 0x1a1   : > { %v4508_v25 = vpop.eup %4507  ;;  %4519 = vpow2.f32 %v1205_v7  ;;  %v1394_v51 = vrot.slane %v5370_v6, 1  ;;  %vm1109_vm8 = vcmp.gt.f32.partialorder %v5343_v17, 0.0  ;;  %vm1110_vm9 = vcmp.gt.f32.partialorder %v5347_v22, 0.0  ;;  %v1327_v40 = vld [vmem:[#allocation2 + $0x31] ss:$2 sm:$0xff] }
 0x1a2   : > { %1300 = vst [vmem:[#allocation2 + $0x58] sm:$0xff] %v1284_v30  ;;  %v3637_v3 = vadd.f32 -1.0, %v4508_v25  ;;  %4521 = vpow2.f32 %v1207_v41  ;;  %vm1111_vm10 = vcmp.gt.f32.partialorder %v5360_v20, 0.0  ;;  %vm1112_vm11 = vcmp.gt.f32.partialorder %v1079_v32, 0.0  ;;  %v4336_v41 = vld [vmem:[%s6299_s3 + $0x88] sm:$0xff]  }
 0x1a3   : > { %v4510_v52 = vpop.eup %4509  ;;  %v1345_v62 = vand.u32 7, %v4710_v11  ;;  %v1361_v45 = vrot.slane %v5305_v39, 7  ;;  %v1360_v54 = vrot.slane %v5314_v48, 7  ;;  %v5420_v63 = vmax.f32 %v1311_v43, %v1327_v40  ;;  %v4344_v48 = vld [vmem:[%s6301_s5 + $0x88] sm:$0xff]  }
 0x1a4   : > { %v4512_v61 = vpop.eup %4511  ;;  %v3638_v49 = vadd.f32 -1.0, %v4510_v52  ;;  %v1265_v9 = vsel %vm1105_vm3, %v5321_v59, %v3637_v3  ;;  %v5391_v59 = vsel %vm6320_vm1, %v1393_v16, %v1394_v51  ;;  %v1346_v25 = vand.u32 7, %v5023_v12 }
 0x1a5   : > { %v4514_v4 = vpop.eup %4513  ;;  %v3639_v27 = vadd.f32 -1.0, %v4512_v61  ;;  %v3693_v14 = vpack.c.bf16 %v5391_v59, %v5376_v55  ;;  %vm5408_vm12 = vcmp.ne.s32.totalorder %v1345_v62, 0  ;;  %v1374_v39 = vsel %vm6318_vm0, %v1360_v54, %v1361_v45 }
 0x1a6   : > { %v1266_v15 = vsel %vm1106_vm5, %v5325_v29, %v3638_v49  ;;  %v3640_v36 = vadd.f32 -1.0, %v4514_v4  ;;  %v1347_v52 = vand.u32 7, %v4778_v47  ;;  %v1420_v3 = vpack.c.bf16 %v5420_v63, %v5370_v6 }
 0x1a7   : > { %v1285_v24 = vmax.f32 %v1265_v9, %v1266_v15  ;;  %v1267_v35 = vsel %vm1107_vm6, %v5328_v10, %v3639_v27  ;;  %v1363_v61 = vrot.slane %v5420_v63, 7  ;;  %v4337_v9 = vld [vmem:[%s6299_s3 + $0x90] sm:$0xff]   ;;  %v1362_v27 = vrot.slane %v5370_v6, 7 }
 0x1a8   : > { %v1268_v19 = vsel %vm1108_vm7, %v5331_v33, %v3640_v36  ;;  %vm5452_vm15 = vcmp.ne.s32.totalorder %v1347_v52, 0  ;;  %v6352_v15 = vmov 0  ;;  %vm5458_vm2 = vcmp.ne.s32.totalorder %v1346_v25, 0 }
 0x1a9   : > { %v4516_v8 = vpop.eup %4515  ;;  %1301 = vst [vmem:[#allocation2 + $0x60] sm:$0xff] %v1285_v24  ;;  %v1286_v29 = vmax.f32 %v1267_v35, %v1268_v19  ;;  %v1315_v49 = vld [vmem:[#allocation2 + $0x50] ss:$2 sm:$0xff]  ;;  %v1331_v4 = vld [vmem:[#allocation2 + $0x51] ss:$2 sm:$0xff]  ;;  %v6353_v15 = vsel %vm5452_vm15, 4294967295, %v6352_v15  ;;  %v1372_v35 = vsel %vm6318_vm0, %v1362_v27, %v1363_v61  ;;  %v1373_v19 = vsel %vm6318_vm0, %v1361_v45, %v1362_v27  ;;  %vm6314_vm3 = vmpackc.low %vm5452_vm15, %vm5458_vm2 }
 0x1aa   : > { %v4518_v28 = vpop.eup %4517  ;;  %v3641_v34 = vadd.f32 -1.0, %v4516_v8  ;;  %v6354_v36 = vmov 0  ;;  %v1329_v24 = vld [vmem:[#allocation2 + $0x41] ss:$2 sm:$0xff]  ;;  %v5464_v8 = vmax.f32 %v1315_v49, %v1331_v4  ;;  %v1351_v40 = vand.u32 7, %v4890_v13 }
 0x1ab   : > { %v3642_v10 = vadd.f32 -1.0, %v4518_v28  ;;  %1302 = vst [vmem:[#allocation2 + $0x68] sm:$0xff] %v1286_v29  ;;  %v4520_v33 = vpop.eup %4519  ;;  %v6355_v36 = vsel %vm5458_vm2, 4294967295, %v6354_v36  ;;  %v3678_v29 = vpack.c.bf16 %v1372_v35, %v1373_v19  ;;  %v6362_v13 = vmov 0 }
 0x1ac   : > { %v1269_v26 = vsel %vm1109_vm8, %v5343_v17, %v3641_v34  ;;  %v4522_v44 = vpop.eup %4521  ;;  %v3643_v21 = vadd.f32 -1.0, %v4520_v33  ;;  %v1344_v17 = vand.u32 7, %v4693_v5  ;;  %v4338_v34 = vld [vmem:[%s6299_s3 + $0x98] sm:$0xff]   ;;  %vm5521_vm8 = vcmp.ne.s32.totalorder %v1351_v40, 0 }
 0x1ad   : > { %v1270_v18 = vsel %vm1110_vm9, %v5347_v22, %v3642_v10  ;;  %v3644_v46 = vadd.f32 -1.0, %v4522_v44  ;;  %v1348_v10 = vand.u32 7, %v5020_v2  ;;  %v4339_v44 = vld [vmem:[%s6299_s3 + $0xa0] sm:$0xff]   ;;  %v1395_v49 = vrot.slane %v5420_v63, 1 }
 0x1ae   : > { %v1287_v16 = vmax.f32 %v1269_v26, %v1270_v18  ;;  %v1271_v42 = vsel %vm1111_vm10, %v5360_v20, %v3643_v21  ;;  %vm5414_vm13 = vcmp.ne.s32.totalorder %v1344_v17, 0  ;;  %v1349_v26 = vand.u32 7, %v4876_v31 }
 0x1af   : > { %v1272_v37 = vsel %vm1112_vm11, %v1079_v32, %v3644_v46  ;;  %vm6316_vm14 = vmpackc.low %vm5408_vm12, %vm5414_vm13  ;;  %v1365_v18 = vrot.slane %v5464_v8, 7  ;;  %v6356_v31 = vmov 0  ;;  %vm5495_vm6 = vcmp.ne.s32.totalorder %v1348_v10, 0 }
 0x1b0   : > { %1303 = vst [vmem:[#allocation2 + $0x70] sm:$0xff] %v1287_v16  ;;  %v1288_v23 = vmax.f32 %v1271_v42, %v1272_v37  ;;  %vm5491_vm5 = vcmp.ne.s32.totalorder %v1349_v26, 0  ;;  %v6358_v16 = vmov 0  ;;  %vm5535_vm10 = vcmp.ne.s32.totalorder %v1345_v62, 7 }
 0x1b1   : > { %v6357_v31 = vsel %vm5491_vm5, 4294967295, %v6356_v31  ;;  %v6359_v16 = vsel %vm5495_vm6, 4294967295, %v6358_v16  ;;  %vm6313_vm7 = vmpackc.low %vm5491_vm5, %vm5495_vm6  ;;  %vm5541_vm11 = vcmp.ne.s32.totalorder %v1344_v17, 7  ;;  %v4342_v17 = vld [vmem:[%s6299_s3 + $0xb8] sm:$0xff]   ;;  %v1397_v55 = vrot.slane %v5464_v8, 1 }
 0x1b2   : > { %1304 = vst [vmem:[#allocation2 + $0x78] sm:$0xff] %v1288_v23  ;;  %v1317_v21 = vld [vmem:[#allocation2 + $0x60] ss:$2 sm:$0xff]  ;;  %v1333_v46 = vld [vmem:[#allocation2 + $0x61] ss:$2 sm:$0xff]  ;;  %v6378_v35 = vmov 0 }
 0x1b3   : > { %v1342_v23 = vmax.f32 %v1317_v21, %v1333_v46  ;;  %vm6380_vm6 = vcmp.lt.s32.totalorder %v4693_v5, 7  ;;  %v4354_v21 = vld [vmem:[%s6301_s5 + $0x18] sm:$0xff]   ;;  %v4355_v46 = vld [vmem:[%s6301_s5 + $0xa0] sm:$0xff]  }
 0x1b9   : > { %v1319_v58 = vld [vmem:[#allocation2 + $0x70] ss:$2 sm:$0xff]  ;;  %v1335_v22 = vld [vmem:[#allocation2 + $0x71] ss:$2 sm:$0xff] }
 0x1ba   : > { %v5404_v53 = vmax.f32 %v1319_v58, %v1335_v22  ;;  %v4340_v58 = vld [vmem:[%s6299_s3 + $0xa8] sm:$0xff]   ;;  %v1350_v22 = vand.u32 7, %v5026_v60  ;;  %v6360_v60 = vmov 0 }
 0x1bb   : > { %v6361_v60 = vsel %vm5521_vm8, 4294967295, %v6360_v60 }
 0x1bc   : > { %v1367_v57 = vrot.slane %v5404_v53, 7  ;;  %v1426_v45 = vpack.c.bf16 %v5404_v53, %v1342_v23  ;;  %vm5525_vm9 = vcmp.ne.s32.totalorder %v1350_v22, 0  ;;  %v1399_v6 = vrot.slane %v5404_v53, 1 }
 0x1bd   : > { %v6363_v13 = vsel %vm5525_vm9, 4294967295, %v6362_v13  ;;  %vm6315_vm4 = vmpackc.low %vm5521_vm8, %vm5525_vm9  ;;  %vm5627_vm8 = vcmp.ne.s32.totalorder %v1350_v22, 7  ;;  %v4361_v22 = vld [vmem:[%s6301_s5 + $0xb0] sm:$0xff]  }
 0x1be   : > { %v1375_v30 = vsel %vm6318_vm0, %v1367_v57, %v1360_v54  ;;  %v1366_v54 = vrot.slane %v1342_v23, 7  ;;  %v6379_v35 = vsel %vm5627_vm8, 4294967295, %v6378_v35 }
 0x1bf   : > { %v3673_v7 = vpack.c.bf16 %v1374_v39, %v1375_v30  ;;  %v4341_v39 = vld [vmem:[%s6299_s3 + $0xb0] sm:$0xff]  }
 0x1c0   : > { %v1368_v30 = vsel %vm6318_vm0, %v1366_v54, %v1367_v57 }
 0x1c1   : > { %3674 = vmatmul.mubr.msk.bf16.vlgmr.msra.gmra.mrb[0].mxu1 %vm6316_vm14, %v3673_v7  ;;  %vm5588_vm14 = vcmp.ne.s32.totalorder %v1349_v26, 7  ;;  %v4345_v26 = vld [vmem:[%s6301_s5 + $0x90] sm:$0xff]  }
 0x1c2   : > { %4154 = vmatpush3.bf16.msra.mxu1 %v5181_v50  ;;  %1667 = vmatprep.mubr.bf16.mxu1 %v1420_v3  ;;  %v1313_v50 = vld [vmem:[#allocation2 + $0x40] ss:$2 sm:$0xff]  ;;  %v1369_v3 = vsel %vm6318_vm0, %v1365_v18, %v1366_v54  ;;  %v4364_v54 = vld [vmem:[%s6301_s5 + $0xb8] sm:$0xff]  }
 0x1c3   : > { %4155 = vmatprep.subr.bf16.mxu1 %v4336_v41  ;;  %v5472_v28 = vmax.f32 %v1313_v50, %v1329_v24  ;;  %v3688_v62 = vpack.c.bf16 %v1368_v30, %v1369_v3  ;;  %v4366_v30 = vld [vmem:[%s6301_s5 + $0x38] sm:$0xff]  }
 0x1c5   : > { %v1423_v33 = vpack.c.bf16 %v5464_v8, %v5472_v28  ;;  %v1364_v2 = vrot.slane %v5472_v28, 7  ;;  %v1396_v57 = vrot.slane %v5472_v28, 1  ;;  %v4343_v28 = vld [vmem:[%s6301_s5 + $0x80] sm:$0xff]  }
 0x1c6   : > { %4156 = vmatpush3.bf16.msra.mxu1 %v4336_v41  ;;  %4177 = vmatprep.subr.bf16.mxu0 %v4343_v28 }
 0x1c7   : > { %4157 = vmatprep.subr.bf16.mxu1 %v4337_v9  ;;  %v1370_v42 = vsel %vm6318_vm0, %v1364_v2, %v1365_v18  ;;  %v1371_v37 = vsel %vm6318_vm0, %v1363_v61, %v1364_v2  ;;  %v1398_v61 = vrot.slane %v1342_v23, 1  ;;  %v1403_v59 = vsel %vm6320_vm1, %v1395_v49, %v1396_v57  ;;  %4178 = vmatpush3.bf16.msra.mxu0 %v4343_v28  ;;  %v4352_v18 = vld [vmem:[%s6301_s5 + $0x10] sm:$0xff]   ;;  %v4353_v2 = vld [vmem:[%s6301_s5 + $0x58] sm:$0xff]   ;;  %v4358_v23 = vld [vmem:[%s6301_s5 + $0xa8] sm:$0xff]  }
 0x1c8   : > { %v3683_v43 = vpack.c.bf16 %v1370_v42, %v1371_v37  ;;  %v1402_v50 = vsel %vm6320_vm1, %v1396_v57, %v1397_v55  ;;  %4179 = vmatprep.subr.bf16.mxu0 %v4344_v48  ;;  %v4356_v42 = vld [vmem:[%s6301_s5 + $0x60] sm:$0xff]  }
 0x1c9   : > { %3679 = vmatmul.mubr.msk.bf16.gmra.mrb[4].mxu1 %vm6314_vm3, %v3678_v29  ;;  %vm5575_vm3 = vcmp.ne.s32.totalorder %v1347_v52, 7  ;;  %v1400_v53 = vsel %vm6380_vm6, %v1398_v61, %v1399_v6  ;;  %v4347_v29 = vld [vmem:[%s6301_s5] sm:$0xff]  }
 0x1ca   : > { %4158 = vmatpush3.bf16.msra.mxu1 %v4337_v9  ;;  %1675 = vmatprep.mubr.bf16.mxu1 %v1423_v33  ;;  %v1404_v9 = vsel %vm6320_vm1, %v1394_v51, %v1395_v49  ;;  %v4351_v33 = vld [vmem:[%s6301_s5 + $0x50] sm:$0xff]   ;;  %v4357_v37 = vld [vmem:[%s6301_s5 + $0x20] sm:$0xff]  }
 0x1cb   : > { %4159 = vmatprep.subr.bf16.mxu1 %v4338_v34  ;;  %v3698_v27 = vpack.c.bf16 %v1403_v59, %v1404_v9  ;;  %4180 = vmatpush3.bf16.msra.mxu0 %v4344_v48 }
 0x1cc   : > { %4181 = vmatprep.subr.bf16.mxu0 %v4345_v26 }
 0x1ce   : > { %4160 = vmatpush3.bf16.msra.mxu1 %v4338_v34  ;;  %v4348_v34 = vld [vmem:[%s6301_s5 + $0x48] sm:$0xff]  }
 0x1cf   : > { %4161 = vmatprep.subr.bf16.mxu1 %v4339_v44  ;;  %4182 = vmatpush3.bf16.msra.mxu0 %v4345_v26 }
 0x1d1   : > { %3684 = vmatmul.mubr.msk.bf16.gmra.mrb[8].mxu1 %vm6313_vm7, %v3683_v43  ;;  %vm6317_vm7 = vmpackc.low %vm5535_vm10, %vm5541_vm11  ;;  %v4359_v43 = vld [vmem:[%s6301_s5 + $0x68] sm:$0xff]  }
 0x1d2   : > { %4162 = vmatpush3.bf16.msra.mxu1 %v4339_v44  ;;  %1683 = vmatprep.mubr.bf16.mxu1 %v1426_v45  ;;  %v4350_v44 = vld [vmem:[%s6301_s5 + $0x98] sm:$0xff]   ;;  %v4363_v45 = vld [vmem:[%s6301_s5 + $0x30] sm:$0xff]  }
 0x1d3   : > { %4163 = vmatprep.subr.bf16.mxu1 %v4340_v58  ;;  %4183 = vmatprep.subr.bf16.mxu0 %v4350_v44 }
 0x1d4   : > { %4184 = vmatpush3.bf16.msra.mxu0 %v4350_v44 }
 0x1d5   : > { %4185 = vmatprep.subr.bf16.mxu0 %v4355_v46 }
 0x1d6   : > { %4164 = vmatpush3.bf16.msra.mxu1 %v4340_v58  ;;  %v4360_v58 = vld [vmem:[%s6301_s5 + $0x28] sm:$0xff]  }
 0x1d7   : > { %4165 = vmatprep.subr.bf16.mxu1 %v4341_v39 }
 0x1d8   : > { %4186 = vmatpush3.bf16.msra.mxu0 %v4355_v46 }
 0x1d9   : > { %3689 = vmatmul.mubr.msk.bf16.gmra.mrb[12].mxu1 %vm6315_vm4, %v3688_v62  ;;  %vm5581_vm4 = vcmp.ne.s32.totalorder %v1346_v25, 7  ;;  %v1401_v25 = vsel %vm6320_vm1, %v1397_v55, %v1398_v61  ;;  %vm5623_vm1 = vcmp.ne.s32.totalorder %v1351_v40, 7  ;;  %4187 = vmatprep.subr.bf16.mxu0 %v4358_v23  ;;  %v4362_v40 = vld [vmem:[%s6301_s5 + $0x70] sm:$0xff]  }
 0x1da   : > { %4166 = vmatpush3.bf16.msra.mxu1 %v4341_v39  ;;  %4169 = vmatprep.mubr.msk.bf16.mxu1 %vm6317_vm7, %v3693_v14  ;;  %vm5592_vm7 = vcmp.ne.s32.totalorder %v1348_v10, 7  ;;  %vm6323_vm0 = vmpackc.low %vm5575_vm3, %vm5581_vm4  ;;  %v3703_v24 = vpack.c.bf16 %v1401_v25, %v1402_v50  ;;  %v4349_v10 = vld [vmem:[%s6301_s5 + $0x8] sm:$0xff]   ;;  %v4365_v39 = vld [vmem:[%s6301_s5 + $0x78] sm:$0xff]  }
 0x1db   : > { %4167 = vmatprep.subr.bf16.mxu1 %v4342_v17  ;;  %vm6324_vm9 = vmpackc.low %vm5588_vm14, %vm5592_vm7 }
 0x1dc   : > { %4188 = vmatpush3.bf16.msra.mxu0 %v4358_v23 }
 0x1dd   : > { %4189 = vmatprep.subr.bf16.mxu0 %v4361_v22 }
 0x1de   : > { %4168 = vmatpush3.bf16.msra.mxu1 %v4342_v17 }
 0x1e0   : > { %4190 = vmatpush3.bf16.msra.mxu0 %v4361_v22 }
 0x1e1   : > { %4170 = vmatmul.mubr.msk.bf16.vlgmr.msra.gmra.mrb[16].mxu1 %vm6323_vm0, %v3698_v27  ;;  %vm6381_vm0 = vmmov %vm6380_vm6  ;;  %4191 = vmatprep.subr.bf16.mxu0 %v4364_v54 }
 0x1e2   : > { %4173 = vmatprep.mubr.msk.bf16.mxu1 %vm6324_vm9, %v3703_v24  ;;  %v1407_v8 = vsel %vm6381_vm0, %v1399_v6, %v1392_v56  ;;  %vm6325_vm9 = vmpackc.low %vm5623_vm1, %vm5627_vm8  ;;  %v4346_v56 = vld [vmem:[%s6301_s5 + $0x40] sm:$0xff]  }
 0x1e3   : > { %v3708_v19 = vpack.c.bf16 %v1407_v8, %v1400_v53  ;;  %4019 = vmatprep.subr.bf16.mxu1 %v4346_v56 }
 0x1e4   : > { %4020 = vmatpush3.bf16.msra.mxu1 %v4347_v29  ;;  %4192 = vmatpush3.bf16.msra.mxu0 %v4364_v54 }
 0x1e5   : > { %4021 = vmatprep.subr.bf16.mxu1 %v4348_v34 }
 0x1e8   : > { %4022 = vmatpush3.bf16.msra.mxu1 %v4349_v10 }
 0x1e9   : > { %4174 = vmatmul.mubr.msk.bf16.gmra.mrb[20].mxu1 %vm6325_vm9, %v3708_v19  ;;  %4023 = vmatprep.subr.bf16.mxu1 %v4351_v33  ;;  %v3645_v33 = vld [vmem:[%s6300_s4] ss:$0 sm:$0xff] }
 0x1ec   : > { %4024 = vmatpush3.bf16.msra.mxu1 %v4352_v18 }
 0x1ed   : > { %4025 = vmatprep.subr.bf16.mxu1 %v4353_v2 }
 0x1f0   : > { %4026 = vmatpush3.bf16.msra.mxu1 %v4354_v21 }
 0x1f1   : > { %4027 = vmatprep.subr.bf16.mxu1 %v4356_v42 }
 0x1f4   : > { %4028 = vmatpush3.bf16.msra.mxu1 %v4357_v37 }
 0x1f5   : > { %4029 = vmatprep.subr.bf16.mxu1 %v4359_v43 }
 0x1f8   : > { %4030 = vmatpush3.bf16.msra.mxu1 %v4360_v58 }
 0x1f9   : > { %4031 = vmatprep.subr.bf16.mxu1 %v4362_v40 }
 0x1fc   : > { %4032 = vmatpush3.bf16.msra.mxu1 %v4363_v45 }
 0x1fd   : > { %4033 = vmatprep.subr.bf16.mxu1 %v4365_v39 }
 0x200   : > { %4034 = vmatpush3.bf16.msra.mxu1 %v4366_v30 }
 0x294   : > { %v3983_v3 = vpop.f32.mrb[0].mxu1 }
 0x295   : > { %v3984_v62 = vpop.f32.mrb[1].mxu1 }
 0x296   : > { %v3985_v17 = vadd.f32 %v3984_v62, %v3983_v3  ;;  %v3986_v57 = vpop.f32.mrb[2].mxu1 }
 0x297   : > { %v3987_v61 = vpop.f32.mrb[3].mxu1 }
 0x298   : > { %v3988_v49 = vadd.f32 %v3987_v61, %v3986_v57  ;;  %v1662_v2 = vadd.f32 %v3985_v17, %v3645_v33 }
 0x29a   : > { %v1665_v43 = vadd.f32 %v3988_v49, %v3645_v33 }
 0x29c   : > { %v3989_v55 = vpop.f32.mrb[4].mxu1 }
 0x29d   : > { %v3990_v59 = vpop.f32.mrb[5].mxu1 }
 0x29e   : > { %v3991_v25 = vadd.f32 %v3990_v59, %v3989_v55  ;;  %v3992_v9 = vpop.f32.mrb[6].mxu1 }
 0x29f   : > { %v3993_v27 = vpop.f32.mrb[7].mxu1 }
 0x2a0   : > { %v3994_v50 = vadd.f32 %v3993_v27, %v3992_v9  ;;  %v1670_v18 = vadd.f32 %v3991_v25, %v3645_v33 }
 0x2a2   : > { %v1673_v42 = vadd.f32 %v3994_v50, %v3645_v33 }
 0x2a4   : > { %v3995_v24 = vpop.f32.mrb[8].mxu1 }
 0x2a5   : > { %v3996_v6 = vpop.f32.mrb[9].mxu1 }
 0x2a6   : > { %v3997_v53 = vadd.f32 %v3996_v6, %v3995_v24  ;;  %v3998_v8 = vpop.f32.mrb[10].mxu1 }
 0x2a7   : > { %v3999_v19 = vpop.f32.mrb[11].mxu1 }
 0x2a8   : > { %v4000_v28 = vadd.f32 %v3999_v19, %v3998_v8  ;;  %v1678_v59 = vadd.f32 %v3997_v53, %v3645_v33 }
 0x2aa   : > { %v1681_v24 = vadd.f32 %v4000_v28, %v3645_v33 }
 0x2ac   : > { %v4001_v48 = vpop.f32.mrb[12].mxu1 }
 0x2ad   : > { %v4002_v56 = vpop.f32.mrb[13].mxu1 }
 0x2ae   : > { %v4003_v29 = vadd.f32 %v4002_v56, %v4001_v48  ;;  %v4004_v34 = vpop.f32.mrb[14].mxu1 }
 0x2af   : > { %v4005_v10 = vpop.f32.mrb[15].mxu1 }
 0x2b0   : > { %v4006_v26 = vadd.f32 %v4005_v10, %v4004_v34  ;;  %v1686_v61 = vadd.f32 %v4003_v29, %v3645_v33 }
 0x2b2   : > { %v1689_v9 = vadd.f32 %v4006_v26, %v3645_v33 }
 0x2b4   : > { %v4171_v44 = vpop.f32.mrb[16].mxu1 }
 0x2b5   : > { %v1735_v21 = vadd.f32 %v4171_v44, %v1670_v18  ;;  %v1726_v46 = vpop.f32.mrb[17].mxu1 }
 0x2b6   : > { %v1727_v37 = vadd.f32 %v1726_v46, %v1662_v2  ;;  %v4172_v23 = vpop.f32.mrb[18].mxu1 }
 0x2b7   : > { %v1767_v58 = vmin.f32 %v1735_v21, 0.0  ;;  %v1738_v22 = vadd.f32 %v4172_v23, %v1673_v42  ;;  %v1729_v40 = vpop.f32.mrb[19].mxu1  ;;  %vm1759_vm0 = vcmp.gt.f32.partialorder %v1735_v21, 0.0 }
 0x2b8   : > { %v1765_v45 = vmin.f32 %v1727_v37, 0.0  ;;  %v1730_v54 = vadd.f32 %v1729_v40, %v1665_v43  ;;  %vm1757_vm6 = vcmp.gt.f32.partialorder %v1727_v37, 0.0 }
 0x2b9   : > { %v1777_v39 = vmul.f32 1.442695, %v1767_v58  ;;  %v1768_v30 = vmin.f32 %v1738_v22, 0.0  ;;  %vm1760_vm9 = vcmp.gt.f32.partialorder %v1738_v22, 0.0 }
 0x2ba   : > { %v1773_v3 = vmul.f32 1.442695, %v1765_v45  ;;  %v1766_v62 = vmin.f32 %v1730_v54, 0.0  ;;  %vm1758_vm5 = vcmp.gt.f32.partialorder %v1730_v54, 0.0 }
 0x2bb   : > { %4523 = vpow2.f32 %v1777_v39  ;;  %v1779_v57 = vmul.f32 1.442695, %v1768_v30 }
 0x2bc   : > { %4525 = vpow2.f32 %v1773_v3  ;;  %v1775_v17 = vmul.f32 1.442695, %v1766_v62  ;;  %v4175_v55 = vpop.f32.mrb[20].mxu1 }
 0x2bd   : > { %4527 = vpow2.f32 %v1779_v57  ;;  %v5721_v25 = vadd.f32 %v4175_v55, %v1686_v61  ;;  %v1742_v49 = vpop.f32.mrb[21].mxu1 }
 0x2be   : > { %4529 = vpow2.f32 %v1775_v17  ;;  %v5723_v27 = vadd.f32 %v1742_v49, %v1678_v59  ;;  %v4176_v50 = vpop.f32.mrb[22].mxu1 }
 0x2bf   : > { %v1771_v6 = vmin.f32 %v5721_v25, 0.0  ;;  %v5726_v8 = vadd.f32 %v4176_v50, %v1689_v9  ;;  %v1745_v19 = vpop.f32.mrb[23].mxu1 }
 0x2c0   : > { %v1769_v48 = vmin.f32 %v5723_v27, 0.0  ;;  %v5729_v56 = vadd.f32 %v1745_v19, %v1681_v24 }
 0x2c1   : > { %v1785_v53 = vmul.f32 1.442695, %v1771_v6  ;;  %v1772_v29 = vmin.f32 %v5726_v8, 0.0 }
 0x2c2   : > { %v1781_v34 = vmul.f32 1.442695, %v1769_v48  ;;  %v1770_v10 = vmin.f32 %v5729_v56, 0.0 }
 0x2c3   : > { %4531 = vpow2.f32 %v1785_v53  ;;  %v1787_v26 = vmul.f32 1.442695, %v1772_v29 }
 0x2c4   : > { %4533 = vpow2.f32 %v1781_v34  ;;  %v1783_v18 = vmul.f32 1.442695, %v1770_v10 }
 0x2c5   : > { %v4524_v28 = vpop.eup %4523  ;;  %4535 = vpow2.f32 %v1787_v26 }
 0x2c6   : > { %v4526_v33 = vpop.eup %4525  ;;  %v3712_v44 = vadd.f32 -1.0, %v4524_v28  ;;  %4537 = vpow2.f32 %v1783_v18 }
 0x2c7   : > { %v4528_v2 = vpop.eup %4527  ;;  %v3710_v46 = vadd.f32 -1.0, %v4526_v33 }
 0x2c8   : > { %v4530_v42 = vpop.eup %4529  ;;  %v5733_v23 = vsel %vm1759_vm0, %v1735_v21, %v3712_v44  ;;  %v3713_v43 = vadd.f32 -1.0, %v4528_v2  ;;  %vm6382_vm0 = vcmp.lt.s32.totalorder %v4693_v5, 7 }
 0x2c9   : > { %v1797_v58 = vsel %vm1757_vm6, %v1727_v37, %v3710_v46  ;;  %v3711_v40 = vadd.f32 -1.0, %v4530_v42  ;;  %v1807_v45 = vrot.slane %v5733_v23, 7  ;;  %v1831_v39 = vrot.slane %v5733_v23, 1  ;;  %vm6386_vm15 = vmmov %vm6382_vm0 }
 0x2ca   : > { %v1805_v30 = vrot.slane %v1797_v58, 7  ;;  %v5737_v3 = vsel %vm1760_vm9, %v1738_v22, %v3713_v43  ;;  %v1829_v17 = vrot.slane %v1797_v58, 1  ;;  %vm1763_vm6 = vcmp.gt.f32.partialorder %v5721_v25, 0.0 }
 0x2cb   : > { %v1808_v62 = vrot.slane %v5737_v3, 7  ;;  %v1832_v57 = vrot.slane %v5737_v3, 1  ;;  %v1798_v61 = vsel %vm1758_vm5, %v1730_v54, %v3711_v40  ;;  %v1857_v21 = vpack.c.bf16 %v5737_v3, %v5733_v23  ;;  %vm6385_vm5 = vmmov %vm6382_vm0 }
 0x2cc   : > { %v1806_v37 = vrot.slane %v1798_v61, 7  ;;  %v1830_v55 = vrot.slane %v1798_v61, 1  ;;  %v1854_v59 = vpack.c.bf16 %v1798_v61, %v1797_v58  ;;  %vm6383_vm9 = vcmp.lt.s32.totalorder %v4693_v5, 1 }
 0x2cd   : > { %v4532_v49 = vpop.eup %4531  ;;  %v1841_v9 = vsel %vm6382_vm0, %v1831_v39, %v1832_v57  ;;  %v1817_v22 = vsel %vm6383_vm9, %v1807_v45, %v1808_v62  ;;  %vm6384_vm2 = vmmov %vm6383_vm9  ;;  %vm1761_vm0 = vcmp.gt.f32.partialorder %v5723_v27, 0.0 }
 0x2ce   : > { %v4534_v50 = vpop.eup %4533  ;;  %v1819_v54 = vsel %vm6384_vm2, %v1805_v30, %v1806_v37  ;;  %v3716_v24 = vadd.f32 -1.0, %v4532_v49  ;;  %2096 = vmatprep.mubr.bf16.mxu1 %v1854_v59  ;;  %v1842_v6 = vsel %vm6385_vm5, %v1830_v55, %v1831_v39  ;;  %v1843_v19 = vsel %vm6386_vm15, %v1829_v17, %v1830_v55  ;;  %vm6387_vm8 = vmmov %vm6384_vm2 }
 0x2cf   : > { %v4536_v48 = vpop.eup %4535  ;;  %v3714_v53 = vadd.f32 -1.0, %v4534_v50  ;;  %v3766_v29 = vpack.c.bf16 %v1842_v6, %v1843_v19  ;;  %v1818_v34 = vsel %vm6387_vm8, %v1806_v37, %v1807_v45  ;;  %vm1764_vm2 = vcmp.gt.f32.partialorder %v5726_v8, 0.0  ;;  %vm6388_vm9 = vmpackc.low %vm5535_vm10, %vm5541_vm11 }
 0x2d0   : > { %v4538_v10 = vpop.eup %4537  ;;  %v1803_v26 = vsel %vm1763_vm6, %v5721_v25, %v3716_v24  ;;  %v3717_v18 = vadd.f32 -1.0, %v4536_v48  ;;  %v3751_v28 = vpack.c.bf16 %v1817_v22, %v1818_v34  ;;  %vm1762_vm15 = vcmp.gt.f32.partialorder %v5729_v56, 0.0  ;;  %vm6389_vm8 = vmmov %vm6385_vm5 }
 0x2d1   : > { %v1811_v33 = vrot.slane %v1803_v26, 7  ;;  %v1801_v44 = vsel %vm1761_vm0, %v5723_v27, %v3714_v53  ;;  %v3715_v2 = vadd.f32 -1.0, %v4538_v10  ;;  %4193 = vmatprep.mubr.msk.bf16.mxu0 %vm6388_vm9, %v3766_v29  ;;  %v1835_v46 = vrot.slane %v1803_v26, 1  ;;  %vm6391_vm11 = vmmov %vm6385_vm5 }
 0x2d2   : > { %v1809_v42 = vrot.slane %v1801_v44, 7  ;;  %v1833_v23 = vrot.slane %v1801_v44, 1  ;;  %v1804_v25 = vsel %vm1764_vm2, %v5726_v8, %v3717_v18  ;;  %vm6390_vm10 = vcmp.lt.s32.totalorder %v4693_v5, 1  ;;  %vm6392_vm6 = vmmov %vm6385_vm5 }
 0x2d3   : > { %v1812_v43 = vrot.slane %v1804_v25, 7  ;;  %v1836_v58 = vrot.slane %v1804_v25, 1  ;;  %v1802_v40 = vsel %vm1762_vm15, %v5729_v56, %v3715_v2  ;;  %v1863_v45 = vpack.c.bf16 %v1804_v25, %v1803_v26  ;;  %vm6393_vm0 = vmmov %vm6385_vm5 }
 0x2d4   : > { %v1840_v27 = vsel %vm6389_vm8, %v1832_v57, %v1833_v23  ;;  %v1810_v39 = vrot.slane %v1802_v40, 7  ;;  %v1834_v3 = vrot.slane %v1802_v40, 1  ;;  %v1860_v7 = vpack.c.bf16 %v1802_v40, %v1801_v44  ;;  %vm6394_vm2 = vmpackc.low %vm5575_vm3, %vm5581_vm4 }
 0x2d5   : > { %v3771_v61 = vpack.c.bf16 %v1840_v27, %v1841_v9  ;;  %v1820_v41 = vsel %vm6390_vm10, %v1812_v43, %v1805_v30  ;;  %v1837_v37 = vsel %vm6391_vm11, %v1835_v46, %v1836_v58  ;;  %v1844_v8 = vsel %vm6392_vm6, %v1836_v58, %v1829_v17  ;;  %vm6395_vm15 = vmmov %vm6390_vm10 }
 0x2d6   : > { %v3746_v55 = vpack.c.bf16 %v1819_v54, %v1820_v41  ;;  %v1838_v56 = vsel %vm6385_vm5, %v1834_v3, %v1835_v46  ;;  %v1839_v57 = vsel %vm6393_vm0, %v1833_v23, %v1834_v3  ;;  %v3781_v59 = vpack.c.bf16 %v1844_v8, %v1837_v37  ;;  %vm6396_vm9 = vmmov %vm6390_vm10 }
 0x2d7   : > { %4194 = vmatmul.mubr.msk.bf16.vlgmr.msra.gmra.mrb[32].mxu0 %vm6394_vm2, %v3771_v61  ;;  %v3776_v30 = vpack.c.bf16 %v1838_v56, %v1839_v57  ;;  %v1815_v49 = vsel %vm6395_vm15, %v1809_v42, %v1810_v39  ;;  %v1816_v17 = vsel %vm6396_vm9, %v1808_v62, %v1809_v42  ;;  %vm6397_vm8 = vmmov %vm6396_vm9  ;;  %vm6401_vm11 = vnez %v6379_v35 }
 0x2d8   : > { %v1813_v9 = vsel %vm6397_vm8, %v1811_v33, %v1812_v43  ;;  %vm6398_vm10 = vmpackc.low %vm5408_vm12, %vm5414_vm13  ;;  %v3756_v4 = vpack.c.bf16 %v1815_v49, %v1816_v17  ;;  %vm6403_vm12 = vnez %v6353_v15  ;;  %vm6404_vm13 = vnez %v6355_v36  ;;  %v5826_v36 = vld [vmem:[%s6302_s6] ss:$0 sm:$0xff] }
 0x2d9   : > { %3747 = vmatmul.mubr.msk.bf16.vlgmr.msra.gmra.mrb[24].mxu1 %vm6398_vm10, %v3746_v55  ;;  %vm6399_vm4 = vmmov %vm6397_vm8  ;;  %vm6406_vm0 = vnez %v6357_v31  ;;  %vm6407_vm2 = vnez %v6359_v16  ;;  %vm6410_vm15 = vnez %v6363_v13 }
 0x2da   : > { %v1814_v63 = vsel %vm6399_vm4, %v1810_v39, %v1811_v33  ;;  %2104 = vmatprep.mubr.bf16.mxu1 %v1857_v21  ;;  %vm6400_vm3 = vmpackc.low %vm5588_vm14, %vm5592_vm7  ;;  %vm6409_vm7 = vnez %v6361_v60 }
 0x2db   : > { %4197 = vmatprep.mubr.msk.bf16.mxu0 %vm6400_vm3, %v3776_v30  ;;  %v3761_v62 = vpack.c.bf16 %v1813_v9, %v1814_v63  ;;  %vm6402_vm6 = vmpackc.low %vm5623_vm1, %vm6401_vm11 }
 0x2dc   : > { %vm6405_vm5 = vmpackc.low %vm6403_vm12, %vm6404_vm13  ;;  %vm6412_vm13 = vcmask 523264  }
 0x2dd   : > { %vm6408_vm14 = vmpackc.low %vm6406_vm0, %vm6407_vm2 }
 0x2de   : > { %vm6411_vm1 = vmpackc.low %vm6409_vm7, %vm6410_vm15  ;;  %vm6418_vm15 = vcmp.lt.s32.totalorder %v4693_v5, 1 }
 0x2df   : > { %4198 = vmatmul.mubr.msk.bf16.gmra.mrb[36].mxu0 %vm6402_vm6, %v3781_v59 }
 0x2e1   : > { %3752 = vmatmul.mubr.msk.bf16.gmra.mrb[28].mxu1 %vm6405_vm5, %v3751_v28  ;;  %vm6413_vm5 = vmmov %vm6412_vm13 }
 0x2e2   : > { %2112 = vmatprep.mubr.bf16.mxu1 %v1860_v7  ;;  %vm6414_vm0 = vmmov %vm6413_vm5 }
 0x2e3   : > { %vm6415_vm2 = vmmov %vm6414_vm0 }
 0x2e4   : > { %vm6417_vm7 = vmmov %vm6414_vm0 }
 0x2e9   : > { %3757 = vmatmul.mubr.msk.bf16.gmra.mrb[32].mxu1 %vm6408_vm14, %v3756_v4  ;;  %vm6416_vm14 = vmmov %vm6414_vm0 }
 0x2ea   : > { %2120 = vmatprep.mubr.bf16.mxu1 %v1863_v45 }
 0x2f1   : > { %3762 = vmatmul.mubr.msk.bf16.gmra.mrb[36].mxu1 %vm6411_vm1, %v3761_v62  ;;  %vm6419_vm1 = vmmov %vm6414_vm0 }
 0x3aa   : > { %v4195_v20 = vpop.f32.mrb[32].mxu0 }
 0x3ab   : > { %v2163_v15 = vpop.f32.mrb[33].mxu0 }
 0x3ac   : > { %v4035_v32 = vpop.f32.mrb[24].mxu1  ;;  %v4196_v14 = vpop.f32.mrb[34].mxu0 }
 0x3ad   : > { %v4036_v31 = vpop.f32.mrb[25].mxu1  ;;  %v2166_v51 = vpop.f32.mrb[35].mxu0 }
 0x3ae   : > { %v4037_v16 = vadd.f32 %v4036_v31, %v4035_v32  ;;  %v4038_v52 = vpop.f32.mrb[26].mxu1 }
 0x3af   : > { %v4039_v35 = vpop.f32.mrb[27].mxu1 }
 0x3b0   : > { %v2099_v60 = vadd.f32 %v4037_v16, %v5826_v36  ;;  %v4040_v21 = vadd.f32 %v4039_v35, %v4038_v52 }
 0x3b2   : > { %v2164_v13 = vadd.f32 %v2163_v15, %v2099_v60  ;;  %v2102_v22 = vadd.f32 %v4040_v21, %v5826_v36  ;;  %v4199_v50 = vpop.f32.mrb[36].mxu0 }
 0x3b3   : > { %v2179_v19 = vpop.f32.mrb[37].mxu0 }
 0x3b4   : > { %v2202_v54 = vmin.f32 %v2164_v13, 0.0  ;;  %v2167_v24 = vadd.f32 %v2166_v51, %v2102_v22  ;;  %v4041_v6 = vpop.f32.mrb[28].mxu1  ;;  %v4200_v53 = vpop.f32.mrb[38].mxu0  ;;  %vm2194_vm9 = vcmp.gt.f32.partialorder %v2164_v13, 0.0 }
 0x3b5   : > { %v4042_v48 = vpop.f32.mrb[29].mxu1  ;;  %v2182_v26 = vpop.f32.mrb[39].mxu0 }
 0x3b6   : > { %v2203_v29 = vmin.f32 %v2167_v24, 0.0  ;;  %v4043_v34 = vadd.f32 %v4042_v48, %v4041_v6  ;;  %v4044_v10 = vpop.f32.mrb[30].mxu1  ;;  %v2210_v18 = vmul.f32 1.442695, %v2202_v54  ;;  %vm2195_vm8 = vcmp.gt.f32.partialorder %v2167_v24, 0.0 }
 0x3b7   : > { %v4045_v28 = vpop.f32.mrb[31].mxu1 }
 0x3b8   : > { %v2107_v33 = vadd.f32 %v4043_v34, %v5826_v36  ;;  %v4046_v44 = vadd.f32 %v4045_v28, %v4044_v10  ;;  %4539 = vpow2.f32 %v2210_v18  ;;  %v2212_v2 = vmul.f32 1.442695, %v2203_v29 }
 0x3ba   : > { %v2172_v46 = vadd.f32 %v4195_v20, %v2107_v33  ;;  %v2110_v42 = vadd.f32 %v4046_v44, %v5826_v36  ;;  %4541 = vpow2.f32 %v2212_v2 }
 0x3bc   : > { %v2204_v23 = vmin.f32 %v2172_v46, 0.0  ;;  %v2175_v25 = vadd.f32 %v4196_v14, %v2110_v42  ;;  %v4047_v43 = vpop.f32.mrb[32].mxu1  ;;  %vm2196_vm10 = vcmp.gt.f32.partialorder %v2172_v46, 0.0 }
 0x3bd   : > { %v4048_v58 = vpop.f32.mrb[33].mxu1 }
 0x3be   : > { %v2205_v40 = vmin.f32 %v2175_v25, 0.0  ;;  %v4049_v45 = vadd.f32 %v4048_v58, %v4047_v43  ;;  %v4050_v27 = vpop.f32.mrb[34].mxu1  ;;  %v2214_v39 = vmul.f32 1.442695, %v2204_v23  ;;  %vm2197_vm4 = vcmp.gt.f32.partialorder %v2175_v25, 0.0  ;;  %v4367_v23 = vld [vmem:[%s6303_s7] sm:$0xff]  }
 0x3bf   : > { %v4051_v3 = vpop.f32.mrb[35].mxu1  ;;  %v4368_v43 = vld [vmem:[%s6303_s7 + $0x8] sm:$0xff]   ;;  %v4369_v58 = vld [vmem:[%s6303_s7 + $0x10] sm:$0xff]  }
 0x3c0   : > { %v2115_v7 = vadd.f32 %v4049_v45, %v5826_v36  ;;  %v4052_v61 = vadd.f32 %v4051_v3, %v4050_v27  ;;  %4543 = vpow2.f32 %v2214_v39  ;;  %v2216_v41 = vmul.f32 1.442695, %v2205_v40  ;;  %v4370_v40 = vld [vmem:[%s6303_s7 + $0x18] sm:$0xff]   ;;  %v4371_v45 = vld [vmem:[%s6303_s7 + $0x20] sm:$0xff]   ;;  %v4372_v27 = vld [vmem:[%s6303_s7 + $0x28] sm:$0xff]  }
 0x3c1   : > { %v4373_v39 = vld [vmem:[%s6303_s7 + $0x30] sm:$0xff]   ;;  %v4374_v3 = vld [vmem:[%s6303_s7 + $0x38] sm:$0xff]  }
 0x3c2   : > { %v4540_v37 = vpop.eup %4539  ;;  %v2180_v8 = vadd.f32 %v2179_v19, %v2115_v7  ;;  %v2118_v55 = vadd.f32 %v4052_v61, %v5826_v36  ;;  %4545 = vpow2.f32 %v2216_v41  ;;  %v4375_v7 = vld [vmem:[%s6303_s7 + $0x40] sm:$0xff]   ;;  %v4376_v61 = vld [vmem:[%s6303_s7 + $0x48] sm:$0xff]   ;;  %v4377_v41 = vld [vmem:[%s6303_s7 + $0x50] sm:$0xff]  }
 0x3c3   : > { %v3783_v56 = vadd.f32 -1.0, %v4540_v37 }
 0x3c4   : > { %v4542_v57 = vpop.eup %4541  ;;  %v2206_v59 = vmin.f32 %v2180_v8, 0.0  ;;  %v2183_v30 = vadd.f32 %v2182_v26, %v2118_v55  ;;  %v4053_v49 = vpop.f32.mrb[36].mxu1  ;;  %vm2198_vm3 = vcmp.gt.f32.partialorder %v2180_v8, 0.0 }
 0x3c5   : > { %v4054_v17 = vpop.f32.mrb[37].mxu1  ;;  %v5834_v9 = vsel %vm2194_vm9, %v2164_v13, %v3783_v56  ;;  %v3784_v4 = vadd.f32 -1.0, %v4542_v57  ;;  %vm6420_vm9 = vmmov %vm6414_vm0 }
 0x3c6   : > { %v2207_v63 = vmin.f32 %v2183_v30, 0.0  ;;  %v4055_v62 = vadd.f32 %v4054_v17, %v4053_v49  ;;  %v4056_v20 = vpop.f32.mrb[38].mxu1  ;;  %2250 = vrot.lane.b32.xlu0 %v5834_v9, %s4585_s28  ;;  %v2218_v32 = vmul.f32 1.442695, %v2206_v59  ;;  %vm2199_vm11 = vcmp.gt.f32.partialorder %v2183_v30, 0.0  ;;  %v4378_v17 = vld [vmem:[%s6303_s7 + $0x58] sm:$0xff]  }
 0x3c7   : > { %v4057_v15 = vpop.f32.mrb[39].mxu1  ;;  %v5838_v31 = vsel %vm2195_vm8, %v2167_v24, %v3784_v4 }
 0x3c8   : > { %v2123_v14 = vadd.f32 %v4055_v62, %v5826_v36  ;;  %v4058_v16 = vadd.f32 %v4057_v15, %v4056_v20  ;;  %2252 = vrot.lane.b32.xlu1 %v5838_v31, %s4585_s28  ;;  %4547 = vpow2.f32 %v2218_v32  ;;  %v2220_v52 = vmul.f32 1.442695, %v2207_v63 }
 0x3ca   : > { %v4544_v51 = vpop.eup %4543  ;;  %v2188_v35 = vadd.f32 %v4199_v50, %v2123_v14  ;;  %v2126_v60 = vadd.f32 %v4058_v16, %v5826_v36  ;;  %4549 = vpow2.f32 %v2220_v52 }
 0x3cb   : > { %v3785_v21 = vadd.f32 -1.0, %v4544_v51 }
 0x3cc   : > { %v4546_v13 = vpop.eup %4545  ;;  %v2208_v22 = vmin.f32 %v2188_v35, 0.0  ;;  %v2191_v54 = vadd.f32 %v4200_v53, %v2126_v60  ;;  %vm2200_vm6 = vcmp.gt.f32.partialorder %v2188_v35, 0.0 }
 0x3cd   : > { %v5844_v24 = vsel %vm2196_vm10, %v2172_v46, %v3785_v21  ;;  %v3786_v6 = vadd.f32 -1.0, %v4546_v13 }
 0x3ce   : > { %v2209_v19 = vmin.f32 %v2191_v54, 0.0  ;;  %2254 = vrot.lane.b32.xlu0 %v5844_v24, %s4585_s28  ;;  %v2222_v48 = vmul.f32 1.442695, %v2208_v22  ;;  %vm2201_vm12 = vcmp.gt.f32.partialorder %v2191_v54, 0.0 }
 0x3cf   : > { %v5848_v29 = vsel %vm2197_vm4, %v2175_v25, %v3786_v6  ;;  %v4586_v25 = vmov 0   ;;  %vm6425_vm4 = vcmp.lt.s32.totalorder %v4693_v5, 7 }
 0x3d0   : > { %2256 = vrot.lane.b32.xlu1 %v5848_v29, %s4585_s28  ;;  %4551 = vpow2.f32 %v2222_v48  ;;  %v2224_v36 = vmul.f32 1.442695, %v2209_v19  ;;  %2478 = vmatprep.subr.bf16.mxu1 %v4586_v25 }
 0x3d1   : > { %2479 = vmatpush1.bf16.msra.mxu1 %v4367_v23 }
 0x3d2   : > { %v4548_v50 = vpop.eup %4547  ;;  %4553 = vpow2.f32 %v2224_v36  ;;  %2480 = vmatprep.subr.bf16.mxu1 %v4586_v25 }
 0x3d3   : > { %v3787_v53 = vadd.f32 -1.0, %v4548_v50  ;;  %v2310_v50 = vand.u32 3, %v4710_v11 }
 0x3d4   : > { %v4550_v34 = vpop.eup %4549 }
 0x3d5   : > { %v5852_v10 = vsel %vm2198_vm3, %v2180_v8, %v3787_v53  ;;  %v3788_v26 = vadd.f32 -1.0, %v4550_v34  ;;  %2481 = vmatpush1.bf16.msra.mxu1 %v4368_v43  ;;  %vm5941_vm10 = vcmp.eq.s32.totalorder %v2310_v50, 3  ;;  %vm6426_vm3 = vmmov %vm6425_vm4  ;;  %v2311_v43 = vand.u32 3, %v5023_v12  ;;  %v4399_v34 = vld [vmem:[%s6305_s9 + $0xa0] sm:$0xff]   ;;  %v4400_v53 = vld [vmem:[%s6305_s9 + $0xa8] sm:$0xff]  }
 0x3d6   : > { %2258 = vrot.lane.b32.xlu0 %v5852_v10, %s4585_s28  ;;  %2482 = vmatprep.subr.bf16.mxu1 %v4586_v25 }
 0x3d7   : > { %v5856_v18 = vsel %vm2199_vm11, %v2183_v30, %v3788_v26  ;;  %vm6427_vm11 = vmmov %vm6418_vm15 }
 0x3d8   : > { %2260 = vrot.lane.b32.xlu1 %v5856_v18, %s4585_s28 }
 0x3d9   : > { %2483 = vmatpush1.bf16.msra.mxu1 %v4369_v58 }
 0x3da   : > { %v4552_v28 = vpop.eup %4551  ;;  %2484 = vmatprep.subr.bf16.mxu1 %v4586_v25 }
 0x3db   : > { %v3789_v33 = vadd.f32 -1.0, %v4552_v28 }
 0x3dc   : > { %v4554_v44 = vpop.eup %4553 }
 0x3dd   : > { %v5860_v2 = vsel %vm2200_vm6, %v2188_v35, %v3789_v33  ;;  %v3790_v46 = vadd.f32 -1.0, %v4554_v44  ;;  %2485 = vmatpush1.bf16.msra.mxu1 %v4370_v40  ;;  %vm6428_vm6 = vmmov %vm6414_vm0  ;;  %v3810_v40 = vld [vmem:[%s6306_s10] ss:$0 sm:$0xff] }
 0x3de   : > { %2262 = vrot.lane.b32.xlu0 %v5860_v2, %s4585_s28  ;;  %2486 = vmatprep.subr.bf16.mxu1 %v4586_v25 }
 0x3df   : > { %v5864_v42 = vsel %vm2201_vm12, %v2191_v54, %v3790_v46  ;;  %v2309_v54 = vand.u32 3, %v4693_v5  ;;  %v2312_v46 = vand.u32 3, %v4778_v47  ;;  %vm5958_vm12 = vcmp.eq.s32.totalorder %v2311_v43, 3 }
 0x3e0   : > { %2264 = vrot.lane.b32.xlu1 %v5864_v42, %s4585_s28 }
 0x3e1   : > { %2487 = vmatpush1.bf16.msra.mxu1 %v4371_v45  ;;  %vm5937_vm8 = vcmp.eq.s32.totalorder %v2309_v54, 3 }
 0x3e2   : > { %2488 = vmatprep.subr.bf16.mxu1 %v4586_v25 }
 0x3e5   : > { %2489 = vmatpush1.bf16.msra.mxu1 %v4372_v27 }
 0x3e6   : > { %2490 = vmatprep.subr.bf16.mxu1 %v4586_v25 }
 0x3e9   : > { %2491 = vmatpush1.bf16.msra.mxu1 %v4373_v39 }
 0x3ea   : > { %2492 = vmatprep.subr.bf16.mxu1 %v4586_v25 }
 0x3ed   : > { %2493 = vmatpush1.bf16.msra.mxu1 %v4374_v3 }
 0x3ee   : > { %2494 = vmatprep.subr.bf16.mxu1 %v4586_v25 }
 0x3f1   : > { %2495 = vmatpush1.bf16.msra.mxu1 %v4375_v7 }
 0x3f2   : > { %2496 = vmatprep.subr.bf16.mxu1 %v4586_v25 }
 0x3f5   : > { %2497 = vmatpush1.bf16.msra.mxu1 %v4376_v61 }
 0x3f6   : > { %2498 = vmatprep.subr.bf16.mxu1 %v4586_v25 }
 0x3f9   : > { %2499 = vmatpush1.bf16.msra.mxu1 %v4377_v41 }
 0x3fa   : > { %2500 = vmatprep.subr.bf16.mxu1 %v4586_v25 }
 0x3fd   : > { %2501 = vmatpush1.bf16.msra.mxu1 %v4378_v17 }
 0x438   : > { %v2251_v37 = vpop.permute.xlu0 %2250 }
 0x439   : > { %v2274_v8 = vmax.f32 %v5834_v9, %v2251_v37 }
 0x43a   : > { %v2253_v55 = vpop.permute.xlu1 %2252 }
 0x43b   : > { %2282 = vst.msk [vmem:[#allocation3] sm:$0xff] %vm6412_vm13, %v2274_v8  ;;  %v2275_v56 = vmax.f32 %v5838_v31, %v2253_v55  ;;  %vm5962_vm13 = vcmp.eq.s32.totalorder %v2312_v46, 3 }
 0x43d   : > { %2283 = vst.msk [vmem:[#allocation3 + $0x8] sm:$0xff] %vm6413_vm5, %v2275_v56  ;;  %vm6433_vm5 = vmmov %vm6427_vm11 }
 0x440   : > { %v2255_v57 = vpop.permute.xlu0 %2254 }
 0x441   : > { %v2276_v59 = vmax.f32 %v5844_v24, %v2255_v57 }
 0x442   : > { %v2257_v30 = vpop.permute.xlu1 %2256 }
 0x443   : > { %2284 = vst.msk [vmem:[#allocation3 + $0x10] sm:$0xff] %vm6414_vm0, %v2276_v59  ;;  %v2277_v49 = vmax.f32 %v5848_v29, %v2257_v30  ;;  %vm6434_vm0 = vmmov %vm6426_vm3 }
 0x444   : > { %v2290_v4 = vld [vmem:[#allocation3] ss:$2 sm:$0xff]  ;;  %v2298_v63 = vld [vmem:[#allocation3 + $0x1] ss:$2 sm:$0xff] }
 0x445   : > { %2285 = vst.msk [vmem:[#allocation3 + $0x18] sm:$0xff] %vm6415_vm2, %v2277_v49  ;;  %v2305_v15 = vmax.f32 %v2290_v4, %v2298_v63  ;;  %vm6435_vm2 = vmmov %vm6434_vm0 }
 0x447   : > { %v2317_v52 = vrot.slane %v2305_v15, 7  ;;  %v2333_v29 = vrot.slane %v2305_v15, 1 }
 0x448   : > { %v2259_v9 = vpop.permute.xlu0 %2258 }
 0x449   : > { %v2278_v62 = vmax.f32 %v5852_v10, %v2259_v9 }
 0x44a   : > { %v2261_v20 = vpop.permute.xlu1 %2260 }
 0x44b   : > { %2286 = vst.msk [vmem:[#allocation3 + $0x20] sm:$0xff] %vm6416_vm14, %v2278_v62  ;;  %v2279_v32 = vmax.f32 %v5856_v18, %v2261_v20  ;;  %vm6436_vm14 = vmmov %vm6433_vm5  ;;  %v4398_v62 = vld [vmem:[%s6305_s9 + $0x98] sm:$0xff]   ;;  %v4401_v20 = vld [vmem:[%s6305_s9 + $0xb0] sm:$0xff]  }
 0x44c   : > { %v2292_v31 = vld [vmem:[#allocation3 + $0x10] ss:$2 sm:$0xff]  ;;  %v2300_v14 = vld [vmem:[#allocation3 + $0x11] ss:$2 sm:$0xff] }
 0x44d   : > { %2287 = vst.msk [vmem:[#allocation3 + $0x28] sm:$0xff] %vm6417_vm7, %v2279_v32  ;;  %v2306_v16 = vmax.f32 %v2292_v31, %v2300_v14  ;;  %vm5979_vm7 = vcmp.eq.s32.totalorder %v2309_v54, 0  ;;  %v4383_v54 = vld [vmem:[%s6305_s9 + $0x50] sm:$0xff]  }
 0x44f   : > { %v4273_v51 = vpack.i.bf16 %v2306_v16, %v2305_v15  ;;  %v2318_v35 = vrot.slane %v2306_v16, 7  ;;  %v2334_v24 = vrot.slane %v2306_v16, 1 }
 0x450   : > { %v2263_v60 = vpop.permute.xlu0 %2262 }
 0x451   : > { %v2280_v21 = vmax.f32 %v5860_v2, %v2263_v60  ;;  %4274 = vrot.lane.b32.xlu0 %v4273_v51, %s4585_s28  ;;  %v2323_v13 = vsel %vm6418_vm15, %v2317_v52, %v2318_v35  ;;  %v2339_v26 = vsel %vm6425_vm4, %v2333_v29, %v2334_v24  ;;  %vm5983_vm15 = vcmp.eq.s32.totalorder %v2310_v50, 0  ;;  %vm6442_vm4 = vmmov %vm6419_vm1  ;;  %v4379_v60 = vld [vmem:[%s6305_s9 + $0x40] sm:$0xff]   ;;  %v4390_v50 = vld [vmem:[%s6305_s9 + $0x28] sm:$0xff]  }
 0x452   : > { %v2265_v22 = vpop.permute.xlu1 %2264  ;;  %v2341_v11 = vsel %vm5937_vm8, 0.0, %v2339_v26  ;;  %v2326_v17 = vsel %vm5983_vm15, 0.0, %v2323_v13  ;;  %v4381_v13 = vld [vmem:[%s6305_s9 + $0x48] sm:$0xff]   ;;  %4071 = vmatprep.subr.bf16.mxu0 %v4379_v60  ;;  %v4392_v26 = vld [vmem:[%s6305_s9 + $0x30] sm:$0xff]  }
 0x453   : > { %2288 = vst.msk [vmem:[#allocation3 + $0x30] sm:$0xff] %vm6419_vm1, %v2280_v21  ;;  %v2281_v6 = vmax.f32 %v5864_v42, %v2265_v22  ;;  %v4380_v21 = vld [vmem:[%s6305_s9] sm:$0xff]   ;;  %v4382_v22 = vld [vmem:[%s6305_s9 + $0x8] sm:$0xff]  }
 0x454   : > { %v2294_v19 = vld [vmem:[#allocation3 + $0x20] ss:$2 sm:$0xff]  ;;  %v2302_v48 = vld [vmem:[#allocation3 + $0x21] ss:$2 sm:$0xff]  ;;  %4072 = vmatpush3.bf16.msra.mxu0 %v4380_v21 }
 0x455   : > { %2289 = vst.msk [vmem:[#allocation3 + $0x38] sm:$0xff] %vm6420_vm9, %v2281_v6  ;;  %v2307_v36 = vmax.f32 %v2294_v19, %v2302_v48  ;;  %vm6441_vm9 = vmmov %vm6419_vm1  ;;  %4073 = vmatprep.subr.bf16.mxu0 %v4381_v13  ;;  %v4385_v6 = vld [vmem:[%s6305_s9 + $0x58] sm:$0xff]   ;;  %v4387_v48 = vld [vmem:[%s6305_s9 + $0x60] sm:$0xff]  }
 0x456   : > { %v4386_v19 = vld [vmem:[%s6305_s9 + $0x18] sm:$0xff]  }
 0x457   : > { %v2335_v10 = vrot.slane %v2307_v36, 1  ;;  %v2319_v18 = vrot.slane %v2307_v36, 7 }
 0x458   : > { %4074 = vmatpush3.bf16.msra.mxu0 %v4382_v22 }
 0x459   : > { %v2338_v28 = vsel %vm6426_vm3, %v2334_v24, %v2335_v10  ;;  %v2322_v33 = vsel %vm6427_vm11, %v2318_v35, %v2319_v18  ;;  %vm5994_vm3 = vcmp.eq.s32.totalorder %v2311_v43, 0  ;;  %vm5998_vm11 = vcmp.eq.s32.totalorder %v2312_v46, 0  ;;  %v4384_v24 = vld [vmem:[%s6305_s9 + $0x10] sm:$0xff]   ;;  %4075 = vmatprep.subr.bf16.mxu0 %v4383_v54 }
 0x45a   : > { %v2342_v44 = vsel %vm5941_vm10, 0.0, %v2338_v28  ;;  %v2327_v14 = vsel %vm5994_vm3, 0.0, %v2322_v33  ;;  %v4394_v28 = vld [vmem:[%s6305_s9 + $0x38] sm:$0xff]   ;;  %v6060_v33 = vld [vmem:[%s6305_s9 + $0x80] sm:$0xff]  }
 0x45b   : > { %v2366_v2 = vpack.c.bf16 %v2342_v44, %v2341_v11  ;;  %v3791_v11 = vld [vmem:[%s6304_s8] ss:$0 sm:$0xff] }
 0x45c   : > { %v2296_v42 = vld [vmem:[#allocation3 + $0x30] ss:$2 sm:$0xff]  ;;  %v2304_v23 = vld [vmem:[#allocation3 + $0x31] ss:$2 sm:$0xff]  ;;  %4076 = vmatpush3.bf16.msra.mxu0 %v4384_v24 }
 0x45d   : > { %3804 = vmatprep.mubr.msk.bf16.mxu1 %vm6428_vm6, %v2366_v2  ;;  %v2308_v58 = vmax.f32 %v2296_v42, %v2304_v23  ;;  %vm6447_vm6 = vmmov %vm6419_vm1  ;;  %4077 = vmatprep.subr.bf16.mxu0 %v4385_v6 }
 0x45f   : > { %v4278_v45 = vpack.i.bf16 %v2308_v58, %v2307_v36  ;;  %v2320_v27 = vrot.slane %v2308_v58, 7  ;;  %v2336_v39 = vrot.slane %v2308_v58, 1  ;;  %v4389_v36 = vld [vmem:[%s6305_s9 + $0x68] sm:$0xff]  }
 0x460   : > { %4078 = vmatpush3.bf16.msra.mxu0 %v4386_v19 }
 0x461   : > { %4279 = vrot.lane.b32.xlu1 %v4278_v45, %s4585_s28  ;;  %v2324_v47 = vsel %vm6433_vm5, %v2320_v27, %v2317_v52  ;;  %v2337_v12 = vsel %vm6434_vm0, %v2335_v10, %v2336_v39  ;;  %v2340_v7 = vsel %vm6435_vm2, %v2336_v39, %v2333_v29  ;;  %v2321_v61 = vsel %vm6436_vm14, %v2319_v18, %v2320_v27  ;;  %vm6448_vm5 = vmmov %vm6419_vm1  ;;  %v4388_v29 = vld [vmem:[%s6305_s9 + $0x20] sm:$0xff]   ;;  %v4391_v10 = vld [vmem:[%s6305_s9 + $0x70] sm:$0xff]   ;;  %s4587_s28 = smov 96  }
 0x462   : > { %v2343_v41 = vsel %vm5958_vm12, 0.0, %v2337_v12  ;;  %v2344_v37 = vsel %vm5962_vm13, 0.0, %v2340_v7  ;;  %v2325_v49 = vsel %vm5979_vm7, 0.0, %v2324_v47  ;;  %v2328_v16 = vsel %vm5998_vm11, 0.0, %v2321_v61  ;;  %4079 = vmatprep.subr.bf16.mxu0 %v4387_v48  ;;  %v4393_v18 = vld [vmem:[%s6305_s9 + $0x78] sm:$0xff]  }
 0x463   : > { %v2368_v8 = vpack.c.bf16 %v2344_v37, %v2343_v41 }
 0x464   : > { %4080 = vmatpush3.bf16.msra.mxu0 %v4388_v29 }
 0x465   : > { %4081 = vmatprep.subr.bf16.mxu0 %v4389_v36 }
 0x468   : > { %4082 = vmatpush3.bf16.msra.mxu0 %v4390_v50 }
 0x469   : > { %4083 = vmatprep.subr.bf16.mxu0 %v4391_v10 }
 0x46c   : > { %4084 = vmatpush3.bf16.msra.mxu0 %v4392_v26 }
 0x46d   : > { %4085 = vmatprep.subr.bf16.mxu0 %v4393_v18 }
 0x470   : > { %4086 = vmatpush3.bf16.msra.mxu0 %v4394_v28 }
 0x471   : > { %4201 = vmatprep.subr.bf16.mxu0 %v6060_v33 }
 0x4c3   : > { %v4275_v57 = vpop.permute.xlu0 %4274 }
 0x4c4   : > { %v4277_v59 = vunpack.i.h.bf16 %v4275_v57  ;;  %v4276_v30 = vunpack.i.l.bf16 %v4275_v57 }
 0x4c6   : > { %v2362_v9 = vsel %vm6419_vm1, %v2326_v17, %v4277_v59  ;;  %v2361_v4 = vsel %vm6441_vm9, %v2325_v49, %v4276_v30  ;;  %vm6449_vm1 = vcmp.lt.s32.totalorder %v4693_v5, 7 }
 0x4c7   : > { %v2365_v63 = vpack.c.bf16 %v2362_v9, %v2361_v4 }
 0x4c9   : > { %2511 = vmatmul.mubr.bf16.vlgmr.msra.gmra.mrb[40].mxu1 %v2365_v63 }
 0x4ca   : > { %3805 = vmatprep.mubr.msk.bf16.mxu1 %vm6442_vm4, %v2368_v8 }
 0x4d3   : > { %v4280_v32 = vpop.permute.xlu1 %4279 }
 0x4d4   : > { %v4282_v15 = vunpack.i.h.bf16 %v4280_v32  ;;  %v4281_v31 = vunpack.i.l.bf16 %v4280_v32 }
 0x4d6   : > { %v2363_v52 = vsel %vm6447_vm6, %v2327_v14, %v4281_v31  ;;  %v2364_v51 = vsel %vm6448_vm5, %v2328_v16, %v4282_v15  ;;  %vm3835_vm6 = vmneg %vm5983_vm15 }
 0x4d7   : > { %v2367_v35 = vpack.c.bf16 %v2364_v51, %v2363_v52  ;;  %vm3836_vm5 = vmneg %vm5979_vm7 }
 0x4d8   : > { %vm6453_vm15 = vmmov %vm6449_vm1 }
 0x4d9   : > { %2519 = vmatmul.mubr.bf16.gmra.mrb[44].mxu1 %v2367_v35  ;;  %vm3837_vm7 = vmpackc.low %vm3835_vm6, %vm3836_vm5 }
 0x4da   : > { %3095 = vmatprep.mubr.bf16.mxu1 %v4586_v25  ;;  %vm3841_vm6 = vmneg %vm5994_vm3 }
 0x4db   : > { %vm3845_vm5 = vmneg %vm5941_vm10 }
 0x4dc   : > { %vm3851_vm10 = vmneg %vm5958_vm12 }
 0x59c   : > { %v2512_v44 = vpop.f32.mrb[40].mxu1 }
 0x59d   : > { %v2513_v2 = vadd.f32 %v3791_v11, %v2512_v44  ;;  %v2514_v46 = vpop.f32.mrb[41].mxu1 }
 0x59e   : > { %v2515_v42 = vpop.f32.mrb[42].mxu1 }
 0x59f   : > { %v2531_v23 = vmin.f32 %v2513_v2, 0.0  ;;  %v2516_v43 = vadd.f32 %v3791_v11, %v2515_v42  ;;  %v2517_v58 = vpop.f32.mrb[43].mxu1  ;;  %vm2527_vm0 = vcmp.gt.f32.partialorder %v2513_v2, 0.0  ;;  %v4397_v42 = vld [vmem:[%s6305_s9 + $0x90] sm:$0xff]  }
 0x5a1   : > { %v2535_v45 = vmul.f32 1.442695, %v2531_v23  ;;  %v2532_v27 = vmin.f32 %v2516_v43, 0.0  ;;  %vm2528_vm2 = vcmp.gt.f32.partialorder %v2516_v43, 0.0 }
 0x5a3   : > { %4555 = vpow2.f32 %v2535_v45  ;;  %v2537_v39 = vmul.f32 1.442695, %v2532_v27 }
 0x5a5   : > { %4557 = vpow2.f32 %v2537_v39 }
 0x5ac   : > { %v2520_v47 = vpop.f32.mrb[44].mxu1 }
 0x5ad   : > { %v4556_v12 = vpop.eup %4555  ;;  %v2521_v7 = vadd.f32 %v3791_v11, %v2520_v47  ;;  %v2522_v61 = vpop.f32.mrb[45].mxu1 }
 0x5ae   : > { %v3806_v41 = vadd.f32 -1.0, %v4556_v12  ;;  %v2523_v37 = vpop.f32.mrb[46].mxu1 }
 0x5af   : > { %v4558_v8 = vpop.eup %4557  ;;  %v2533_v57 = vmin.f32 %v2521_v7, 0.0  ;;  %v2524_v59 = vadd.f32 %v3791_v11, %v2523_v37  ;;  %v2525_v30 = vpop.f32.mrb[47].mxu1  ;;  %vm2529_vm9 = vcmp.gt.f32.partialorder %v2521_v7, 0.0 }
 0x5b0   : > { %v2547_v49 = vsel %vm2527_vm0, %v2513_v2, %v3806_v41  ;;  %v3807_v17 = vadd.f32 -1.0, %v4558_v8  ;;  %vm6450_vm0 = vmmov %vm6436_vm14  ;;  %v4396_v2 = vld [vmem:[%s6305_s9 + $0x88] sm:$0xff]  }
 0x5b1   : > { %v2539_v9 = vmul.f32 1.442695, %v2533_v57  ;;  %v2551_v4 = vrot.slane %v2547_v49, 7  ;;  %v2563_v63 = vrot.slane %v2547_v49, 1  ;;  %v2534_v15 = vmin.f32 %v2524_v59, 0.0 }
 0x5b2   : > { %v2548_v32 = vsel %vm2528_vm2, %v2516_v43, %v3807_v17  ;;  %vm2530_vm4 = vcmp.gt.f32.partialorder %v2524_v59, 0.0  ;;  %vm6451_vm2 = vmmov %vm6449_vm1 }
 0x5b3   : > { %v2552_v31 = vrot.slane %v2548_v32, 7  ;;  %v2564_v14 = vrot.slane %v2548_v32, 1  ;;  %4559 = vpow2.f32 %v2539_v9  ;;  %v2576_v16 = vpack.c.bf16 %v2548_v32, %v2547_v49 }
 0x5b4   : > { %v2541_v52 = vmul.f32 1.442695, %v2534_v15 }
 0x5b5   : > { %v2557_v51 = vsel %vm6436_vm14, %v2551_v4, %v2552_v31  ;;  %2812 = vmatprep.mubr.bf16.mxu0 %v2576_v16  ;;  %v2569_v35 = vsel %vm6449_vm1, %v2563_v63, %v2564_v14  ;;  %vm6452_vm14 = vmmov %vm6450_vm0 }
 0x5b6   : > { %4561 = vpow2.f32 %v2541_v52 }
 0x5bd   : > { %v4560_v60 = vpop.eup %4559 }
 0x5be   : > { %v3808_v21 = vadd.f32 -1.0, %v4560_v60 }
 0x5c0   : > { %v4562_v13 = vpop.eup %4561  ;;  %v2549_v22 = vsel %vm2529_vm9, %v2521_v7, %v3808_v21  ;;  %vm6454_vm9 = vmmov %vm6450_vm0 }
 0x5c1   : > { %v2553_v54 = vrot.slane %v2549_v22, 7  ;;  %v2565_v24 = vrot.slane %v2549_v22, 1  ;;  %v3809_v6 = vadd.f32 -1.0, %v4562_v13 }
 0x5c3   : > { %v2550_v19 = vsel %vm2530_vm4, %v2524_v59, %v3809_v6  ;;  %v2556_v48 = vsel %vm6450_vm0, %v2552_v31, %v2553_v54  ;;  %v2568_v29 = vsel %vm6451_vm2, %v2564_v14, %v2565_v24  ;;  %vm3840_vm4 = vmneg %vm5998_vm11 }
 0x5c4   : > { %v2554_v36 = vrot.slane %v2550_v19, 7  ;;  %v2566_v50 = vrot.slane %v2550_v19, 1  ;;  %v2579_v10 = vpack.c.bf16 %v2550_v19, %v2549_v22  ;;  %v3848_v26 = vpack.c.bf16 %v2568_v29, %v2569_v35  ;;  %vm3846_vm0 = vmneg %vm5937_vm8 }
 0x5c5   : > { %vm3842_vm2 = vmpackc.low %vm3840_vm4, %vm3841_vm6 }
 0x5c6   : > { %v2558_v18 = vsel %vm6452_vm14, %v2554_v36, %v2551_v4  ;;  %v2567_v56 = vsel %vm6449_vm1, %v2565_v24, %v2566_v50  ;;  %v2570_v55 = vsel %vm6453_vm15, %v2566_v50, %v2563_v63  ;;  %v2555_v28 = vsel %vm6454_vm9, %v2553_v54, %v2554_v36  ;;  %vm3847_vm11 = vmpackc.low %vm3845_vm5, %vm3846_vm0 }
 0x5c7   : > { %v3838_v11 = vpack.c.bf16 %v2557_v51, %v2558_v18  ;;  %v3853_v44 = vpack.c.bf16 %v2570_v55, %v2567_v56  ;;  %v3843_v46 = vpack.c.bf16 %v2555_v28, %v2556_v48  ;;  %vm3850_vm8 = vmneg %vm5962_vm13  ;;  %v4403_v18 = vld [vmem:[%s6307_s11] ss:$16 sps:$4 sm:$0xff]   ;;  %v4405_v56 = vld [vmem:[%s6307_s11 + $0x4] ss:$16 sps:$4 sm:$0xff]   ;;  %vm2922_vm15 = vcmask 261120  }
 0x5c8   : > { %vm3852_vm3 = vmpackc.low %vm3850_vm8, %vm3851_vm10  ;;  %v4408_v55 = vld [vmem:[%s6307_s11 + $0x24] ss:$16 sps:$4 sm:$0xff]   ;;  %3063 = vmatprep.subr.bf16.mxu1 %v4405_v56  ;;  %v4406_v28 = vld [vmem:[%s6307_s11 + $0x20] ss:$16 sps:$4 sm:$0xff]  }
 0x5c9   : > { %3839 = vmatmul.mubr.msk.bf16.vlgmr.msra.gmra.mrb[40].mxu0 %vm3837_vm7, %v3838_v11  ;;  %3064 = vmatpush1.bf16.msra.mxu1 %v4403_v18  ;;  %v4411_v11 = vld [vmem:[%s6307_s11 + $0x44] ss:$16 sps:$4 sm:$0xff]   ;;  %vm6455_vm7 = vcmask 523264   ;;  %v4454_v18 = vld [vmem:[%s6309_s13 + $0xa8] sm:$0xff]  }
 0x5ca   : > { %4202 = vmatpush3.bf16.msra.mxu0 %v6060_v33  ;;  %2820 = vmatprep.mubr.bf16.mxu0 %v2579_v10  ;;  %v4402_v33 = vld [vmem:[%s6305_s9 + $0xb8] sm:$0xff]   ;;  %vm6456_vm9 = vmmov %vm6455_vm7  ;;  %v4455_v56 = vld [vmem:[%s6309_s13 + $0xf0] sm:$0xff]  }
 0x5cb   : > { %4203 = vmatprep.subr.bf16.mxu0 %v4396_v2  ;;  %3065 = vmatprep.subr.bf16.mxu1 %v4408_v55  ;;  %v4456_v55 = vld [vmem:[%s6309_s13 + $0xb0] sm:$0xff]  }
 0x5cd   : > { %3066 = vmatpush1.bf16.msra.mxu1 %v4406_v28  ;;  %v4457_v28 = vld [vmem:[%s6309_s13 + $0xf8] sm:$0xff]  }
 0x5ce   : > { %4204 = vmatpush3.bf16.msra.mxu0 %v4396_v2  ;;  %3067 = vmatprep.subr.bf16.mxu1 %v4411_v11  ;;  %v4414_v2 = vld [vmem:[%s6307_s11 + $0x64] ss:$16 sps:$4 sm:$0xff]   ;;  %v4458_v11 = vld [vmem:[%s6309_s13 + $0xb8] sm:$0xff]  }
 0x5cf   : > { %4205 = vmatprep.subr.bf16.mxu0 %v4397_v42 }
 0x5d1   : > { %3844 = vmatmul.mubr.msk.bf16.gmra.mrb[44].mxu0 %vm3842_vm2, %v3843_v46  ;;  %v4412_v46 = vld [vmem:[%s6307_s11 + $0x60] ss:$16 sps:$4 sm:$0xff]  }
 0x5d2   : > { %4206 = vmatpush3.bf16.msra.mxu0 %v4397_v42  ;;  %4217 = vmatprep.mubr.msk.bf16.mxu0 %vm3847_vm11, %v3848_v26 }
 0x5d3   : > { %4207 = vmatprep.subr.bf16.mxu0 %v4398_v62 }
 0x5d6   : > { %4208 = vmatpush3.bf16.msra.mxu0 %v4398_v62 }
 0x5d7   : > { %4209 = vmatprep.subr.bf16.mxu0 %v4399_v34 }
 0x5da   : > { %4210 = vmatpush3.bf16.msra.mxu0 %v4399_v34 }
 0x5db   : > { %4211 = vmatprep.subr.bf16.mxu0 %v4400_v53 }
 0x5de   : > { %4212 = vmatpush3.bf16.msra.mxu0 %v4400_v53 }
 0x5df   : > { %4213 = vmatprep.subr.bf16.mxu0 %v4401_v20 }
 0x5e2   : > { %4214 = vmatpush3.bf16.msra.mxu0 %v4401_v20 }
 0x5e3   : > { %4215 = vmatprep.subr.bf16.mxu0 %v4402_v33 }
 0x5e6   : > { %4216 = vmatpush3.bf16.msra.mxu0 %v4402_v33 }
 0x5e9   : > { %4218 = vmatmul.mubr.msk.bf16.vlgmr.msra.gmra.mrb[48].mxu0 %vm3852_vm3, %v3853_v44  ;;  %v4409_v44 = vld [vmem:[%s6307_s11 + $0x40] ss:$16 sps:$4 sm:$0xff]  }
 0x5ea   : > { %3068 = vmatpush1.bf16.msra.mxu1 %v4409_v44  ;;  %v2958_v44 = vld [vmem:[%s6308_s12] sm:$0xf] }
 0x5eb   : > { %3069 = vmatprep.subr.bf16.mxu1 %v4414_v2  ;;  %v2963_v2 = vrot.slane %v2958_v44, %v816_v0 }
 0x5ee   : > { %3070 = vmatpush1.bf16.msra.mxu1 %v4412_v46  ;;  %v2967_v46 = vrot.slane %v2958_v44, %v820_v38 }
 0x69c   : > { %v4087_v23 = vpop.f32.mrb[40].mxu0 }
 0x69d   : > { %v4088_v43 = vpop.f32.mrb[41].mxu0 }
 0x69e   : > { %v4089_v58 = vadd.f32 %v4088_v43, %v4087_v23  ;;  %v4090_v45 = vpop.f32.mrb[42].mxu0 }
 0x69f   : > { %v4091_v27 = vpop.f32.mrb[43].mxu0 }
 0x6a0   : > { %v4092_v39 = vadd.f32 %v4091_v27, %v4090_v45  ;;  %v2815_v57 = vadd.f32 %v4089_v58, %v3810_v40  ;;  %v4417_v58 = vld [vmem:[%s6307_s11 + $0xc] ss:$16 sps:$4 sm:$0xff]  }
 0x6a1   : > { %3104 = vmatprep.subr.bf16.mxu1 %v4417_v58 }
 0x6a2   : > { %v2818_v4 = vadd.f32 %v4092_v39, %v3810_v40 }
 0x6a4   : > { %v4093_v47 = vpop.f32.mrb[44].mxu0 }
 0x6a5   : > { %v4094_v12 = vpop.f32.mrb[45].mxu0 }
 0x6a6   : > { %v4095_v7 = vadd.f32 %v4094_v12, %v4093_v47  ;;  %v4096_v61 = vpop.f32.mrb[46].mxu0  ;;  %v4427_v47 = vld [vmem:[%s6309_s13 + $0x40] sm:$0xff]  }
 0x6a7   : > { %v4097_v41 = vpop.f32.mrb[47].mxu0  ;;  %v4428_v12 = vld [vmem:[%s6309_s13] sm:$0xff]   ;;  %4109 = vmatprep.subr.bf16.mxu0 %v4427_v47 }
 0x6a8   : > { %v4098_v3 = vadd.f32 %v4097_v41, %v4096_v61  ;;  %v2823_v37 = vadd.f32 %v4095_v7, %v3810_v40  ;;  %v4429_v7 = vld [vmem:[%s6309_s13 + $0x48] sm:$0xff]   ;;  %4110 = vmatpush3.bf16.msra.mxu0 %v4428_v12  ;;  %v4431_v41 = vld [vmem:[%s6309_s13 + $0x50] sm:$0xff]  }
 0x6a9   : > { %v4430_v61 = vld [vmem:[%s6309_s13 + $0x8] sm:$0xff]   ;;  %4111 = vmatprep.subr.bf16.mxu0 %v4429_v7 }
 0x6aa   : > { %v2826_v49 = vadd.f32 %v4098_v3, %v3810_v40  ;;  %v4432_v3 = vld [vmem:[%s6309_s13 + $0x10] sm:$0xff]   ;;  %v4433_v40 = vld [vmem:[%s6309_s13 + $0x58] sm:$0xff]  }
 0x6ac   : > { %4112 = vmatpush3.bf16.msra.mxu0 %v4430_v61 }
 0x6ad   : > { %4113 = vmatprep.subr.bf16.mxu0 %v4431_v41 }
 0x6b0   : > { %4114 = vmatpush3.bf16.msra.mxu0 %v4432_v3 }
 0x6b1   : > { %4115 = vmatprep.subr.bf16.mxu0 %v4433_v40 }
 0x6bc   : > { %v4219_v8 = vpop.f32.mrb[48].mxu0 }
 0x6bd   : > { %v2872_v59 = vadd.f32 %v4219_v8, %v2823_v37  ;;  %v2863_v30 = vpop.f32.mrb[49].mxu0  ;;  %v4434_v37 = vld [vmem:[%s6309_s13 + $0x18] sm:$0xff]   ;;  %v4436_v8 = vld [vmem:[%s6309_s13 + $0x60] sm:$0xff]  }
 0x6be   : > { %v2864_v17 = vadd.f32 %v2863_v30, %v2815_v57  ;;  %v4220_v9 = vpop.f32.mrb[50].mxu0  ;;  %4116 = vmatpush3.bf16.msra.mxu0 %v4434_v37  ;;  %v4438_v57 = vld [vmem:[%s6309_s13 + $0x20] sm:$0xff]   ;;  %v4442_v30 = vld [vmem:[%s6309_s13 + $0x28] sm:$0xff]  }
 0x6bf   : > { %v2884_v63 = vmin.f32 %v2872_v59, 0.0  ;;  %v2875_v32 = vadd.f32 %v4220_v9, %v2826_v49  ;;  %v2866_v15 = vpop.f32.mrb[51].mxu0  ;;  %vm2880_vm14 = vcmp.gt.f32.partialorder %v2872_v59, 0.0  ;;  %4117 = vmatprep.subr.bf16.mxu0 %v4436_v8 }
 0x6c0   : > { %v2882_v31 = vmin.f32 %v2864_v17, 0.0  ;;  %v2867_v14 = vadd.f32 %v2866_v15, %v2818_v4  ;;  %vm2878_vm12 = vcmp.gt.f32.partialorder %v2864_v17, 0.0 }
 0x6c1   : > { %v2890_v16 = vmul.f32 1.442695, %v2884_v63  ;;  %v2885_v52 = vmin.f32 %v2875_v32, 0.0  ;;  %vm2881_vm1 = vcmp.gt.f32.partialorder %v2875_v32, 0.0 }
 0x6c2   : > { %v2886_v51 = vmul.f32 1.442695, %v2882_v31  ;;  %v2883_v35 = vmin.f32 %v2867_v14, 0.0  ;;  %vm2879_vm13 = vcmp.gt.f32.partialorder %v2867_v14, 0.0  ;;  %4118 = vmatpush3.bf16.msra.mxu0 %v4438_v57  ;;  %v4420_v31 = vld [vmem:[%s6307_s11 + $0x2c] ss:$16 sps:$4 sm:$0xff]  }
 0x6c3   : > { %4563 = vpow2.f32 %v2890_v16  ;;  %v2892_v60 = vmul.f32 1.442695, %v2885_v52  ;;  %v4423_v16 = vld [vmem:[%s6307_s11 + $0x4c] ss:$16 sps:$4 sm:$0xff]   ;;  %v4421_v52 = vld [vmem:[%s6307_s11 + $0x48] ss:$16 sps:$4 sm:$0xff]  }
 0x6c4   : > { %4565 = vpow2.f32 %v2886_v51  ;;  %v2888_v21 = vmul.f32 1.442695, %v2883_v35  ;;  %v4426_v51 = vld [vmem:[%s6307_s11 + $0x6c] ss:$16 sps:$4 sm:$0xff]   ;;  %v4435_v35 = vld [vmem:[%s6309_s13 + $0xc0] sm:$0xff]  }
 0x6c5   : > { %4567 = vpow2.f32 %v2892_v60  ;;  %v4437_v60 = vld [vmem:[%s6309_s13 + $0x80] sm:$0xff]  }
 0x6c6   : > { %4569 = vpow2.f32 %v2888_v21  ;;  %v4439_v21 = vld [vmem:[%s6309_s13 + $0xc8] sm:$0xff]  }
 0x6cd   : > { %v4564_v13 = vpop.eup %4563 }
 0x6ce   : > { %v4566_v22 = vpop.eup %4565  ;;  %v3857_v29 = vadd.f32 -1.0, %v4564_v13  ;;  %v4441_v13 = vld [vmem:[%s6309_s13 + $0x88] sm:$0xff]  }
 0x6cf   : > { %v4568_v54 = vpop.eup %4567  ;;  %v3855_v24 = vadd.f32 -1.0, %v4566_v22  ;;  %v4443_v22 = vld [vmem:[%s6309_s13 + $0xd0] sm:$0xff]  }
 0x6d0   : > { %v4570_v6 = vpop.eup %4569  ;;  %v3858_v50 = vadd.f32 -1.0, %v4568_v54  ;;  %v2900_v10 = vsel %vm2880_vm14, %v2872_v59, %v3857_v29  ;;  %v4440_v59 = vld [vmem:[%s6309_s13 + $0x68] sm:$0xff]   ;;  %v4444_v54 = vld [vmem:[%s6309_s13 + $0x70] sm:$0xff]   ;;  %v4449_v29 = vld [vmem:[%s6309_s13 + $0x98] sm:$0xff]  }
 0x6d1   : > { %v2898_v19 = vsel %vm2878_vm12, %v2864_v17, %v3855_v24  ;;  %v3856_v48 = vadd.f32 -1.0, %v4570_v6  ;;  %4119 = vmatprep.subr.bf16.mxu0 %v4440_v59  ;;  %v4445_v24 = vld [vmem:[%s6309_s13 + $0x90] sm:$0xff]  }
 0x6d2   : > { %2906 = vrot.lane.b32.xlu0 %v2898_v19, %s4587_s28  ;;  %v2901_v26 = vsel %vm2881_vm1, %v2875_v32, %v3858_v50  ;;  %4120 = vmatpush3.bf16.msra.mxu0 %v4442_v30  ;;  %v4415_v32 = vld [vmem:[%s6307_s11 + $0x8] ss:$16 sps:$4 sm:$0xff]   ;;  %v4446_v6 = vld [vmem:[%s6309_s13 + $0x30] sm:$0xff]   ;;  %v4451_v50 = vld [vmem:[%s6309_s13 + $0xe0] sm:$0xff]  }
 0x6d3   : > { %v2899_v36 = vsel %vm2879_vm13, %v2867_v14, %v3856_v48  ;;  %v4418_v14 = vld [vmem:[%s6307_s11 + $0x28] ss:$16 sps:$4 sm:$0xff]   ;;  %4121 = vmatprep.subr.bf16.mxu0 %v4444_v54 }
 0x6d4   : > { %2908 = vrot.lane.b32.xlu1 %v2899_v36, %s4587_s28  ;;  %v4448_v48 = vld [vmem:[%s6309_s13 + $0x78] sm:$0xff]  }
 0x6d6   : > { %2910 = vrot.lane.b32.xlu0 %v2900_v10, %s4587_s28  ;;  %4122 = vmatpush3.bf16.msra.mxu0 %v4446_v6 }
 0x6d7   : > { %4123 = vmatprep.subr.bf16.mxu0 %v4448_v48 }
 0x6d8   : > { %2912 = vrot.lane.b32.xlu1 %v2901_v26, %s4587_s28 }
 0x744   : > { %v2907_v42 = vpop.permute.xlu0 %2906 }
 0x745   : > { %v2918_v62 = vmax.f32 %v2898_v19, %v2907_v42  ;;  %v4447_v19 = vld [vmem:[%s6309_s13 + $0xd8] sm:$0xff]  }
 0x746   : > { %v2909_v34 = vpop.permute.xlu1 %2908 }
 0x747   : > { %2923 = vst.msk [vmem:[#allocation4] sm:$0xff] %vm2922_vm15, %v2918_v62  ;;  %v2919_v53 = vmax.f32 %v2899_v36, %v2909_v34  ;;  %v4450_v36 = vld [vmem:[%s6309_s13 + $0x38] sm:$0xff]  }
 0x748   : > { %v2911_v20 = vpop.permute.xlu0 %2910  ;;  %4124 = vmatpush3.bf16.msra.mxu0 %v4450_v36 }
 0x749   : > { %2924 = vst.msk [vmem:[#allocation4 + $0x8] sm:$0xff] %vm2922_vm15, %v2919_v53  ;;  %v2920_v33 = vmax.f32 %v2900_v10, %v2911_v20  ;;  %v4452_v10 = vld [vmem:[%s6309_s13 + $0xa0] sm:$0xff]  }
 0x74a   : > { %v2913_v23 = vpop.permute.xlu1 %2912 }
 0x74b   : > { %2925 = vst.msk [vmem:[#allocation4 + $0x10] sm:$0xff] %vm2922_vm15, %v2920_v33  ;;  %v2921_v43 = vmax.f32 %v2901_v26, %v2913_v23  ;;  %v4453_v26 = vld [vmem:[%s6309_s13 + $0xe8] sm:$0xff]  }
 0x74d   : > { %2926 = vst.msk [vmem:[#allocation4 + $0x18] sm:$0xff] %vm2922_vm15, %v2921_v43 }
 0x754   : > { %v2932_v45 = vld [vmem:[#allocation4 + $0x2] ss:$4 sm:$0xff]  ;;  %v2934_v27 = vld [vmem:[#allocation4 + $0x3] ss:$4 sm:$0xff]  ;;  %v2927_v49 = vld [vmem:[#allocation4] ss:$4 sm:$0xff] }
 0x755   : > { %v2935_v39 = vmax.f32 %v2932_v45, %v2934_v27  ;;  %v2929_v17 = vld [vmem:[#allocation4 + $0x1] ss:$4 sm:$0xff]  ;;  %v2970_v27 = vsub.s32 2, %v4693_v5 }
 0x756   : > { %v2930_v9 = vmax.f32 %v2927_v49, %v2929_v17 }
 0x757   : > { %2937 = vrot.lane.b32.xlu0 %v2935_v39, %s4588_s24  ;;  %v2974_v39 = vsub.s32 3, %v4693_v5  ;;  %v2971_v0 = vrot.slane %v2958_v44, %v2970_v27  ;;  %v3877_v5 = vld [vmem:[%s6310_s14] ss:$0 sm:$0xff] }
 0x759   : > { %v2975_v47 = vrot.slane %v2958_v44, %v2974_v39 }
 0x7c9   : > { %v2938_v4 = vpop.permute.xlu0 %2937 }
 0x7ca   : > { %v2940_v63 = vsel %vm2922_vm15, %v2930_v9, %v2938_v4  ;;  %v3497_v4 = vand.u32 127, %v528_v1 }
 0x7cb   : > { %v2941_v15 = vpack.c.bf16 %v2940_v63, %v2940_v63 }
 0x7cc   : > { %vm3498_vm4 = vcmp.lt.s32.totalorder %v3497_v4, 6  ;;  %vm3517_vm6 = vcmp.eq.s32.totalorder %v3497_v4, 7 }
 0x7cd   : > { %3875 = vmatmul.mubr.msk.bf16.vlgmr.msra.gmra.mrb[48].mxu1 %vm6455_vm7, %v2941_v15 }
 0x7ce   : > { %3105 = vmatpush1.bf16.msra.mxu1 %v4415_v32  ;;  %3136 = vmatprep.mubr.bf16.mxu1 %v4586_v25  ;;  %v4424_v25 = vld [vmem:[%s6307_s11 + $0x68] ss:$16 sps:$4 sm:$0xff]  }
 0x7cf   : > { %3106 = vmatprep.subr.bf16.mxu1 %v4420_v31 }
 0x7d2   : > { %3107 = vmatpush1.bf16.msra.mxu1 %v4418_v14 }
 0x7d3   : > { %3108 = vmatprep.subr.bf16.mxu1 %v4423_v16 }
 0x7d6   : > { %3109 = vmatpush1.bf16.msra.mxu1 %v4421_v52 }
 0x7d7   : > { %3110 = vmatprep.subr.bf16.mxu1 %v4426_v51 }
 0x7da   : > { %3111 = vmatpush1.bf16.msra.mxu1 %v4424_v25 }
 0x7db   : > { %4131 = vmatprep.subr.bf16.mxu1 %v4435_v35 }
 0x7dd   : > { %3876 = vmatmul.mubr.msk.bf16.vlgmr.msra.gmra.mrb[52].mxu1 %vm6456_vm9, %v2941_v15 }
 0x7de   : > { %4132 = vmatpush3.bf16.msra.mxu1 %v4437_v60 }
 0x7df   : > { %4133 = vmatprep.subr.bf16.mxu1 %v4439_v21 }
 0x7e2   : > { %4134 = vmatpush3.bf16.msra.mxu1 %v4441_v13 }
 0x7e3   : > { %4135 = vmatprep.subr.bf16.mxu1 %v4443_v22 }
 0x7e6   : > { %4136 = vmatpush3.bf16.msra.mxu1 %v4445_v24 }
 0x7e7   : > { %4137 = vmatprep.subr.bf16.mxu1 %v4447_v19 }
 0x7ea   : > { %4138 = vmatpush3.bf16.msra.mxu1 %v4449_v29 }
 0x7eb   : > { %4139 = vmatprep.subr.bf16.mxu1 %v4451_v50 }
 0x7ee   : > { %4140 = vmatpush3.bf16.msra.mxu1 %v4452_v10 }
 0x7ef   : > { %4141 = vmatprep.subr.bf16.mxu1 %v4453_v26 }
 0x7f2   : > { %4142 = vmatpush3.bf16.msra.mxu1 %v4454_v18 }
 0x7f3   : > { %4143 = vmatprep.subr.bf16.mxu1 %v4455_v56 }
 0x7f6   : > { %4144 = vmatpush3.bf16.msra.mxu1 %v4456_v55 }
 0x7f7   : > { %4145 = vmatprep.subr.bf16.mxu1 %v4457_v28 }
 0x7fa   : > { %4146 = vmatpush3.bf16.msra.mxu1 %v4458_v11 }
 0x8a0   : > { %v3097_v42 = vpop.f32.mrb[48].mxu1 }
 0x8a1   : > { %v3098_v62 = vadd.f32 %v3097_v42, %v2963_v2  ;;  %v3099_v34 = vpop.f32.mrb[49].mxu1 }
 0x8a2   : > { %v3100_v53 = vadd.f32 %v3099_v34, %v2967_v46  ;;  %v3101_v20 = vpop.f32.mrb[50].mxu1 }
 0x8a3   : > { %v3145_v33 = vmax.f32 %v3098_v62, 0.0  ;;  %v3102_v23 = vpop.f32.mrb[51].mxu1 }
 0x8a4   : > { %v3146_v43 = vmax.f32 %v3100_v53, 0.0 }
 0x8a5   : > { %v3149_v45 = vpack.c.bf16 %v3145_v33, %v3145_v33 }
 0x8a6   : > { %v3150_v58 = vpack.c.bf16 %v3146_v43, %v3146_v43 }
 0x8a8   : > { %3448 = vmatprep.mubr.bf16.mxu0 %v3150_v58 }
 0x8a9   : > { %3449 = vmatmul.mubr.bf16.vlgmr.msra.gmra.mrb[52].mxu0 %v3149_v45 }
 0x8b0   : > { %v3138_v12 = vpop.f32.mrb[52].mxu1 }
 0x8b1   : > { %v3139_v38 = vadd.f32 %v3138_v12, %v2971_v0  ;;  %v3140_v7 = vpop.f32.mrb[53].mxu1 }
 0x8b2   : > { %v3141_v61 = vadd.f32 %v3140_v7, %v2975_v47  ;;  %v3142_v41 = vpop.f32.mrb[54].mxu1 }
 0x8b3   : > { %v3147_v3 = vmax.f32 %v3139_v38, 0.0  ;;  %v3143_v40 = vpop.f32.mrb[55].mxu1 }
 0x8b4   : > { %v3148_v37 = vmax.f32 %v3141_v61, 0.0 }
 0x8b5   : > { %v3151_v57 = vpack.c.bf16 %v3147_v3, %v3147_v3 }
 0x8b6   : > { %v3152_v8 = vpack.c.bf16 %v3148_v37, %v3148_v37 }
 0x8b8   : > { %3488 = vmatprep.mubr.bf16.mxu1 %v3152_v8 }
 0x8b9   : > { %3489 = vmatmul.mubr.bf16.vlgmr.msra.gmra.mrb[56].mxu1 %v3151_v57 }
 0x97c   : > { %v4125_v59 = vpop.f32.mrb[52].mxu0 }
 0x97d   : > { %v4126_v30 = vpop.f32.mrb[53].mxu0 }
 0x97e   : > { %v4127_v49 = vadd.f32 %v4126_v30, %v4125_v59  ;;  %v4128_v17 = vpop.f32.mrb[54].mxu0 }
 0x97f   : > { %v4129_v9 = vpop.f32.mrb[55].mxu0 }
 0x980   : > { %v3451_v15 = vadd.f32 %v4127_v49, %v3877_v5 }
 0x98c   : > { %v4147_v63 = vpop.f32.mrb[56].mxu1 }
 0x98d   : > { %v4148_v32 = vpop.f32.mrb[57].mxu1 }
 0x98e   : > { %v4149_v31 = vadd.f32 %v4148_v32, %v4147_v63  ;;  %v4150_v14 = vpop.f32.mrb[58].mxu1 }
 0x98f   : > { %v4151_v16 = vpop.f32.mrb[59].mxu1 }
 0x990   : > { %v3491_v52 = vadd.f32 %v4149_v31, %v3451_v15 }
 0x992   : > { %v3499_v51 = vsel %vm3498_vm4, %v3491_v52, -inf }
 0x993   : > { %3500 = vmax.xlane.f32.xlu1 %v3499_v51 }
 0xa20   : > { %v3501_v25 = vpop.xlane.xlu1 %3500 }
 0xa21   : > { %v3502_v35 = vsub.f32 %v3491_v52, %v3501_v25 }
 0xa23   : > { %v3503_v60 = vmul.f32 1.442695, %v3502_v35 }
 0xa25   : > { %4571 = vpow2.f32 %v3503_v60 }
 0xa2f   : > { %v4572_v21 = vpop.eup %4571 }
 0xa30   : > { %v3505_v13 = vsel %vm3498_vm4, %v4572_v21, 0.0 }
 0xa31   : > { %3506 = vadd.xlane.f32.xlu0 %v3505_v13 }
 0xabe   : > { %v3507_v1 = vpop.xlane.xlu0 %3506 }
 0xabf   : > { %4573 = vrcp.f32 %v3507_v1 }
 0xac0   : > { %4575 = vlog2.f32 %v3507_v1 }
 0xac9   : > { %v4574_v22 = vpop.eup %4573 }
 0xaca   : > { %v4576_v54 = vpop.eup %4575  ;;  %v3509_v6 = vmul.f32 %v4574_v22, %v3505_v13 }
 0xacb   : > { %v3511_v24 = vmul.f32 0.6931472, %v4576_v54 }
 0xacd   : > { %v3512_v19 = vsub.f32 %v3502_v35, %v3511_v24 }
 0xacf   : > { %v3513_v48 = vmul.f32 %v3512_v19, %v3509_v6 }
 0xad1   : > { %3514 = vadd.xlane.f32.xlu0 %v3513_v48 }
 0xb5e   : > { %v3515_v29 = vpop.xlane.xlu0 %3514 }
 0xb5f   : > { %v3516_v36 = vsub.f32 0.0, %v3515_v29 }
 0xb61   : > { %v3518_v50 = vsel %vm3517_vm6, %v3516_v36, %v3491_v52 }
 0xb62   : > { %3519 = vst [vmem:[%s494_s16] sm:$0xff] %v3518_v50 }
 0xb63 PF: > { %s25_s18 = sadd.s32 1, %s4583_s18  }
 0xb64   : > { %p22_p5 = scmp.ge.s32.totalorder %s25_s18, 4  }
 0xb66   :  { %24 = sbr.rel (!%p22_p5) target bundleno = 1 (0x1), region = 135 }

</bundles_post_ra>
